<compile_context>
chip_gen: v7x
topology: tpu7x:2x2x1
jax: 0.10.0
libtpu: 0.0.40
codegen_flags: <defaults>
</compile_context>

<pallas_src>
import jax
import jax.numpy as jnp
from jax.experimental import pallas as pl
from jax.experimental.pallas import tpu as pltpu

# ------------------------------------------------------------------------
# Scaled-down configuration, structurally consistent with the module:
#   original: 6144 -> 3072 -> 1536 -> 768, seq/step_dim = 512, ViT-B_16
#   here    : 1024 ->  512 ->  256 -> 128, seq/step_dim = 8, NH=4, NL=2
# ------------------------------------------------------------------------
B = 2          # batch
S = 8          # sequence length == Attention.step_dim == per-token head width
D_IN = 1024    # input feature dim  (6144 analogue)
D1 = 512       # linear_feature1 out (3072 analogue)
D2 = 256       # linear_feature2 out (1536 analogue)
D = 128        # hidden size (768 analogue)
NH = 4         # attention heads
HEAD = D // NH
MLP = 256      # ViT MLP dim
NL = 2         # transformer layers
T = S + 1      # tokens (cls + S)
LN_EPS = 1e-6
N_HEADS_OUT = S + 9   # 10 heads: "pe" -> S wide, 9 scalar heads
NP = 128              # lane-dense padded width of the fused head matmuls


# ==========================================================================
# In-kernel helpers
# ==========================================================================
def _ln(x, g, b, eps=LN_EPS):
    x = x.astype(jnp.float32)
    mu = jnp.mean(x, axis=-1, keepdims=True)
    var = jnp.mean(jnp.square(x - mu), axis=-1, keepdims=True)
    return (x - mu) * jax.lax.rsqrt(var + eps) * g + b


def _mm(a, w):
    """bf16 MXU matmul with f32 accumulate (weights already bf16)."""
    return jnp.dot(a.astype(jnp.bfloat16), w.astype(jnp.bfloat16),
                   preferred_element_type=jnp.float32)


# ==========================================================================
# Single fused forward kernel (per batch element, grid=(B,))
# ==========================================================================
def _fused_forward_kernel(
        x_ref, mask_ref,
        fw1, fb1, fw2, fb2, fw3, fb3,
        cls_ref, pos_ref,
        ln1g, ln1b, wqkv, bqkv, wo, bo, ln2g, ln2b, w1, b1, w2, b2,
        lnfg, lnfb, headw, headb, attw, attb, lwtop, lwbot, lastb,
        cls_out_ref, rest_out_ref,
        attn_scr):
    # ---- feature MLP: linear_feature1 -> 2 -> 3 (no activation) ----------
    x = x_ref[0]                                          # (S, D_IN) f32
    h = _mm(x, fw1[...]) + fb1[...]
    h = _mm(h, fw2[...]) + fb2[...]
    feats = _mm(h, fw3[...]) + fb3[...]                   # (S, D) f32

    # ---- cls token + positional embedding (fused; no wrapper glue) -------
    h = jnp.concatenate([cls_ref[0].astype(jnp.float32), feats], axis=0)
    h = h + pos_ref[0]                                    # (T, D)

    # ---- NL pre-LN encoder layers (unrolled; intermediates stay in VMEM) -
    scale = 1.0 / float(HEAD) ** 0.5
    for l in range(NL):
        xn = _ln(h, ln1g[l], ln1b[l])
        qkv = _mm(xn, wqkv[l]) + bqkv[l]                  # (T, 3D)
        q = qkv[:, :D]                                    # 128-aligned splits
        k = qkv[:, D:2 * D]
        v = qkv[:, 2 * D:]

        # Per-head attention; head outputs written into a (T, D) scratch at
        # their column offset, then ONE K=D out-projection matmul.
        # TODO(synk): at real dims (HEAD=64) pack two heads per 128-lane vreg
        # to avoid the sub-128 lane extracts below.
        for hh in range(NH):
            lo = hh * HEAD
            qh = q[:, lo:lo + HEAD]
            kh = k[:, lo:lo + HEAD]
            vh = v[:, lo:lo + HEAD]
            s = _mm(qh, kh.T) * scale                     # (T, T)
            s = s - jnp.max(s, axis=-1, keepdims=True)
            p = jnp.exp(s)
            p = p * pl.reciprocal(jnp.sum(p, axis=-1, keepdims=True),
                                  approx=True)
            attn_scr[:, lo:lo + HEAD] = _mm(p, vh)        # (T, HEAD)
        h = h + _mm(attn_scr[...], wo[l]) + bo[l]         # residual 1

        xn2 = _ln(h, ln2g[l], ln2b[l])
        m = _mm(xn2, w1[l]) + b1[l]
        # TODO(synk): PyTorch ViT default is erf-GELU; tanh approximation used.
        m = jax.nn.gelu(m, approximate=True)
        h = h + _mm(m, w2[l]) + b2[l]                     # residual 2

    # ---- final LN + fused heads ------------------------------------------
    hn = _ln(h, lnfg[...], lnfb[...])                     # (T, D)
    cls_tok = hn[:1, :]                                   # (1, D)
    rest = hn[1:, :]                                      # (S, D)

    # 10 cls-token heads fused into one lane-dense (D, NP) matmul.
    cls_out_ref[0] = (_mm(cls_tok, headw[...])
                      + headb[...]).astype(cls_out_ref.dtype)

    # Attention module: eij = tanh(x @ w + b); a = exp(eij)*mask
    #                   a = a / sum(a) + 1e-10; att = sum(x * a)
    eij = jnp.sum(rest * attw[...], axis=-1, keepdims=True)   # (S, 1)
    eij = jnp.tanh(eij + attb[0])
    a = jnp.exp(eij) * mask_ref[0]
    a = a / jnp.sum(a, axis=0, keepdims=True) + 1e-10
    att = jnp.sum(rest * a, axis=0, keepdims=True)        # (1, D)
    mx = jnp.max(rest, axis=0, keepdims=True)              # (1, D)

    # conc = [max_pool, att_pool]; split-weight form avoids the lane concat.
    rest_out_ref[0] = (_mm(mx, lwtop[...]) + _mm(att, lwbot[...])
                       + lastb[...]).astype(rest_out_ref.dtype)


# ==========================================================================
# Forward wrapper: exactly ONE pallas_call
# ==========================================================================
def model_forward(params, x, mask):
    Bb, Ss, _ = x.shape
    mask3 = mask.reshape(Bb, Ss, 1)
    v = params["vit"]

    args = [
        x, mask3,
        params["fw1"], params["fb1"], params["fw2"], params["fb2"],
        params["fw3"], params["fb3"],
        v["cls"], v["pos"],
        v["ln1_g"], v["ln1_b"], v["wqkv"], v["bqkv"], v["wo"], v["bo"],
        v["ln2_g"], v["ln2_b"], v["w1"], v["b1"], v["w2"], v["b2"],
        v["lnf_g"], v["lnf_b"], v["head_w"], v["head_b"],
        params["att_w"], params["att_b"],
        params["last_w_top"], params["last_w_bot"], params["last_b"],
    ]

    def rep(arr):
        nd = arr.ndim
        return pl.BlockSpec(arr.shape, lambda b, _n=nd: (0,) * _n)

    x_spec = pl.BlockSpec((1, Ss, D_IN), lambda b: (b, 0, 0))
    m_spec = pl.BlockSpec((1, Ss, 1), lambda b: (b, 0, 0))
    in_specs = [x_spec, m_spec] + [rep(a) for a in args[2:]]
    out_spec = pl.BlockSpec((1, 1, NP), lambda b: (b, 0, 0))

    cls_blk, rest_blk = pl.pallas_call(
        _fused_forward_kernel,
        out_shape=(jax.ShapeDtypeStruct((Bb, 1, NP), x.dtype),
                   jax.ShapeDtypeStruct((Bb, 1, NP), x.dtype)),
        grid_spec=pltpu.PrefetchScalarGridSpec(
            num_scalar_prefetch=0,
            grid=(Bb,),
            in_specs=in_specs,
            out_specs=(out_spec, out_spec),
            scratch_shapes=[pltpu.VMEM((T, D), jnp.float32)],
        ),
        compiler_params=pltpu.CompilerParams(
            dimension_semantics=("parallel",)),
    )(*args)
    # Lane-dense packed slabs; per-head slicing happens lazily at the consumer.
    return cls_blk, rest_blk


def unpack_heads(cls_blk, rest_blk):
    """Outside-jit unpacking into the PyTorch 10-pair return structure."""
    cls_logits = cls_blk[:, 0, :]
    rest_logits = rest_blk[:, 0, :]
    cls_heads = (cls_logits[:, :S],) + tuple(
        cls_logits[:, S + i:S + i + 1] for i in range(9))
    rest_heads = (rest_logits[:, :S],) + tuple(
        rest_logits[:, S + i:S + i + 1] for i in range(9))
    return tuple(zip(cls_heads, rest_heads))


# ==========================================================================
# Deterministic parameter init (bf16 matmul weights, fused/padded layouts)
# ==========================================================================
def init_params(key):
    keys = iter(jax.random.split(key, 64))
    bf16 = jnp.bfloat16

    def nrm(shape, scale=0.02, dtype=jnp.float32):
        return (scale * jax.random.normal(next(keys), shape)).astype(dtype)

    def zeros(shape):
        return jnp.zeros(shape, jnp.float32)

    def ones(shape):
        return jnp.ones(shape, jnp.float32)

    def pad_cols(w, n):
        out = jnp.zeros((w.shape[0], n), w.dtype)
        return out.at[:, :w.shape[1]].set(w)

    vit = dict(
        cls=nrm((1, 1, D)),
        pos=nrm((1, T, D)),
        # Stacked (NL, ...) layer weights, looped over inside the kernel.
        ln1_g=jnp.ones((NL, 1, D), jnp.float32),
        ln1_b=jnp.zeros((NL, 1, D), jnp.float32),
        wqkv=nrm((NL, D, 3 * D), dtype=bf16),
        bqkv=jnp.zeros((NL, 1, 3 * D), jnp.float32),
        wo=nrm((NL, D, D), dtype=bf16),
        bo=jnp.zeros((NL, 1, D), jnp.float32),
        ln2_g=jnp.ones((NL, 1, D), jnp.float32),
        ln2_b=jnp.zeros((NL, 1, D), jnp.float32),
        w1=nrm((NL, D, MLP), dtype=bf16),
        b1=jnp.zeros((NL, 1, MLP), jnp.float32),
        w2=nrm((NL, MLP, D), dtype=bf16),
        b2=jnp.zeros((NL, 1, D), jnp.float32),
        lnf_g=ones((1, D)), lnf_b=zeros((1, D)),
        # 10 cls-token heads fused into one (D, NP) matmul (padded to 128).
        head_w=pad_cols(nrm((D, N_HEADS_OUT), dtype=bf16), NP),
        head_b=zeros((1, NP)),
    )

    params = dict(
        fw1=nrm((D_IN, D1), dtype=bf16), fb1=zeros((1, D1)),
        fw2=nrm((D1, D2), dtype=bf16), fb2=zeros((1, D2)),
        fw3=nrm((D2, D), dtype=bf16), fb3=zeros((1, D)),
        vit=vit,
        att_w=nrm((1, D), scale=0.1),    # Attention.weight (xavier analogue)
        att_b=zeros((1, S, 1)),          # Attention.b (zero init, as in PyTorch)
        # 10 last_linear_* heads fused; split into [max_pool | att_pool] halves.
        last_w_top=pad_cols(nrm((D, N_HEADS_OUT), dtype=bf16), NP),
        last_w_bot=pad_cols(nrm((D, N_HEADS_OUT), dtype=bf16), NP),
        last_b=zeros((1, NP)),
    )
    return params


# ==========================================================================
if __name__ == "__main__":
    key = jax.random.PRNGKey(0)
    k_param, k_x, k_mask = jax.random.split(key, 3)

    params = init_params(k_param)
    x = jax.random.normal(k_x, (B, S, D_IN), dtype=jnp.float32)
    mask = (jax.random.uniform(k_mask, (B, S)) > 0.2).astype(jnp.float32)
    mask = mask.at[:, 0].set(1.0)   # guarantee a non-empty mask per row

    fwd = jax.jit(model_forward)
    cls_blk, rest_blk = fwd(params, x, mask)
    jax.block_until_ready((cls_blk, rest_blk))

    # TODO(synk): PyTorch forward aborts on NaN in the rest tokens (host-side
    # control flow); that debug check is done here, outside the kernel.
    out = unpack_heads(cls_blk, rest_blk)

    # Shape sanity (matches the PyTorch return structure).
    assert len(out) == 10
    assert out[0][0].shape == (B, S) and out[0][1].shape == (B, S)
    for i in range(1, 10):
        assert out[i][0].shape == (B, 1) and out[i][1].shape == (B, 1)
    assert not bool(jnp.any(jnp.isnan(out[0][1])))

    print("KERNEL_OK")
</pallas_src>

<mosaic_0001>
module attributes {stable_mosaic.version = 11 : i64} {
  func.func @_fused_forward_kernel(%arg0: i32, %arg1: memref<1x8x1024xf32, #tpu.memory_space<vmem>>, %arg2: memref<1x8x1xf32, #tpu.memory_space<vmem>>, %arg3: memref<1024x512xbf16, #tpu.memory_space<vmem>>, %arg4: memref<1x512xf32, #tpu.memory_space<vmem>>, %arg5: memref<512x256xbf16, #tpu.memory_space<vmem>>, %arg6: memref<1x256xf32, #tpu.memory_space<vmem>>, %arg7: memref<256x128xbf16, #tpu.memory_space<vmem>>, %arg8: memref<1x128xf32, #tpu.memory_space<vmem>>, %arg9: memref<1x1x128xf32, #tpu.memory_space<vmem>>, %arg10: memref<1x9x128xf32, #tpu.memory_space<vmem>>, %arg11: memref<2x1x128xf32, #tpu.memory_space<vmem>>, %arg12: memref<2x1x128xf32, #tpu.memory_space<vmem>>, %arg13: memref<2x128x384xbf16, #tpu.memory_space<vmem>>, %arg14: memref<2x1x384xf32, #tpu.memory_space<vmem>>, %arg15: memref<2x128x128xbf16, #tpu.memory_space<vmem>>, %arg16: memref<2x1x128xf32, #tpu.memory_space<vmem>>, %arg17: memref<2x1x128xf32, #tpu.memory_space<vmem>>, %arg18: memref<2x1x128xf32, #tpu.memory_space<vmem>>, %arg19: memref<2x128x256xbf16, #tpu.memory_space<vmem>>, %arg20: memref<2x1x256xf32, #tpu.memory_space<vmem>>, %arg21: memref<2x256x128xbf16, #tpu.memory_space<vmem>>, %arg22: memref<2x1x128xf32, #tpu.memory_space<vmem>>, %arg23: memref<1x128xf32, #tpu.memory_space<vmem>>, %arg24: memref<1x128xf32, #tpu.memory_space<vmem>>, %arg25: memref<128x128xbf16, #tpu.memory_space<vmem>>, %arg26: memref<1x128xf32, #tpu.memory_space<vmem>>, %arg27: memref<1x128xf32, #tpu.memory_space<vmem>>, %arg28: memref<1x8x1xf32, #tpu.memory_space<vmem>>, %arg29: memref<128x128xbf16, #tpu.memory_space<vmem>>, %arg30: memref<128x128xbf16, #tpu.memory_space<vmem>>, %arg31: memref<1x128xf32, #tpu.memory_space<vmem>>, %arg32: memref<1x1x128xf32, #tpu.memory_space<vmem>>, %arg33: memref<1x1x128xf32, #tpu.memory_space<vmem>>, %arg34: memref<9x128xf32, #tpu.memory_space<vmem>>) attributes {dimension_semantics = [#tpu.dimension_semantics<parallel>], iteration_bounds = array<i64: 2>, scalar_prefetch = 0 : i64, scratch_operands = 1 : i64, tpu.core_type = #tpu.core_type<tc>, window_params = [{transform_indices = @transform_0, window_bounds = array<i64: 1, 8, 1024>}, {transform_indices = @transform_1, window_bounds = array<i64: 1, 8, 1>}, {pipeline_mode = #tpu.pipeline_mode<synchronous>, transform_indices = @transform_2, window_bounds = array<i64: 1024, 512>}, {pipeline_mode = #tpu.pipeline_mode<synchronous>, transform_indices = @transform_3, window_bounds = array<i64: 1, 512>}, {pipeline_mode = #tpu.pipeline_mode<synchronous>, transform_indices = @transform_4, window_bounds = array<i64: 512, 256>}, {pipeline_mode = #tpu.pipeline_mode<synchronous>, transform_indices = @transform_5, window_bounds = array<i64: 1, 256>}, {pipeline_mode = #tpu.pipeline_mode<synchronous>, transform_indices = @transform_6, window_bounds = array<i64: 256, 128>}, {pipeline_mode = #tpu.pipeline_mode<synchronous>, transform_indices = @transform_7, window_bounds = array<i64: 1, 128>}, {pipeline_mode = #tpu.pipeline_mode<synchronous>, transform_indices = @transform_8, window_bounds = array<i64: 1, 1, 128>}, {pipeline_mode = #tpu.pipeline_mode<synchronous>, transform_indices = @transform_9, window_bounds = array<i64: 1, 9, 128>}, {pipeline_mode = #tpu.pipeline_mode<synchronous>, transform_indices = @transform_10, window_bounds = array<i64: 2, 1, 128>}, {pipeline_mode = #tpu.pipeline_mode<synchronous>, transform_indices = @transform_11, window_bounds = array<i64: 2, 1, 128>}, {pipeline_mode = #tpu.pipeline_mode<synchronous>, transform_indices = @transform_12, window_bounds = array<i64: 2, 128, 384>}, {pipeline_mode = #tpu.pipeline_mode<synchronous>, transform_indices = @transform_13, window_bounds = array<i64: 2, 1, 384>}, {pipeline_mode = #tpu.pipeline_mode<synchronous>, transform_indices = @transform_14, window_bounds = array<i64: 2, 128, 128>}, {pipeline_mode = #tpu.pipeline_mode<synchronous>, transform_indices = @transform_15, window_bounds = array<i64: 2, 1, 128>}, {pipeline_mode = #tpu.pipeline_mode<synchronous>, transform_indices = @transform_16, window_bounds = array<i64: 2, 1, 128>}, {pipeline_mode = #tpu.pipeline_mode<synchronous>, transform_indices = @transform_17, window_bounds = array<i64: 2, 1, 128>}, {pipeline_mode = #tpu.pipeline_mode<synchronous>, transform_indices = @transform_18, window_bounds = array<i64: 2, 128, 256>}, {pipeline_mode = #tpu.pipeline_mode<synchronous>, transform_indices = @transform_19, window_bounds = array<i64: 2, 1, 256>}, {pipeline_mode = #tpu.pipeline_mode<synchronous>, transform_indices = @transform_20, window_bounds = array<i64: 2, 256, 128>}, {pipeline_mode = #tpu.pipeline_mode<synchronous>, transform_indices = @transform_21, window_bounds = array<i64: 2, 1, 128>}, {pipeline_mode = #tpu.pipeline_mode<synchronous>, transform_indices = @transform_22, window_bounds = array<i64: 1, 128>}, {pipeline_mode = #tpu.pipeline_mode<synchronous>, transform_indices = @transform_23, window_bounds = array<i64: 1, 128>}, {pipeline_mode = #tpu.pipeline_mode<synchronous>, transform_indices = @transform_24, window_bounds = array<i64: 128, 128>}, {pipeline_mode = #tpu.pipeline_mode<synchronous>, transform_indices = @transform_25, window_bounds = array<i64: 1, 128>}, {pipeline_mode = #tpu.pipeline_mode<synchronous>, transform_indices = @transform_26, window_bounds = array<i64: 1, 128>}, {pipeline_mode = #tpu.pipeline_mode<synchronous>, transform_indices = @transform_27, window_bounds = array<i64: 1, 8, 1>}, {pipeline_mode = #tpu.pipeline_mode<synchronous>, transform_indices = @transform_28, window_bounds = array<i64: 128, 128>}, {pipeline_mode = #tpu.pipeline_mode<synchronous>, transform_indices = @transform_29, window_bounds = array<i64: 128, 128>}, {pipeline_mode = #tpu.pipeline_mode<synchronous>, transform_indices = @transform_30, window_bounds = array<i64: 1, 128>}, {transform_indices = @transform_31, window_bounds = array<i64: 1, 1, 128>}, {transform_indices = @transform_32, window_bounds = array<i64: 1, 1, 128>}]} {
    %c0 = arith.constant 0 : index
    %c0_0 = arith.constant 0 : index
    %c0_1 = arith.constant 0 : index
    %0 = vector.load %arg1[%c0, %c0_0, %c0_1] : memref<1x8x1024xf32, #tpu.memory_space<vmem>>, vector<1x8x1024xf32>
    %1 = vector.shape_cast %0 : vector<1x8x1024xf32> to vector<8x1024xf32>
    %c0_2 = arith.constant 0 : index
    %c0_3 = arith.constant 0 : index
    %2 = vector.load %arg3[%c0_2, %c0_3] : memref<1024x512xbf16, #tpu.memory_space<vmem>>, vector<1024x512xbf16>
    %3 = arith.truncf %1 : vector<8x1024xf32> to vector<8x1024xbf16>
    %cst = arith.constant dense<0.000000e+00> : vector<8x512xf32>
    %4 = tpu.matmul %3, %2, %cst {dimension_numbers = #tpu.dot_dimension_numbers<[1], [0], [0], [1], [0, 0, 1, 1], [], []>} : vector<8x1024xbf16>, vector<1024x512xbf16>, vector<8x512xf32> -> vector<8x512xf32>
    %c0_4 = arith.constant 0 : index
    %c0_5 = arith.constant 0 : index
    %5 = vector.load %arg4[%c0_4, %c0_5] : memref<1x512xf32, #tpu.memory_space<vmem>>, vector<1x512xf32>
    %6 = vector.broadcast %5 : vector<1x512xf32> to vector<8x512xf32>
    %7 = arith.addf %4, %6 : vector<8x512xf32>
    %c0_6 = arith.constant 0 : index
    %c0_7 = arith.constant 0 : index
    %8 = vector.load %arg5[%c0_6, %c0_7] : memref<512x256xbf16, #tpu.memory_space<vmem>>, vector<512x256xbf16>
    %9 = arith.truncf %7 : vector<8x512xf32> to vector<8x512xbf16>
    %cst_8 = arith.constant dense<0.000000e+00> : vector<8x256xf32>
    %10 = tpu.matmul %9, %8, %cst_8 {dimension_numbers = #tpu.dot_dimension_numbers<[1], [0], [0], [1], [0, 0, 1, 1], [], []>} : vector<8x512xbf16>, vector<512x256xbf16>, vector<8x256xf32> -> vector<8x256xf32>
    %c0_9 = arith.constant 0 : index
    %c0_10 = arith.constant 0 : index
    %11 = vector.load %arg6[%c0_9, %c0_10] : memref<1x256xf32, #tpu.memory_space<vmem>>, vector<1x256xf32>
    %12 = vector.broadcast %11 : vector<1x256xf32> to vector<8x256xf32>
    %13 = arith.addf %10, %12 : vector<8x256xf32>
    %c0_11 = arith.constant 0 : index
    %c0_12 = arith.constant 0 : index
    %14 = vector.load %arg7[%c0_11, %c0_12] : memref<256x128xbf16, #tpu.memory_space<vmem>>, vector<256x128xbf16>
    %15 = arith.truncf %13 : vector<8x256xf32> to vector<8x256xbf16>
    %cst_13 = arith.constant dense<0.000000e+00> : vector<8x128xf32>
    %16 = tpu.matmul %15, %14, %cst_13 {dimension_numbers = #tpu.dot_dimension_numbers<[1], [0], [0], [1], [0, 0, 1, 1], [], []>} : vector<8x256xbf16>, vector<256x128xbf16>, vector<8x128xf32> -> vector<8x128xf32>
    %c0_14 = arith.constant 0 : index
    %c0_15 = arith.constant 0 : index
    %17 = vector.load %arg8[%c0_14, %c0_15] : memref<1x128xf32, #tpu.memory_space<vmem>>, vector<1x128xf32>
    %18 = vector.broadcast %17 : vector<1x128xf32> to vector<8x128xf32>
    %19 = arith.addf %16, %18 : vector<8x128xf32>
    %c0_16 = arith.constant 0 : index
    %c0_17 = arith.constant 0 : index
    %c0_18 = arith.constant 0 : index
    %20 = vector.load %arg9[%c0_16, %c0_17, %c0_18] : memref<1x1x128xf32, #tpu.memory_space<vmem>>, vector<1x1x128xf32>
    %21 = vector.shape_cast %20 : vector<1x1x128xf32> to vector<1x128xf32>
    %22 = tpu.concatenate %21, %19 in 0 : vector<1x128xf32>, vector<8x128xf32> -> vector<9x128xf32>
    %c0_19 = arith.constant 0 : index
    %c0_20 = arith.constant 0 : index
    %c0_21 = arith.constant 0 : index
    %23 = vector.load %arg10[%c0_19, %c0_20, %c0_21] : memref<1x9x128xf32, #tpu.memory_space<vmem>>, vector<1x9x128xf32>
    %24 = vector.shape_cast %23 : vector<1x9x128xf32> to vector<9x128xf32>
    %25 = arith.addf %22, %24 : vector<9x128xf32>
    %c0_22 = arith.constant 0 : index
    %c0_23 = arith.constant 0 : index
    %c0_24 = arith.constant 0 : index
    %26 = vector.load %arg11[%c0_22, %c0_23, %c0_24] : memref<2x1x128xf32, #tpu.memory_space<vmem>>, vector<1x1x128xf32>
    %27 = vector.shape_cast %26 : vector<1x1x128xf32> to vector<1x128xf32>
    %c0_25 = arith.constant 0 : index
    %c0_26 = arith.constant 0 : index
    %c0_27 = arith.constant 0 : index
    %28 = vector.load %arg12[%c0_25, %c0_26, %c0_27] : memref<2x1x128xf32, #tpu.memory_space<vmem>>, vector<1x1x128xf32>
    %29 = vector.shape_cast %28 : vector<1x1x128xf32> to vector<1x128xf32>
    %cst_28 = arith.constant dense<0.000000e+00> : vector<9xf32>
    %30 = vector.multi_reduction <add>, %25, %cst_28 [1] : vector<9x128xf32> to vector<9xf32>
    %31 = vector.shape_cast %30 : vector<9xf32> to vector<9x1xf32>
    %cst_29 = arith.constant 1.280000e+02 : f32
    %32 = vector.broadcast %cst_29 : f32 to vector<9x1xf32>
    %33 = arith.divf %31, %32 : vector<9x1xf32>
    %34 = vector.broadcast %33 : vector<9x1xf32> to vector<9x128xf32>
    %35 = arith.subf %25, %34 : vector<9x128xf32>
    %36 = arith.mulf %35, %35 : vector<9x128xf32>
    %cst_30 = arith.constant dense<0.000000e+00> : vector<9xf32>
    %37 = vector.multi_reduction <add>, %36, %cst_30 [1] : vector<9x128xf32> to vector<9xf32>
    %38 = vector.shape_cast %37 : vector<9xf32> to vector<9x1xf32>
    %cst_31 = arith.constant 1.280000e+02 : f32
    %39 = vector.broadcast %cst_31 : f32 to vector<9x1xf32>
    %40 = arith.divf %38, %39 : vector<9x1xf32>
    %41 = vector.broadcast %33 : vector<9x1xf32> to vector<9x128xf32>
    %42 = arith.subf %25, %41 : vector<9x128xf32>
    %cst_32 = arith.constant 9.99999997E-7 : f32
    %43 = vector.broadcast %cst_32 : f32 to vector<9x1xf32>
    %44 = arith.addf %40, %43 : vector<9x1xf32>
    %45 = math.rsqrt %44 : vector<9x1xf32>
    %46 = vector.broadcast %45 : vector<9x1xf32> to vector<9x128xf32>
    %47 = arith.mulf %42, %46 : vector<9x128xf32>
    %48 = vector.broadcast %27 : vector<1x128xf32> to vector<9x128xf32>
    %49 = arith.mulf %47, %48 : vector<9x128xf32>
    %50 = vector.broadcast %29 : vector<1x128xf32> to vector<9x128xf32>
    %51 = arith.addf %49, %50 : vector<9x128xf32>
    %c0_33 = arith.constant 0 : index
    %c0_34 = arith.constant 0 : index
    %c0_35 = arith.constant 0 : index
    %52 = vector.load %arg13[%c0_33, %c0_34, %c0_35] : memref<2x128x384xbf16, #tpu.memory_space<vmem>>, vector<1x128x384xbf16>
    %53 = vector.shape_cast %52 : vector<1x128x384xbf16> to vector<128x384xbf16>
    %54 = arith.truncf %51 : vector<9x128xf32> to vector<9x128xbf16>
    %cst_36 = arith.constant dense<0.000000e+00> : vector<9x384xf32>
    %55 = tpu.matmul %54, %53, %cst_36 {dimension_numbers = #tpu.dot_dimension_numbers<[1], [0], [0], [1], [0, 0, 1, 1], [], []>} : vector<9x128xbf16>, vector<128x384xbf16>, vector<9x384xf32> -> vector<9x384xf32>
    %c0_37 = arith.constant 0 : index
    %c0_38 = arith.constant 0 : index
    %c0_39 = arith.constant 0 : index
    %56 = vector.load %arg14[%c0_37, %c0_38, %c0_39] : memref<2x1x384xf32, #tpu.memory_space<vmem>>, vector<1x1x384xf32>
    %57 = vector.shape_cast %56 : vector<1x1x384xf32> to vector<1x384xf32>
    %58 = vector.broadcast %57 : vector<1x384xf32> to vector<9x384xf32>
    %59 = arith.addf %55, %58 : vector<9x384xf32>
    %60 = vector.extract_strided_slice %59 {offsets = [0, 0], sizes = [9, 128], strides = [1, 1]} : vector<9x384xf32> to vector<9x128xf32>
    %61 = vector.extract_strided_slice %59 {offsets = [0, 128], sizes = [9, 128], strides = [1, 1]} : vector<9x384xf32> to vector<9x128xf32>
    %62 = vector.extract_strided_slice %59 {offsets = [0, 256], sizes = [9, 128], strides = [1, 1]} : vector<9x384xf32> to vector<9x128xf32>
    %63 = vector.extract_strided_slice %60 {offsets = [0, 0], sizes = [9, 32], strides = [1, 1]} : vector<9x128xf32> to vector<9x32xf32>
    %64 = vector.extract_strided_slice %61 {offsets = [0, 0], sizes = [9, 32], strides = [1, 1]} : vector<9x128xf32> to vector<9x32xf32>
    %65 = vector.extract_strided_slice %62 {offsets = [0, 0], sizes = [9, 32], strides = [1, 1]} : vector<9x128xf32> to vector<9x32xf32>
    %66 = tpu.transpose %64, [1, 0] : vector<9x32xf32> -> vector<32x9xf32>
    %67 = arith.truncf %63 : vector<9x32xf32> to vector<9x32xbf16>
    %68 = arith.truncf %66 : vector<32x9xf32> to vector<32x9xbf16>
    %cst_40 = arith.constant dense<0.000000e+00> : vector<9x9xf32>
    %69 = tpu.matmul %67, %68, %cst_40 {dimension_numbers = #tpu.dot_dimension_numbers<[1], [0], [0], [1], [0, 0, 1, 1], [], []>} : vector<9x32xbf16>, vector<32x9xbf16>, vector<9x9xf32> -> vector<9x9xf32>
    %cst_41 = arith.constant 0.176776692 : f32
    %70 = vector.broadcast %cst_41 : f32 to vector<9x9xf32>
    %71 = arith.mulf %69, %70 : vector<9x9xf32>
    %cst_42 = arith.constant dense<0xFF800000> : vector<9xf32>
    %72 = vector.multi_reduction <maximumf>, %71, %cst_42 [1] : vector<9x9xf32> to vector<9xf32>
    %73 = vector.shape_cast %72 : vector<9xf32> to vector<9x1xf32>
    %74 = vector.broadcast %73 : vector<9x1xf32> to vector<9x9xf32>
    %75 = arith.subf %71, %74 : vector<9x9xf32>
    %76 = math.exp %75 : vector<9x9xf32>
    %cst_43 = arith.constant dense<0.000000e+00> : vector<9xf32>
    %77 = vector.multi_reduction <add>, %76, %cst_43 [1] : vector<9x9xf32> to vector<9xf32>
    %78 = vector.shape_cast %77 : vector<9xf32> to vector<9x1xf32>
    %79 = tpu.reciprocal %78 {approx = true} : vector<9x1xf32> -> vector<9x1xf32>
    %80 = vector.broadcast %79 : vector<9x1xf32> to vector<9x9xf32>
    %81 = arith.mulf %76, %80 : vector<9x9xf32>
    %82 = arith.truncf %81 : vector<9x9xf32> to vector<9x9xbf16>
    %83 = arith.truncf %65 : vector<9x32xf32> to vector<9x32xbf16>
    %cst_44 = arith.constant dense<0.000000e+00> : vector<9x32xf32>
    %84 = tpu.matmul %82, %83, %cst_44 {dimension_numbers = #tpu.dot_dimension_numbers<[1], [0], [0], [1], [0, 0, 1, 1], [], []>} : vector<9x9xbf16>, vector<9x32xbf16>, vector<9x32xf32> -> vector<9x32xf32>
    %c0_45 = arith.constant 0 : index
    %c0_46 = arith.constant 0 : index
    %85 = vector.load %arg34[%c0_45, %c0_46] : memref<9x128xf32, #tpu.memory_space<vmem>>, vector<9x32xf32>
    tpu.vector_store %arg34[%c0_45, %c0_46], %84 {strides = array<i32>} : memref<9x128xf32, #tpu.memory_space<vmem>>, vector<9x32xf32>,
    %86 = vector.extract_strided_slice %60 {offsets = [0, 32], sizes = [9, 32], strides = [1, 1]} : vector<9x128xf32> to vector<9x32xf32>
    %87 = vector.extract_strided_slice %61 {offsets = [0, 32], sizes = [9, 32], strides = [1, 1]} : vector<9x128xf32> to vector<9x32xf32>
    %88 = vector.extract_strided_slice %62 {offsets = [0, 32], sizes = [9, 32], strides = [1, 1]} : vector<9x128xf32> to vector<9x32xf32>
    %89 = tpu.transpose %87, [1, 0] : vector<9x32xf32> -> vector<32x9xf32>
    %90 = arith.truncf %86 : vector<9x32xf32> to vector<9x32xbf16>
    %91 = arith.truncf %89 : vector<32x9xf32> to vector<32x9xbf16>
    %cst_47 = arith.constant dense<0.000000e+00> : vector<9x9xf32>
    %92 = tpu.matmul %90, %91, %cst_47 {dimension_numbers = #tpu.dot_dimension_numbers<[1], [0], [0], [1], [0, 0, 1, 1], [], []>} : vector<9x32xbf16>, vector<32x9xbf16>, vector<9x9xf32> -> vector<9x9xf32>
    %cst_48 = arith.constant 0.176776692 : f32
    %93 = vector.broadcast %cst_48 : f32 to vector<9x9xf32>
    %94 = arith.mulf %92, %93 : vector<9x9xf32>
    %cst_49 = arith.constant dense<0xFF800000> : vector<9xf32>
    %95 = vector.multi_reduction <maximumf>, %94, %cst_49 [1] : vector<9x9xf32> to vector<9xf32>
    %96 = vector.shape_cast %95 : vector<9xf32> to vector<9x1xf32>
    %97 = vector.broadcast %96 : vector<9x1xf32> to vector<9x9xf32>
    %98 = arith.subf %94, %97 : vector<9x9xf32>
    %99 = math.exp %98 : vector<9x9xf32>
    %cst_50 = arith.constant dense<0.000000e+00> : vector<9xf32>
    %100 = vector.multi_reduction <add>, %99, %cst_50 [1] : vector<9x9xf32> to vector<9xf32>
    %101 = vector.shape_cast %100 : vector<9xf32> to vector<9x1xf32>
    %102 = tpu.reciprocal %101 {approx = true} : vector<9x1xf32> -> vector<9x1xf32>
    %103 = vector.broadcast %102 : vector<9x1xf32> to vector<9x9xf32>
    %104 = arith.mulf %99, %103 : vector<9x9xf32>
    %105 = arith.truncf %104 : vector<9x9xf32> to vector<9x9xbf16>
    %106 = arith.truncf %88 : vector<9x32xf32> to vector<9x32xbf16>
    %cst_51 = arith.constant dense<0.000000e+00> : vector<9x32xf32>
    %107 = tpu.matmul %105, %106, %cst_51 {dimension_numbers = #tpu.dot_dimension_numbers<[1], [0], [0], [1], [0, 0, 1, 1], [], []>} : vector<9x9xbf16>, vector<9x32xbf16>, vector<9x32xf32> -> vector<9x32xf32>
    %c0_52 = arith.constant 0 : index
    %c32 = arith.constant 32 : index
    %108 = vector.load %arg34[%c0_52, %c32] : memref<9x128xf32, #tpu.memory_space<vmem>>, vector<9x32xf32>
    tpu.vector_store %arg34[%c0_52, %c32], %107 {strides = array<i32>} : memref<9x128xf32, #tpu.memory_space<vmem>>, vector<9x32xf32>,
    %109 = vector.extract_strided_slice %60 {offsets = [0, 64], sizes = [9, 32], strides = [1, 1]} : vector<9x128xf32> to vector<9x32xf32>
    %110 = vector.extract_strided_slice %61 {offsets = [0, 64], sizes = [9, 32], strides = [1, 1]} : vector<9x128xf32> to vector<9x32xf32>
    %111 = vector.extract_strided_slice %62 {offsets = [0, 64], sizes = [9, 32], strides = [1, 1]} : vector<9x128xf32> to vector<9x32xf32>
    %112 = tpu.transpose %110, [1, 0] : vector<9x32xf32> -> vector<32x9xf32>
    %113 = arith.truncf %109 : vector<9x32xf32> to vector<9x32xbf16>
    %114 = arith.truncf %112 : vector<32x9xf32> to vector<32x9xbf16>
    %cst_53 = arith.constant dense<0.000000e+00> : vector<9x9xf32>
    %115 = tpu.matmul %113, %114, %cst_53 {dimension_numbers = #tpu.dot_dimension_numbers<[1], [0], [0], [1], [0, 0, 1, 1], [], []>} : vector<9x32xbf16>, vector<32x9xbf16>, vector<9x9xf32> -> vector<9x9xf32>
    %cst_54 = arith.constant 0.176776692 : f32
    %116 = vector.broadcast %cst_54 : f32 to vector<9x9xf32>
    %117 = arith.mulf %115, %116 : vector<9x9xf32>
    %cst_55 = arith.constant dense<0xFF800000> : vector<9xf32>
    %118 = vector.multi_reduction <maximumf>, %117, %cst_55 [1] : vector<9x9xf32> to vector<9xf32>
    %119 = vector.shape_cast %118 : vector<9xf32> to vector<9x1xf32>
    %120 = vector.broadcast %119 : vector<9x1xf32> to vector<9x9xf32>
    %121 = arith.subf %117, %120 : vector<9x9xf32>
    %122 = math.exp %121 : vector<9x9xf32>
    %cst_56 = arith.constant dense<0.000000e+00> : vector<9xf32>
    %123 = vector.multi_reduction <add>, %122, %cst_56 [1] : vector<9x9xf32> to vector<9xf32>
    %124 = vector.shape_cast %123 : vector<9xf32> to vector<9x1xf32>
    %125 = tpu.reciprocal %124 {approx = true} : vector<9x1xf32> -> vector<9x1xf32>
    %126 = vector.broadcast %125 : vector<9x1xf32> to vector<9x9xf32>
    %127 = arith.mulf %122, %126 : vector<9x9xf32>
    %128 = arith.truncf %127 : vector<9x9xf32> to vector<9x9xbf16>
    %129 = arith.truncf %111 : vector<9x32xf32> to vector<9x32xbf16>
    %cst_57 = arith.constant dense<0.000000e+00> : vector<9x32xf32>
    %130 = tpu.matmul %128, %129, %cst_57 {dimension_numbers = #tpu.dot_dimension_numbers<[1], [0], [0], [1], [0, 0, 1, 1], [], []>} : vector<9x9xbf16>, vector<9x32xbf16>, vector<9x32xf32> -> vector<9x32xf32>
    %c0_58 = arith.constant 0 : index
    %c64 = arith.constant 64 : index
    %131 = vector.load %arg34[%c0_58, %c64] : memref<9x128xf32, #tpu.memory_space<vmem>>, vector<9x32xf32>
    tpu.vector_store %arg34[%c0_58, %c64], %130 {strides = array<i32>} : memref<9x128xf32, #tpu.memory_space<vmem>>, vector<9x32xf32>,
    %132 = vector.extract_strided_slice %60 {offsets = [0, 96], sizes = [9, 32], strides = [1, 1]} : vector<9x128xf32> to vector<9x32xf32>
    %133 = vector.extract_strided_slice %61 {offsets = [0, 96], sizes = [9, 32], strides = [1, 1]} : vector<9x128xf32> to vector<9x32xf32>
    %134 = vector.extract_strided_slice %62 {offsets = [0, 96], sizes = [9, 32], strides = [1, 1]} : vector<9x128xf32> to vector<9x32xf32>
    %135 = tpu.transpose %133, [1, 0] : vector<9x32xf32> -> vector<32x9xf32>
    %136 = arith.truncf %132 : vector<9x32xf32> to vector<9x32xbf16>
    %137 = arith.truncf %135 : vector<32x9xf32> to vector<32x9xbf16>
    %cst_59 = arith.constant dense<0.000000e+00> : vector<9x9xf32>
    %138 = tpu.matmul %136, %137, %cst_59 {dimension_numbers = #tpu.dot_dimension_numbers<[1], [0], [0], [1], [0, 0, 1, 1], [], []>} : vector<9x32xbf16>, vector<32x9xbf16>, vector<9x9xf32> -> vector<9x9xf32>
    %cst_60 = arith.constant 0.176776692 : f32
    %139 = vector.broadcast %cst_60 : f32 to vector<9x9xf32>
    %140 = arith.mulf %138, %139 : vector<9x9xf32>
    %cst_61 = arith.constant dense<0xFF800000> : vector<9xf32>
    %141 = vector.multi_reduction <maximumf>, %140, %cst_61 [1] : vector<9x9xf32> to vector<9xf32>
    %142 = vector.shape_cast %141 : vector<9xf32> to vector<9x1xf32>
    %143 = vector.broadcast %142 : vector<9x1xf32> to vector<9x9xf32>
    %144 = arith.subf %140, %143 : vector<9x9xf32>
    %145 = math.exp %144 : vector<9x9xf32>
    %cst_62 = arith.constant dense<0.000000e+00> : vector<9xf32>
    %146 = vector.multi_reduction <add>, %145, %cst_62 [1] : vector<9x9xf32> to vector<9xf32>
    %147 = vector.shape_cast %146 : vector<9xf32> to vector<9x1xf32>
    %148 = tpu.reciprocal %147 {approx = true} : vector<9x1xf32> -> vector<9x1xf32>
    %149 = vector.broadcast %148 : vector<9x1xf32> to vector<9x9xf32>
    %150 = arith.mulf %145, %149 : vector<9x9xf32>
    %151 = arith.truncf %150 : vector<9x9xf32> to vector<9x9xbf16>
    %152 = arith.truncf %134 : vector<9x32xf32> to vector<9x32xbf16>
    %cst_63 = arith.constant dense<0.000000e+00> : vector<9x32xf32>
    %153 = tpu.matmul %151, %152, %cst_63 {dimension_numbers = #tpu.dot_dimension_numbers<[1], [0], [0], [1], [0, 0, 1, 1], [], []>} : vector<9x9xbf16>, vector<9x32xbf16>, vector<9x32xf32> -> vector<9x32xf32>
    %c0_64 = arith.constant 0 : index
    %c96 = arith.constant 96 : index
    %154 = vector.load %arg34[%c0_64, %c96] : memref<9x128xf32, #tpu.memory_space<vmem>>, vector<9x32xf32>
    tpu.vector_store %arg34[%c0_64, %c96], %153 {strides = array<i32>} : memref<9x128xf32, #tpu.memory_space<vmem>>, vector<9x32xf32>,
    %c0_65 = arith.constant 0 : index
    %c0_66 = arith.constant 0 : index
    %155 = vector.load %arg34[%c0_65, %c0_66] : memref<9x128xf32, #tpu.memory_space<vmem>>, vector<9x128xf32>
    %c0_67 = arith.constant 0 : index
    %c0_68 = arith.constant 0 : index
    %c0_69 = arith.constant 0 : index
    %156 = vector.load %arg15[%c0_67, %c0_68, %c0_69] : memref<2x128x128xbf16, #tpu.memory_space<vmem>>, vector<1x128x128xbf16>
    %157 = vector.shape_cast %156 : vector<1x128x128xbf16> to vector<128x128xbf16>
    %158 = arith.truncf %155 : vector<9x128xf32> to vector<9x128xbf16>
    %cst_70 = arith.constant dense<0.000000e+00> : vector<9x128xf32>
    %159 = tpu.matmul %158, %157, %cst_70 {dimension_numbers = #tpu.dot_dimension_numbers<[1], [0], [0], [1], [0, 0, 1, 1], [], []>} : vector<9x128xbf16>, vector<128x128xbf16>, vector<9x128xf32> -> vector<9x128xf32>
    %160 = arith.addf %25, %159 : vector<9x128xf32>
    %c0_71 = arith.constant 0 : index
    %c0_72 = arith.constant 0 : index
    %c0_73 = arith.constant 0 : index
    %161 = vector.load %arg16[%c0_71, %c0_72, %c0_73] : memref<2x1x128xf32, #tpu.memory_space<vmem>>, vector<1x1x128xf32>
    %162 = vector.shape_cast %161 : vector<1x1x128xf32> to vector<1x128xf32>
    %163 = vector.broadcast %162 : vector<1x128xf32> to vector<9x128xf32>
    %164 = arith.addf %160, %163 : vector<9x128xf32>
    %c0_74 = arith.constant 0 : index
    %c0_75 = arith.constant 0 : index
    %c0_76 = arith.constant 0 : index
    %165 = vector.load %arg17[%c0_74, %c0_75, %c0_76] : memref<2x1x128xf32, #tpu.memory_space<vmem>>, vector<1x1x128xf32>
    %166 = vector.shape_cast %165 : vector<1x1x128xf32> to vector<1x128xf32>
    %c0_77 = arith.constant 0 : index
    %c0_78 = arith.constant 0 : index
    %c0_79 = arith.constant 0 : index
    %167 = vector.load %arg18[%c0_77, %c0_78, %c0_79] : memref<2x1x128xf32, #tpu.memory_space<vmem>>, vector<1x1x128xf32>
    %168 = vector.shape_cast %167 : vector<1x1x128xf32> to vector<1x128xf32>
    %cst_80 = arith.constant dense<0.000000e+00> : vector<9xf32>
    %169 = vector.multi_reduction <add>, %164, %cst_80 [1] : vector<9x128xf32> to vector<9xf32>
    %170 = vector.shape_cast %169 : vector<9xf32> to vector<9x1xf32>
    %cst_81 = arith.constant 1.280000e+02 : f32
    %171 = vector.broadcast %cst_81 : f32 to vector<9x1xf32>
    %172 = arith.divf %170, %171 : vector<9x1xf32>
    %173 = vector.broadcast %172 : vector<9x1xf32> to vector<9x128xf32>
    %174 = arith.subf %164, %173 : vector<9x128xf32>
    %175 = arith.mulf %174, %174 : vector<9x128xf32>
    %cst_82 = arith.constant dense<0.000000e+00> : vector<9xf32>
    %176 = vector.multi_reduction <add>, %175, %cst_82 [1] : vector<9x128xf32> to vector<9xf32>
    %177 = vector.shape_cast %176 : vector<9xf32> to vector<9x1xf32>
    %cst_83 = arith.constant 1.280000e+02 : f32
    %178 = vector.broadcast %cst_83 : f32 to vector<9x1xf32>
    %179 = arith.divf %177, %178 : vector<9x1xf32>
    %180 = vector.broadcast %172 : vector<9x1xf32> to vector<9x128xf32>
    %181 = arith.subf %164, %180 : vector<9x128xf32>
    %cst_84 = arith.constant 9.99999997E-7 : f32
    %182 = vector.broadcast %cst_84 : f32 to vector<9x1xf32>
    %183 = arith.addf %179, %182 : vector<9x1xf32>
    %184 = math.rsqrt %183 : vector<9x1xf32>
    %185 = vector.broadcast %184 : vector<9x1xf32> to vector<9x128xf32>
    %186 = arith.mulf %181, %185 : vector<9x128xf32>
    %187 = vector.broadcast %166 : vector<1x128xf32> to vector<9x128xf32>
    %188 = arith.mulf %186, %187 : vector<9x128xf32>
    %189 = vector.broadcast %168 : vector<1x128xf32> to vector<9x128xf32>
    %190 = arith.addf %188, %189 : vector<9x128xf32>
    %c0_85 = arith.constant 0 : index
    %c0_86 = arith.constant 0 : index
    %c0_87 = arith.constant 0 : index
    %191 = vector.load %arg19[%c0_85, %c0_86, %c0_87] : memref<2x128x256xbf16, #tpu.memory_space<vmem>>, vector<1x128x256xbf16>
    %192 = vector.shape_cast %191 : vector<1x128x256xbf16> to vector<128x256xbf16>
    %193 = arith.truncf %190 : vector<9x128xf32> to vector<9x128xbf16>
    %cst_88 = arith.constant dense<0.000000e+00> : vector<9x256xf32>
    %194 = tpu.matmul %193, %192, %cst_88 {dimension_numbers = #tpu.dot_dimension_numbers<[1], [0], [0], [1], [0, 0, 1, 1], [], []>} : vector<9x128xbf16>, vector<128x256xbf16>, vector<9x256xf32> -> vector<9x256xf32>
    %c0_89 = arith.constant 0 : index
    %c0_90 = arith.constant 0 : index
    %c0_91 = arith.constant 0 : index
    %195 = vector.load %arg20[%c0_89, %c0_90, %c0_91] : memref<2x1x256xf32, #tpu.memory_space<vmem>>, vector<1x1x256xf32>
    %196 = vector.shape_cast %195 : vector<1x1x256xf32> to vector<1x256xf32>
    %197 = vector.broadcast %196 : vector<1x256xf32> to vector<9x256xf32>
    %198 = arith.addf %194, %197 : vector<9x256xf32>
    %199 = arith.mulf %198, %198 : vector<9x256xf32>
    %200 = arith.mulf %198, %199 : vector<9x256xf32>
    %cst_92 = arith.constant 4.471500e-02 : f32
    %201 = vector.broadcast %cst_92 : f32 to vector<9x256xf32>
    %202 = arith.mulf %201, %200 : vector<9x256xf32>
    %203 = arith.addf %198, %202 : vector<9x256xf32>
    %cst_93 = arith.constant 0.797884583 : f32
    %204 = vector.broadcast %cst_93 : f32 to vector<9x256xf32>
    %205 = arith.mulf %204, %203 : vector<9x256xf32>
    %206 = math.tanh %205 : vector<9x256xf32>
    %cst_94 = arith.constant 1.000000e+00 : f32
    %207 = vector.broadcast %cst_94 : f32 to vector<9x256xf32>
    %208 = arith.addf %207, %206 : vector<9x256xf32>
    %cst_95 = arith.constant 5.000000e-01 : f32
    %209 = vector.broadcast %cst_95 : f32 to vector<9x256xf32>
    %210 = arith.mulf %209, %208 : vector<9x256xf32>
    %211 = arith.mulf %198, %210 : vector<9x256xf32>
    %c0_96 = arith.constant 0 : index
    %c0_97 = arith.constant 0 : index
    %c0_98 = arith.constant 0 : index
    %212 = vector.load %arg21[%c0_96, %c0_97, %c0_98] : memref<2x256x128xbf16, #tpu.memory_space<vmem>>, vector<1x256x128xbf16>
    %213 = vector.shape_cast %212 : vector<1x256x128xbf16> to vector<256x128xbf16>
    %214 = arith.truncf %211 : vector<9x256xf32> to vector<9x256xbf16>
    %cst_99 = arith.constant dense<0.000000e+00> : vector<9x128xf32>
    %215 = tpu.matmul %214, %213, %cst_99 {dimension_numbers = #tpu.dot_dimension_numbers<[1], [0], [0], [1], [0, 0, 1, 1], [], []>} : vector<9x256xbf16>, vector<256x128xbf16>, vector<9x128xf32> -> vector<9x128xf32>
    %216 = arith.addf %164, %215 : vector<9x128xf32>
    %c0_100 = arith.constant 0 : index
    %c0_101 = arith.constant 0 : index
    %c0_102 = arith.constant 0 : index
    %217 = vector.load %arg22[%c0_100, %c0_101, %c0_102] : memref<2x1x128xf32, #tpu.memory_space<vmem>>, vector<1x1x128xf32>
    %218 = vector.shape_cast %217 : vector<1x1x128xf32> to vector<1x128xf32>
    %219 = vector.broadcast %218 : vector<1x128xf32> to vector<9x128xf32>
    %220 = arith.addf %216, %219 : vector<9x128xf32>
    %c1 = arith.constant 1 : index
    %c0_103 = arith.constant 0 : index
    %c0_104 = arith.constant 0 : index
    %221 = vector.load %arg11[%c1, %c0_103, %c0_104] : memref<2x1x128xf32, #tpu.memory_space<vmem>>, vector<1x1x128xf32>
    %222 = vector.shape_cast %221 : vector<1x1x128xf32> to vector<1x128xf32>
    %c1_105 = arith.constant 1 : index
    %c0_106 = arith.constant 0 : index
    %c0_107 = arith.constant 0 : index
    %223 = vector.load %arg12[%c1_105, %c0_106, %c0_107] : memref<2x1x128xf32, #tpu.memory_space<vmem>>, vector<1x1x128xf32>
    %224 = vector.shape_cast %223 : vector<1x1x128xf32> to vector<1x128xf32>
    %cst_108 = arith.constant dense<0.000000e+00> : vector<9xf32>
    %225 = vector.multi_reduction <add>, %220, %cst_108 [1] : vector<9x128xf32> to vector<9xf32>
    %226 = vector.shape_cast %225 : vector<9xf32> to vector<9x1xf32>
    %cst_109 = arith.constant 1.280000e+02 : f32
    %227 = vector.broadcast %cst_109 : f32 to vector<9x1xf32>
    %228 = arith.divf %226, %227 : vector<9x1xf32>
    %229 = vector.broadcast %228 : vector<9x1xf32> to vector<9x128xf32>
    %230 = arith.subf %220, %229 : vector<9x128xf32>
    %231 = arith.mulf %230, %230 : vector<9x128xf32>
    %cst_110 = arith.constant dense<0.000000e+00> : vector<9xf32>
    %232 = vector.multi_reduction <add>, %231, %cst_110 [1] : vector<9x128xf32> to vector<9xf32>
    %233 = vector.shape_cast %232 : vector<9xf32> to vector<9x1xf32>
    %cst_111 = arith.constant 1.280000e+02 : f32
    %234 = vector.broadcast %cst_111 : f32 to vector<9x1xf32>
    %235 = arith.divf %233, %234 : vector<9x1xf32>
    %236 = vector.broadcast %228 : vector<9x1xf32> to vector<9x128xf32>
    %237 = arith.subf %220, %236 : vector<9x128xf32>
    %cst_112 = arith.constant 9.99999997E-7 : f32
    %238 = vector.broadcast %cst_112 : f32 to vector<9x1xf32>
    %239 = arith.addf %235, %238 : vector<9x1xf32>
    %240 = math.rsqrt %239 : vector<9x1xf32>
    %241 = vector.broadcast %240 : vector<9x1xf32> to vector<9x128xf32>
    %242 = arith.mulf %237, %241 : vector<9x128xf32>
    %243 = vector.broadcast %222 : vector<1x128xf32> to vector<9x128xf32>
    %244 = arith.mulf %242, %243 : vector<9x128xf32>
    %245 = vector.broadcast %224 : vector<1x128xf32> to vector<9x128xf32>
    %246 = arith.addf %244, %245 : vector<9x128xf32>
    %c1_113 = arith.constant 1 : index
    %c0_114 = arith.constant 0 : index
    %c0_115 = arith.constant 0 : index
    %247 = vector.load %arg13[%c1_113, %c0_114, %c0_115] : memref<2x128x384xbf16, #tpu.memory_space<vmem>>, vector<1x128x384xbf16>
    %248 = vector.shape_cast %247 : vector<1x128x384xbf16> to vector<128x384xbf16>
    %249 = arith.truncf %246 : vector<9x128xf32> to vector<9x128xbf16>
    %cst_116 = arith.constant dense<0.000000e+00> : vector<9x384xf32>
    %250 = tpu.matmul %249, %248, %cst_116 {dimension_numbers = #tpu.dot_dimension_numbers<[1], [0], [0], [1], [0, 0, 1, 1], [], []>} : vector<9x128xbf16>, vector<128x384xbf16>, vector<9x384xf32> -> vector<9x384xf32>
    %c1_117 = arith.constant 1 : index
    %c0_118 = arith.constant 0 : index
    %c0_119 = arith.constant 0 : index
    %251 = vector.load %arg14[%c1_117, %c0_118, %c0_119] : memref<2x1x384xf32, #tpu.memory_space<vmem>>, vector<1x1x384xf32>
    %252 = vector.shape_cast %251 : vector<1x1x384xf32> to vector<1x384xf32>
    %253 = vector.broadcast %252 : vector<1x384xf32> to vector<9x384xf32>
    %254 = arith.addf %250, %253 : vector<9x384xf32>
    %255 = vector.extract_strided_slice %254 {offsets = [0, 0], sizes = [9, 128], strides = [1, 1]} : vector<9x384xf32> to vector<9x128xf32>
    %256 = vector.extract_strided_slice %254 {offsets = [0, 128], sizes = [9, 128], strides = [1, 1]} : vector<9x384xf32> to vector<9x128xf32>
    %257 = vector.extract_strided_slice %254 {offsets = [0, 256], sizes = [9, 128], strides = [1, 1]} : vector<9x384xf32> to vector<9x128xf32>
    %258 = vector.extract_strided_slice %255 {offsets = [0, 0], sizes = [9, 32], strides = [1, 1]} : vector<9x128xf32> to vector<9x32xf32>
    %259 = vector.extract_strided_slice %256 {offsets = [0, 0], sizes = [9, 32], strides = [1, 1]} : vector<9x128xf32> to vector<9x32xf32>
    %260 = vector.extract_strided_slice %257 {offsets = [0, 0], sizes = [9, 32], strides = [1, 1]} : vector<9x128xf32> to vector<9x32xf32>
    %261 = tpu.transpose %259, [1, 0] : vector<9x32xf32> -> vector<32x9xf32>
    %262 = arith.truncf %258 : vector<9x32xf32> to vector<9x32xbf16>
    %263 = arith.truncf %261 : vector<32x9xf32> to vector<32x9xbf16>
    %cst_120 = arith.constant dense<0.000000e+00> : vector<9x9xf32>
    %264 = tpu.matmul %262, %263, %cst_120 {dimension_numbers = #tpu.dot_dimension_numbers<[1], [0], [0], [1], [0, 0, 1, 1], [], []>} : vector<9x32xbf16>, vector<32x9xbf16>, vector<9x9xf32> -> vector<9x9xf32>
    %cst_121 = arith.constant 0.176776692 : f32
    %265 = vector.broadcast %cst_121 : f32 to vector<9x9xf32>
    %266 = arith.mulf %264, %265 : vector<9x9xf32>
    %cst_122 = arith.constant dense<0xFF800000> : vector<9xf32>
    %267 = vector.multi_reduction <maximumf>, %266, %cst_122 [1] : vector<9x9xf32> to vector<9xf32>
    %268 = vector.shape_cast %267 : vector<9xf32> to vector<9x1xf32>
    %269 = vector.broadcast %268 : vector<9x1xf32> to vector<9x9xf32>
    %270 = arith.subf %266, %269 : vector<9x9xf32>
    %271 = math.exp %270 : vector<9x9xf32>
    %cst_123 = arith.constant dense<0.000000e+00> : vector<9xf32>
    %272 = vector.multi_reduction <add>, %271, %cst_123 [1] : vector<9x9xf32> to vector<9xf32>
    %273 = vector.shape_cast %272 : vector<9xf32> to vector<9x1xf32>
    %274 = tpu.reciprocal %273 {approx = true} : vector<9x1xf32> -> vector<9x1xf32>
    %275 = vector.broadcast %274 : vector<9x1xf32> to vector<9x9xf32>
    %276 = arith.mulf %271, %275 : vector<9x9xf32>
    %277 = arith.truncf %276 : vector<9x9xf32> to vector<9x9xbf16>
    %278 = arith.truncf %260 : vector<9x32xf32> to vector<9x32xbf16>
    %cst_124 = arith.constant dense<0.000000e+00> : vector<9x32xf32>
    %279 = tpu.matmul %277, %278, %cst_124 {dimension_numbers = #tpu.dot_dimension_numbers<[1], [0], [0], [1], [0, 0, 1, 1], [], []>} : vector<9x9xbf16>, vector<9x32xbf16>, vector<9x32xf32> -> vector<9x32xf32>
    %c0_125 = arith.constant 0 : index
    %c0_126 = arith.constant 0 : index
    %280 = vector.load %arg34[%c0_125, %c0_126] : memref<9x128xf32, #tpu.memory_space<vmem>>, vector<9x32xf32>
    tpu.vector_store %arg34[%c0_125, %c0_126], %279 {strides = array<i32>} : memref<9x128xf32, #tpu.memory_space<vmem>>, vector<9x32xf32>,
    %281 = vector.extract_strided_slice %255 {offsets = [0, 32], sizes = [9, 32], strides = [1, 1]} : vector<9x128xf32> to vector<9x32xf32>
    %282 = vector.extract_strided_slice %256 {offsets = [0, 32], sizes = [9, 32], strides = [1, 1]} : vector<9x128xf32> to vector<9x32xf32>
    %283 = vector.extract_strided_slice %257 {offsets = [0, 32], sizes = [9, 32], strides = [1, 1]} : vector<9x128xf32> to vector<9x32xf32>
    %284 = tpu.transpose %282, [1, 0] : vector<9x32xf32> -> vector<32x9xf32>
    %285 = arith.truncf %281 : vector<9x32xf32> to vector<9x32xbf16>
    %286 = arith.truncf %284 : vector<32x9xf32> to vector<32x9xbf16>
    %cst_127 = arith.constant dense<0.000000e+00> : vector<9x9xf32>
    %287 = tpu.matmul %285, %286, %cst_127 {dimension_numbers = #tpu.dot_dimension_numbers<[1], [0], [0], [1], [0, 0, 1, 1], [], []>} : vector<9x32xbf16>, vector<32x9xbf16>, vector<9x9xf32> -> vector<9x9xf32>
    %cst_128 = arith.constant 0.176776692 : f32
    %288 = vector.broadcast %cst_128 : f32 to vector<9x9xf32>
    %289 = arith.mulf %287, %288 : vector<9x9xf32>
    %cst_129 = arith.constant dense<0xFF800000> : vector<9xf32>
    %290 = vector.multi_reduction <maximumf>, %289, %cst_129 [1] : vector<9x9xf32> to vector<9xf32>
    %291 = vector.shape_cast %290 : vector<9xf32> to vector<9x1xf32>
    %292 = vector.broadcast %291 : vector<9x1xf32> to vector<9x9xf32>
    %293 = arith.subf %289, %292 : vector<9x9xf32>
    %294 = math.exp %293 : vector<9x9xf32>
    %cst_130 = arith.constant dense<0.000000e+00> : vector<9xf32>
    %295 = vector.multi_reduction <add>, %294, %cst_130 [1] : vector<9x9xf32> to vector<9xf32>
    %296 = vector.shape_cast %295 : vector<9xf32> to vector<9x1xf32>
    %297 = tpu.reciprocal %296 {approx = true} : vector<9x1xf32> -> vector<9x1xf32>
    %298 = vector.broadcast %297 : vector<9x1xf32> to vector<9x9xf32>
    %299 = arith.mulf %294, %298 : vector<9x9xf32>
    %300 = arith.truncf %299 : vector<9x9xf32> to vector<9x9xbf16>
    %301 = arith.truncf %283 : vector<9x32xf32> to vector<9x32xbf16>
    %cst_131 = arith.constant dense<0.000000e+00> : vector<9x32xf32>
    %302 = tpu.matmul %300, %301, %cst_131 {dimension_numbers = #tpu.dot_dimension_numbers<[1], [0], [0], [1], [0, 0, 1, 1], [], []>} : vector<9x9xbf16>, vector<9x32xbf16>, vector<9x32xf32> -> vector<9x32xf32>
    %c0_132 = arith.constant 0 : index
    %c32_133 = arith.constant 32 : index
    %303 = vector.load %arg34[%c0_132, %c32_133] : memref<9x128xf32, #tpu.memory_space<vmem>>, vector<9x32xf32>
    tpu.vector_store %arg34[%c0_132, %c32_133], %302 {strides = array<i32>} : memref<9x128xf32, #tpu.memory_space<vmem>>, vector<9x32xf32>,
    %304 = vector.extract_strided_slice %255 {offsets = [0, 64], sizes = [9, 32], strides = [1, 1]} : vector<9x128xf32> to vector<9x32xf32>
    %305 = vector.extract_strided_slice %256 {offsets = [0, 64], sizes = [9, 32], strides = [1, 1]} : vector<9x128xf32> to vector<9x32xf32>
    %306 = vector.extract_strided_slice %257 {offsets = [0, 64], sizes = [9, 32], strides = [1, 1]} : vector<9x128xf32> to vector<9x32xf32>
    %307 = tpu.transpose %305, [1, 0] : vector<9x32xf32> -> vector<32x9xf32>
    %308 = arith.truncf %304 : vector<9x32xf32> to vector<9x32xbf16>
    %309 = arith.truncf %307 : vector<32x9xf32> to vector<32x9xbf16>
    %cst_134 = arith.constant dense<0.000000e+00> : vector<9x9xf32>
    %310 = tpu.matmul %308, %309, %cst_134 {dimension_numbers = #tpu.dot_dimension_numbers<[1], [0], [0], [1], [0, 0, 1, 1], [], []>} : vector<9x32xbf16>, vector<32x9xbf16>, vector<9x9xf32> -> vector<9x9xf32>
    %cst_135 = arith.constant 0.176776692 : f32
    %311 = vector.broadcast %cst_135 : f32 to vector<9x9xf32>
    %312 = arith.mulf %310, %311 : vector<9x9xf32>
    %cst_136 = arith.constant dense<0xFF800000> : vector<9xf32>
    %313 = vector.multi_reduction <maximumf>, %312, %cst_136 [1] : vector<9x9xf32> to vector<9xf32>
    %314 = vector.shape_cast %313 : vector<9xf32> to vector<9x1xf32>
    %315 = vector.broadcast %314 : vector<9x1xf32> to vector<9x9xf32>
    %316 = arith.subf %312, %315 : vector<9x9xf32>
    %317 = math.exp %316 : vector<9x9xf32>
    %cst_137 = arith.constant dense<0.000000e+00> : vector<9xf32>
    %318 = vector.multi_reduction <add>, %317, %cst_137 [1] : vector<9x9xf32> to vector<9xf32>
    %319 = vector.shape_cast %318 : vector<9xf32> to vector<9x1xf32>
    %320 = tpu.reciprocal %319 {approx = true} : vector<9x1xf32> -> vector<9x1xf32>
    %321 = vector.broadcast %320 : vector<9x1xf32> to vector<9x9xf32>
    %322 = arith.mulf %317, %321 : vector<9x9xf32>
    %323 = arith.truncf %322 : vector<9x9xf32> to vector<9x9xbf16>
    %324 = arith.truncf %306 : vector<9x32xf32> to vector<9x32xbf16>
    %cst_138 = arith.constant dense<0.000000e+00> : vector<9x32xf32>
    %325 = tpu.matmul %323, %324, %cst_138 {dimension_numbers = #tpu.dot_dimension_numbers<[1], [0], [0], [1], [0, 0, 1, 1], [], []>} : vector<9x9xbf16>, vector<9x32xbf16>, vector<9x32xf32> -> vector<9x32xf32>
    %c0_139 = arith.constant 0 : index
    %c64_140 = arith.constant 64 : index
    %326 = vector.load %arg34[%c0_139, %c64_140] : memref<9x128xf32, #tpu.memory_space<vmem>>, vector<9x32xf32>
    tpu.vector_store %arg34[%c0_139, %c64_140], %325 {strides = array<i32>} : memref<9x128xf32, #tpu.memory_space<vmem>>, vector<9x32xf32>,
    %327 = vector.extract_strided_slice %255 {offsets = [0, 96], sizes = [9, 32], strides = [1, 1]} : vector<9x128xf32> to vector<9x32xf32>
    %328 = vector.extract_strided_slice %256 {offsets = [0, 96], sizes = [9, 32], strides = [1, 1]} : vector<9x128xf32> to vector<9x32xf32>
    %329 = vector.extract_strided_slice %257 {offsets = [0, 96], sizes = [9, 32], strides = [1, 1]} : vector<9x128xf32> to vector<9x32xf32>
    %330 = tpu.transpose %328, [1, 0] : vector<9x32xf32> -> vector<32x9xf32>
    %331 = arith.truncf %327 : vector<9x32xf32> to vector<9x32xbf16>
    %332 = arith.truncf %330 : vector<32x9xf32> to vector<32x9xbf16>
    %cst_141 = arith.constant dense<0.000000e+00> : vector<9x9xf32>
    %333 = tpu.matmul %331, %332, %cst_141 {dimension_numbers = #tpu.dot_dimension_numbers<[1], [0], [0], [1], [0, 0, 1, 1], [], []>} : vector<9x32xbf16>, vector<32x9xbf16>, vector<9x9xf32> -> vector<9x9xf32>
    %cst_142 = arith.constant 0.176776692 : f32
    %334 = vector.broadcast %cst_142 : f32 to vector<9x9xf32>
    %335 = arith.mulf %333, %334 : vector<9x9xf32>
    %cst_143 = arith.constant dense<0xFF800000> : vector<9xf32>
    %336 = vector.multi_reduction <maximumf>, %335, %cst_143 [1] : vector<9x9xf32> to vector<9xf32>
    %337 = vector.shape_cast %336 : vector<9xf32> to vector<9x1xf32>
    %338 = vector.broadcast %337 : vector<9x1xf32> to vector<9x9xf32>
    %339 = arith.subf %335, %338 : vector<9x9xf32>
    %340 = math.exp %339 : vector<9x9xf32>
    %cst_144 = arith.constant dense<0.000000e+00> : vector<9xf32>
    %341 = vector.multi_reduction <add>, %340, %cst_144 [1] : vector<9x9xf32> to vector<9xf32>
    %342 = vector.shape_cast %341 : vector<9xf32> to vector<9x1xf32>
    %343 = tpu.reciprocal %342 {approx = true} : vector<9x1xf32> -> vector<9x1xf32>
    %344 = vector.broadcast %343 : vector<9x1xf32> to vector<9x9xf32>
    %345 = arith.mulf %340, %344 : vector<9x9xf32>
    %346 = arith.truncf %345 : vector<9x9xf32> to vector<9x9xbf16>
    %347 = arith.truncf %329 : vector<9x32xf32> to vector<9x32xbf16>
    %cst_145 = arith.constant dense<0.000000e+00> : vector<9x32xf32>
    %348 = tpu.matmul %346, %347, %cst_145 {dimension_numbers = #tpu.dot_dimension_numbers<[1], [0], [0], [1], [0, 0, 1, 1], [], []>} : vector<9x9xbf16>, vector<9x32xbf16>, vector<9x32xf32> -> vector<9x32xf32>
    %c0_146 = arith.constant 0 : index
    %c96_147 = arith.constant 96 : index
    %349 = vector.load %arg34[%c0_146, %c96_147] : memref<9x128xf32, #tpu.memory_space<vmem>>, vector<9x32xf32>
    tpu.vector_store %arg34[%c0_146, %c96_147], %348 {strides = array<i32>} : memref<9x128xf32, #tpu.memory_space<vmem>>, vector<9x32xf32>,
    %c0_148 = arith.constant 0 : index
    %c0_149 = arith.constant 0 : index
    %350 = vector.load %arg34[%c0_148, %c0_149] : memref<9x128xf32, #tpu.memory_space<vmem>>, vector<9x128xf32>
    %c1_150 = arith.constant 1 : index
    %c0_151 = arith.constant 0 : index
    %c0_152 = arith.constant 0 : index
    %351 = vector.load %arg15[%c1_150, %c0_151, %c0_152] : memref<2x128x128xbf16, #tpu.memory_space<vmem>>, vector<1x128x128xbf16>
    %352 = vector.shape_cast %351 : vector<1x128x128xbf16> to vector<128x128xbf16>
    %353 = arith.truncf %350 : vector<9x128xf32> to vector<9x128xbf16>
    %cst_153 = arith.constant dense<0.000000e+00> : vector<9x128xf32>
    %354 = tpu.matmul %353, %352, %cst_153 {dimension_numbers = #tpu.dot_dimension_numbers<[1], [0], [0], [1], [0, 0, 1, 1], [], []>} : vector<9x128xbf16>, vector<128x128xbf16>, vector<9x128xf32> -> vector<9x128xf32>
    %355 = arith.addf %220, %354 : vector<9x128xf32>
    %c1_154 = arith.constant 1 : index
    %c0_155 = arith.constant 0 : index
    %c0_156 = arith.constant 0 : index
    %356 = vector.load %arg16[%c1_154, %c0_155, %c0_156] : memref<2x1x128xf32, #tpu.memory_space<vmem>>, vector<1x1x128xf32>
    %357 = vector.shape_cast %356 : vector<1x1x128xf32> to vector<1x128xf32>
    %358 = vector.broadcast %357 : vector<1x128xf32> to vector<9x128xf32>
    %359 = arith.addf %355, %358 : vector<9x128xf32>
    %c1_157 = arith.constant 1 : index
    %c0_158 = arith.constant 0 : index
    %c0_159 = arith.constant 0 : index
    %360 = vector.load %arg17[%c1_157, %c0_158, %c0_159] : memref<2x1x128xf32, #tpu.memory_space<vmem>>, vector<1x1x128xf32>
    %361 = vector.shape_cast %360 : vector<1x1x128xf32> to vector<1x128xf32>
    %c1_160 = arith.constant 1 : index
    %c0_161 = arith.constant 0 : index
    %c0_162 = arith.constant 0 : index
    %362 = vector.load %arg18[%c1_160, %c0_161, %c0_162] : memref<2x1x128xf32, #tpu.memory_space<vmem>>, vector<1x1x128xf32>
    %363 = vector.shape_cast %362 : vector<1x1x128xf32> to vector<1x128xf32>
    %cst_163 = arith.constant dense<0.000000e+00> : vector<9xf32>
    %364 = vector.multi_reduction <add>, %359, %cst_163 [1] : vector<9x128xf32> to vector<9xf32>
    %365 = vector.shape_cast %364 : vector<9xf32> to vector<9x1xf32>
    %cst_164 = arith.constant 1.280000e+02 : f32
    %366 = vector.broadcast %cst_164 : f32 to vector<9x1xf32>
    %367 = arith.divf %365, %366 : vector<9x1xf32>
    %368 = vector.broadcast %367 : vector<9x1xf32> to vector<9x128xf32>
    %369 = arith.subf %359, %368 : vector<9x128xf32>
    %370 = arith.mulf %369, %369 : vector<9x128xf32>
    %cst_165 = arith.constant dense<0.000000e+00> : vector<9xf32>
    %371 = vector.multi_reduction <add>, %370, %cst_165 [1] : vector<9x128xf32> to vector<9xf32>
    %372 = vector.shape_cast %371 : vector<9xf32> to vector<9x1xf32>
    %cst_166 = arith.constant 1.280000e+02 : f32
    %373 = vector.broadcast %cst_166 : f32 to vector<9x1xf32>
    %374 = arith.divf %372, %373 : vector<9x1xf32>
    %375 = vector.broadcast %367 : vector<9x1xf32> to vector<9x128xf32>
    %376 = arith.subf %359, %375 : vector<9x128xf32>
    %cst_167 = arith.constant 9.99999997E-7 : f32
    %377 = vector.broadcast %cst_167 : f32 to vector<9x1xf32>
    %378 = arith.addf %374, %377 : vector<9x1xf32>
    %379 = math.rsqrt %378 : vector<9x1xf32>
    %380 = vector.broadcast %379 : vector<9x1xf32> to vector<9x128xf32>
    %381 = arith.mulf %376, %380 : vector<9x128xf32>
    %382 = vector.broadcast %361 : vector<1x128xf32> to vector<9x128xf32>
    %383 = arith.mulf %381, %382 : vector<9x128xf32>
    %384 = vector.broadcast %363 : vector<1x128xf32> to vector<9x128xf32>
    %385 = arith.addf %383, %384 : vector<9x128xf32>
    %c1_168 = arith.constant 1 : index
    %c0_169 = arith.constant 0 : index
    %c0_170 = arith.constant 0 : index
    %386 = vector.load %arg19[%c1_168, %c0_169, %c0_170] : memref<2x128x256xbf16, #tpu.memory_space<vmem>>, vector<1x128x256xbf16>
    %387 = vector.shape_cast %386 : vector<1x128x256xbf16> to vector<128x256xbf16>
    %388 = arith.truncf %385 : vector<9x128xf32> to vector<9x128xbf16>
    %cst_171 = arith.constant dense<0.000000e+00> : vector<9x256xf32>
    %389 = tpu.matmul %388, %387, %cst_171 {dimension_numbers = #tpu.dot_dimension_numbers<[1], [0], [0], [1], [0, 0, 1, 1], [], []>} : vector<9x128xbf16>, vector<128x256xbf16>, vector<9x256xf32> -> vector<9x256xf32>
    %c1_172 = arith.constant 1 : index
    %c0_173 = arith.constant 0 : index
    %c0_174 = arith.constant 0 : index
    %390 = vector.load %arg20[%c1_172, %c0_173, %c0_174] : memref<2x1x256xf32, #tpu.memory_space<vmem>>, vector<1x1x256xf32>
    %391 = vector.shape_cast %390 : vector<1x1x256xf32> to vector<1x256xf32>
    %392 = vector.broadcast %391 : vector<1x256xf32> to vector<9x256xf32>
    %393 = arith.addf %389, %392 : vector<9x256xf32>
    %394 = arith.mulf %393, %393 : vector<9x256xf32>
    %395 = arith.mulf %393, %394 : vector<9x256xf32>
    %cst_175 = arith.constant 4.471500e-02 : f32
    %396 = vector.broadcast %cst_175 : f32 to vector<9x256xf32>
    %397 = arith.mulf %396, %395 : vector<9x256xf32>
    %398 = arith.addf %393, %397 : vector<9x256xf32>
    %cst_176 = arith.constant 0.797884583 : f32
    %399 = vector.broadcast %cst_176 : f32 to vector<9x256xf32>
    %400 = arith.mulf %399, %398 : vector<9x256xf32>
    %401 = math.tanh %400 : vector<9x256xf32>
    %cst_177 = arith.constant 1.000000e+00 : f32
    %402 = vector.broadcast %cst_177 : f32 to vector<9x256xf32>
    %403 = arith.addf %402, %401 : vector<9x256xf32>
    %cst_178 = arith.constant 5.000000e-01 : f32
    %404 = vector.broadcast %cst_178 : f32 to vector<9x256xf32>
    %405 = arith.mulf %404, %403 : vector<9x256xf32>
    %406 = arith.mulf %393, %405 : vector<9x256xf32>
    %c1_179 = arith.constant 1 : index
    %c0_180 = arith.constant 0 : index
    %c0_181 = arith.constant 0 : index
    %407 = vector.load %arg21[%c1_179, %c0_180, %c0_181] : memref<2x256x128xbf16, #tpu.memory_space<vmem>>, vector<1x256x128xbf16>
    %408 = vector.shape_cast %407 : vector<1x256x128xbf16> to vector<256x128xbf16>
    %409 = arith.truncf %406 : vector<9x256xf32> to vector<9x256xbf16>
    %cst_182 = arith.constant dense<0.000000e+00> : vector<9x128xf32>
    %410 = tpu.matmul %409, %408, %cst_182 {dimension_numbers = #tpu.dot_dimension_numbers<[1], [0], [0], [1], [0, 0, 1, 1], [], []>} : vector<9x256xbf16>, vector<256x128xbf16>, vector<9x128xf32> -> vector<9x128xf32>
    %411 = arith.addf %359, %410 : vector<9x128xf32>
    %c1_183 = arith.constant 1 : index
    %c0_184 = arith.constant 0 : index
    %c0_185 = arith.constant 0 : index
    %412 = vector.load %arg22[%c1_183, %c0_184, %c0_185] : memref<2x1x128xf32, #tpu.memory_space<vmem>>, vector<1x1x128xf32>
    %413 = vector.shape_cast %412 : vector<1x1x128xf32> to vector<1x128xf32>
    %414 = vector.broadcast %413 : vector<1x128xf32> to vector<9x128xf32>
    %415 = arith.addf %411, %414 : vector<9x128xf32>
    %c0_186 = arith.constant 0 : index
    %c0_187 = arith.constant 0 : index
    %416 = vector.load %arg23[%c0_186, %c0_187] : memref<1x128xf32, #tpu.memory_space<vmem>>, vector<1x128xf32>
    %c0_188 = arith.constant 0 : index
    %c0_189 = arith.constant 0 : index
    %417 = vector.load %arg24[%c0_188, %c0_189] : memref<1x128xf32, #tpu.memory_space<vmem>>, vector<1x128xf32>
    %cst_190 = arith.constant dense<0.000000e+00> : vector<9xf32>
    %418 = vector.multi_reduction <add>, %415, %cst_190 [1] : vector<9x128xf32> to vector<9xf32>
    %419 = vector.shape_cast %418 : vector<9xf32> to vector<9x1xf32>
    %cst_191 = arith.constant 1.280000e+02 : f32
    %420 = vector.broadcast %cst_191 : f32 to vector<9x1xf32>
    %421 = arith.divf %419, %420 : vector<9x1xf32>
    %422 = vector.broadcast %421 : vector<9x1xf32> to vector<9x128xf32>
    %423 = arith.subf %415, %422 : vector<9x128xf32>
    %424 = arith.mulf %423, %423 : vector<9x128xf32>
    %cst_192 = arith.constant dense<0.000000e+00> : vector<9xf32>
    %425 = vector.multi_reduction <add>, %424, %cst_192 [1] : vector<9x128xf32> to vector<9xf32>
    %426 = vector.shape_cast %425 : vector<9xf32> to vector<9x1xf32>
    %cst_193 = arith.constant 1.280000e+02 : f32
    %427 = vector.broadcast %cst_193 : f32 to vector<9x1xf32>
    %428 = arith.divf %426, %427 : vector<9x1xf32>
    %429 = vector.broadcast %421 : vector<9x1xf32> to vector<9x128xf32>
    %430 = arith.subf %415, %429 : vector<9x128xf32>
    %cst_194 = arith.constant 9.99999997E-7 : f32
    %431 = vector.broadcast %cst_194 : f32 to vector<9x1xf32>
    %432 = arith.addf %428, %431 : vector<9x1xf32>
    %433 = math.rsqrt %432 : vector<9x1xf32>
    %434 = vector.broadcast %433 : vector<9x1xf32> to vector<9x128xf32>
    %435 = arith.mulf %430, %434 : vector<9x128xf32>
    %436 = vector.broadcast %416 : vector<1x128xf32> to vector<9x128xf32>
    %437 = arith.mulf %435, %436 : vector<9x128xf32>
    %438 = vector.broadcast %417 : vector<1x128xf32> to vector<9x128xf32>
    %439 = arith.addf %437, %438 : vector<9x128xf32>
    %440 = vector.extract_strided_slice %439 {offsets = [0, 0], sizes = [1, 128], strides = [1, 1]} : vector<9x128xf32> to vector<1x128xf32>
    %441 = vector.extract_strided_slice %439 {offsets = [1, 0], sizes = [8, 128], strides = [1, 1]} : vector<9x128xf32> to vector<8x128xf32>
    %c0_195 = arith.constant 0 : index
    %c0_196 = arith.constant 0 : index
    %442 = vector.load %arg25[%c0_195, %c0_196] : memref<128x128xbf16, #tpu.memory_space<vmem>>, vector<128x128xbf16>
    %443 = arith.truncf %440 : vector<1x128xf32> to vector<1x128xbf16>
    %cst_197 = arith.constant dense<0.000000e+00> : vector<1x128xf32>
    %444 = tpu.matmul %443, %442, %cst_197 {dimension_numbers = #tpu.dot_dimension_numbers<[1], [0], [0], [1], [0, 0, 1, 1], [], []>} : vector<1x128xbf16>, vector<128x128xbf16>, vector<1x128xf32> -> vector<1x128xf32>
    %c0_198 = arith.constant 0 : index
    %c0_199 = arith.constant 0 : index
    %445 = vector.load %arg26[%c0_198, %c0_199] : memref<1x128xf32, #tpu.memory_space<vmem>>, vector<1x128xf32>
    %446 = arith.addf %444, %445 : vector<1x128xf32>
    %c0_200 = arith.constant 0 : index
    %c0_201 = arith.constant 0 : index
    %c0_202 = arith.constant 0 : index
    %447 = vector.load %arg32[%c0_200, %c0_201, %c0_202] : memref<1x1x128xf32, #tpu.memory_space<vmem>>, vector<1x1x128xf32>
    %448 = vector.shape_cast %447 : vector<1x1x128xf32> to vector<1x128xf32>
    %449 = vector.shape_cast %446 : vector<1x128xf32> to vector<1x1x128xf32>
    tpu.vector_store %arg32[%c0_200, %c0_201, %c0_202], %449 {strides = array<i32>} : memref<1x1x128xf32, #tpu.memory_space<vmem>>, vector<1x1x128xf32>,
    %c0_203 = arith.constant 0 : index
    %c0_204 = arith.constant 0 : index
    %450 = vector.load %arg27[%c0_203, %c0_204] : memref<1x128xf32, #tpu.memory_space<vmem>>, vector<1x128xf32>
    %451 = vector.broadcast %450 : vector<1x128xf32> to vector<8x128xf32>
    %452 = arith.mulf %441, %451 : vector<8x128xf32>
    %cst_205 = arith.constant dense<0.000000e+00> : vector<8xf32>
    %453 = vector.multi_reduction <add>, %452, %cst_205 [1] : vector<8x128xf32> to vector<8xf32>
    %454 = vector.shape_cast %453 : vector<8xf32> to vector<8x1xf32>
    %c0_206 = arith.constant 0 : index
    %c0_207 = arith.constant 0 : index
    %c0_208 = arith.constant 0 : index
    %455 = vector.load %arg28[%c0_206, %c0_207, %c0_208] : memref<1x8x1xf32, #tpu.memory_space<vmem>>, vector<1x8x1xf32>
    %456 = vector.shape_cast %455 : vector<1x8x1xf32> to vector<8x1xf32>
    %457 = arith.addf %454, %456 : vector<8x1xf32>
    %458 = math.tanh %457 : vector<8x1xf32>
    %459 = math.exp %458 : vector<8x1xf32>
    %c0_209 = arith.constant 0 : index
    %c0_210 = arith.constant 0 : index
    %c0_211 = arith.constant 0 : index
    %460 = vector.load %arg2[%c0_209, %c0_210, %c0_211] : memref<1x8x1xf32, #tpu.memory_space<vmem>>, vector<1x8x1xf32>
    %461 = vector.shape_cast %460 : vector<1x8x1xf32> to vector<8x1xf32>
    %462 = arith.mulf %459, %461 : vector<8x1xf32>
    %cst_212 = arith.constant dense<0.000000e+00> : vector<1xf32>
    %463 = vector.multi_reduction <add>, %462, %cst_212 [0] : vector<8x1xf32> to vector<1xf32>
    %464 = vector.shape_cast %463 : vector<1xf32> to vector<1x1xf32>
    %465 = vector.broadcast %464 : vector<1x1xf32> to vector<8x1xf32>
    %466 = arith.divf %462, %465 : vector<8x1xf32>
    %cst_213 = arith.constant 1.000000e-10 : f32
    %467 = vector.broadcast %cst_213 : f32 to vector<8x1xf32>
    %468 = arith.addf %466, %467 : vector<8x1xf32>
    %469 = vector.broadcast %468 : vector<8x1xf32> to vector<8x128xf32>
    %470 = arith.mulf %441, %469 : vector<8x128xf32>
    %cst_214 = arith.constant dense<0.000000e+00> : vector<128xf32>
    %471 = vector.multi_reduction <add>, %470, %cst_214 [0] : vector<8x128xf32> to vector<128xf32>
    %472 = vector.shape_cast %471 : vector<128xf32> to vector<1x128xf32>
    %cst_215 = arith.constant dense<0xFF800000> : vector<128xf32>
    %473 = vector.multi_reduction <maximumf>, %441, %cst_215 [0] : vector<8x128xf32> to vector<128xf32>
    %474 = vector.shape_cast %473 : vector<128xf32> to vector<1x128xf32>
    %c0_216 = arith.constant 0 : index
    %c0_217 = arith.constant 0 : index
    %475 = vector.load %arg29[%c0_216, %c0_217] : memref<128x128xbf16, #tpu.memory_space<vmem>>, vector<128x128xbf16>
    %476 = arith.truncf %474 : vector<1x128xf32> to vector<1x128xbf16>
    %cst_218 = arith.constant dense<0.000000e+00> : vector<1x128xf32>
    %477 = tpu.matmul %476, %475, %cst_218 {dimension_numbers = #tpu.dot_dimension_numbers<[1], [0], [0], [1], [0, 0, 1, 1], [], []>} : vector<1x128xbf16>, vector<128x128xbf16>, vector<1x128xf32> -> vector<1x128xf32>
    %c0_219 = arith.constant 0 : index
    %c0_220 = arith.constant 0 : index
    %478 = vector.load %arg30[%c0_219, %c0_220] : memref<128x128xbf16, #tpu.memory_space<vmem>>, vector<128x128xbf16>
    %479 = arith.truncf %472 : vector<1x128xf32> to vector<1x128xbf16>
    %cst_221 = arith.constant dense<0.000000e+00> : vector<1x128xf32>
    %480 = tpu.matmul %479, %478, %cst_221 {dimension_numbers = #tpu.dot_dimension_numbers<[1], [0], [0], [1], [0, 0, 1, 1], [], []>} : vector<1x128xbf16>, vector<128x128xbf16>, vector<1x128xf32> -> vector<1x128xf32>
    %481 = arith.addf %477, %480 : vector<1x128xf32>
    %c0_222 = arith.constant 0 : index
    %c0_223 = arith.constant 0 : index
    %482 = vector.load %arg31[%c0_222, %c0_223] : memref<1x128xf32, #tpu.memory_space<vmem>>, vector<1x128xf32>
    %483 = arith.addf %481, %482 : vector<1x128xf32>
    %c0_224 = arith.constant 0 : index
    %c0_225 = arith.constant 0 : index
    %c0_226 = arith.constant 0 : index
    %484 = vector.load %arg33[%c0_224, %c0_225, %c0_226] : memref<1x1x128xf32, #tpu.memory_space<vmem>>, vector<1x1x128xf32>
    %485 = vector.shape_cast %484 : vector<1x1x128xf32> to vector<1x128xf32>
    %486 = vector.shape_cast %483 : vector<1x128xf32> to vector<1x1x128xf32>
    tpu.vector_store %arg33[%c0_224, %c0_225, %c0_226], %486 {strides = array<i32>} : memref<1x1x128xf32, #tpu.memory_space<vmem>>, vector<1x1x128xf32>,
    return
  }
  func.func @transform_0(%arg0: i32) -> (i32, i32, i32) {
    %c0_i32 = arith.constant 0 : i32
    %c0_i32_0 = arith.constant 0 : i32
    %c0_i32_1 = arith.constant 0 : i32
    return %arg0, %c0_i32, %c0_i32_0 : i32, i32, i32
  }
  func.func @transform_1(%arg0: i32) -> (i32, i32, i32) {
    %c0_i32 = arith.constant 0 : i32
    %c0_i32_0 = arith.constant 0 : i32
    %c0_i32_1 = arith.constant 0 : i32
    return %arg0, %c0_i32, %c0_i32_0 : i32, i32, i32
  }
  func.func @transform_2(%arg0: i32) -> (i32, i32) {
    %c0_i32 = arith.constant 0 : i32
    %c0_i32_0 = arith.constant 0 : i32
    %c0_i32_1 = arith.constant 0 : i32
    return %c0_i32, %c0_i32_0 : i32, i32
  }
  func.func @transform_3(%arg0: i32) -> (i32, i32) {
    %c0_i32 = arith.constant 0 : i32
    %c0_i32_0 = arith.constant 0 : i32
    %c0_i32_1 = arith.constant 0 : i32
    return %c0_i32, %c0_i32_0 : i32, i32
  }
  func.func @transform_4(%arg0: i32) -> (i32, i32) {
    %c0_i32 = arith.constant 0 : i32
    %c0_i32_0 = arith.constant 0 : i32
    %c0_i32_1 = arith.constant 0 : i32
    return %c0_i32, %c0_i32_0 : i32, i32
  }
  func.func @transform_5(%arg0: i32) -> (i32, i32) {
    %c0_i32 = arith.constant 0 : i32
    %c0_i32_0 = arith.constant 0 : i32
    %c0_i32_1 = arith.constant 0 : i32
    return %c0_i32, %c0_i32_0 : i32, i32
  }
  func.func @transform_6(%arg0: i32) -> (i32, i32) {
    %c0_i32 = arith.constant 0 : i32
    %c0_i32_0 = arith.constant 0 : i32
    %c0_i32_1 = arith.constant 0 : i32
    return %c0_i32, %c0_i32_0 : i32, i32
  }
  func.func @transform_7(%arg0: i32) -> (i32, i32) {
    %c0_i32 = arith.constant 0 : i32
    %c0_i32_0 = arith.constant 0 : i32
    %c0_i32_1 = arith.constant 0 : i32
    return %c0_i32, %c0_i32_0 : i32, i32
  }
  func.func @transform_8(%arg0: i32) -> (i32, i32, i32) {
    %c0_i32 = arith.constant 0 : i32
    %c0_i32_0 = arith.constant 0 : i32
    %c0_i32_1 = arith.constant 0 : i32
    %c0_i32_2 = arith.constant 0 : i32
    return %c0_i32, %c0_i32_0, %c0_i32_1 : i32, i32, i32
  }
  func.func @transform_9(%arg0: i32) -> (i32, i32, i32) {
    %c0_i32 = arith.constant 0 : i32
    %c0_i32_0 = arith.constant 0 : i32
    %c0_i32_1 = arith.constant 0 : i32
    %c0_i32_2 = arith.constant 0 : i32
    return %c0_i32, %c0_i32_0, %c0_i32_1 : i32, i32, i32
  }
  func.func @transform_10(%arg0: i32) -> (i32, i32, i32) {
    %c0_i32 = arith.constant 0 : i32
    %c0_i32_0 = arith.constant 0 : i32
    %c0_i32_1 = arith.constant 0 : i32
    %c0_i32_2 = arith.constant 0 : i32
    return %c0_i32, %c0_i32_0, %c0_i32_1 : i32, i32, i32
  }
  func.func @transform_11(%arg0: i32) -> (i32, i32, i32) {
    %c0_i32 = arith.constant 0 : i32
    %c0_i32_0 = arith.constant 0 : i32
    %c0_i32_1 = arith.constant 0 : i32
    %c0_i32_2 = arith.constant 0 : i32
    return %c0_i32, %c0_i32_0, %c0_i32_1 : i32, i32, i32
  }
  func.func @transform_12(%arg0: i32) -> (i32, i32, i32) {
    %c0_i32 = arith.constant 0 : i32
    %c0_i32_0 = arith.constant 0 : i32
    %c0_i32_1 = arith.constant 0 : i32
    %c0_i32_2 = arith.constant 0 : i32
    return %c0_i32, %c0_i32_0, %c0_i32_1 : i32, i32, i32
  }
  func.func @transform_13(%arg0: i32) -> (i32, i32, i32) {
    %c0_i32 = arith.constant 0 : i32
    %c0_i32_0 = arith.constant 0 : i32
    %c0_i32_1 = arith.constant 0 : i32
    %c0_i32_2 = arith.constant 0 : i32
    return %c0_i32, %c0_i32_0, %c0_i32_1 : i32, i32, i32
  }
  func.func @transform_14(%arg0: i32) -> (i32, i32, i32) {
    %c0_i32 = arith.constant 0 : i32
    %c0_i32_0 = arith.constant 0 : i32
    %c0_i32_1 = arith.constant 0 : i32
    %c0_i32_2 = arith.constant 0 : i32
    return %c0_i32, %c0_i32_0, %c0_i32_1 : i32, i32, i32
  }
  func.func @transform_15(%arg0: i32) -> (i32, i32, i32) {
    %c0_i32 = arith.constant 0 : i32
    %c0_i32_0 = arith.constant 0 : i32
    %c0_i32_1 = arith.constant 0 : i32
    %c0_i32_2 = arith.constant 0 : i32
    return %c0_i32, %c0_i32_0, %c0_i32_1 : i32, i32, i32
  }
  func.func @transform_16(%arg0: i32) -> (i32, i32, i32) {
    %c0_i32 = arith.constant 0 : i32
    %c0_i32_0 = arith.constant 0 : i32
    %c0_i32_1 = arith.constant 0 : i32
    %c0_i32_2 = arith.constant 0 : i32
    return %c0_i32, %c0_i32_0, %c0_i32_1 : i32, i32, i32
  }
  func.func @transform_17(%arg0: i32) -> (i32, i32, i32) {
    %c0_i32 = arith.constant 0 : i32
    %c0_i32_0 = arith.constant 0 : i32
    %c0_i32_1 = arith.constant 0 : i32
    %c0_i32_2 = arith.constant 0 : i32
    return %c0_i32, %c0_i32_0, %c0_i32_1 : i32, i32, i32
  }
  func.func @transform_18(%arg0: i32) -> (i32, i32, i32) {
    %c0_i32 = arith.constant 0 : i32
    %c0_i32_0 = arith.constant 0 : i32
    %c0_i32_1 = arith.constant 0 : i32
    %c0_i32_2 = arith.constant 0 : i32
    return %c0_i32, %c0_i32_0, %c0_i32_1 : i32, i32, i32
  }
  func.func @transform_19(%arg0: i32) -> (i32, i32, i32) {
    %c0_i32 = arith.constant 0 : i32
    %c0_i32_0 = arith.constant 0 : i32
    %c0_i32_1 = arith.constant 0 : i32
    %c0_i32_2 = arith.constant 0 : i32
    return %c0_i32, %c0_i32_0, %c0_i32_1 : i32, i32, i32
  }
  func.func @transform_20(%arg0: i32) -> (i32, i32, i32) {
    %c0_i32 = arith.constant 0 : i32
    %c0_i32_0 = arith.constant 0 : i32
    %c0_i32_1 = arith.constant 0 : i32
    %c0_i32_2 = arith.constant 0 : i32
    return %c0_i32, %c0_i32_0, %c0_i32_1 : i32, i32, i32
  }
  func.func @transform_21(%arg0: i32) -> (i32, i32, i32) {
    %c0_i32 = arith.constant 0 : i32
    %c0_i32_0 = arith.constant 0 : i32
    %c0_i32_1 = arith.constant 0 : i32
    %c0_i32_2 = arith.constant 0 : i32
    return %c0_i32, %c0_i32_0, %c0_i32_1 : i32, i32, i32
  }
  func.func @transform_22(%arg0: i32) -> (i32, i32) {
    %c0_i32 = arith.constant 0 : i32
    %c0_i32_0 = arith.constant 0 : i32
    %c0_i32_1 = arith.constant 0 : i32
    return %c0_i32, %c0_i32_0 : i32, i32
  }
  func.func @transform_23(%arg0: i32) -> (i32, i32) {
    %c0_i32 = arith.constant 0 : i32
    %c0_i32_0 = arith.constant 0 : i32
    %c0_i32_1 = arith.constant 0 : i32
    return %c0_i32, %c0_i32_0 : i32, i32
  }
  func.func @transform_24(%arg0: i32) -> (i32, i32) {
    %c0_i32 = arith.constant 0 : i32
    %c0_i32_0 = arith.constant 0 : i32
    %c0_i32_1 = arith.constant 0 : i32
    return %c0_i32, %c0_i32_0 : i32, i32
  }
  func.func @transform_25(%arg0: i32) -> (i32, i32) {
    %c0_i32 = arith.constant 0 : i32
    %c0_i32_0 = arith.constant 0 : i32
    %c0_i32_1 = arith.constant 0 : i32
    return %c0_i32, %c0_i32_0 : i32, i32
  }
  func.func @transform_26(%arg0: i32) -> (i32, i32) {
    %c0_i32 = arith.constant 0 : i32
    %c0_i32_0 = arith.constant 0 : i32
    %c0_i32_1 = arith.constant 0 : i32
    return %c0_i32, %c0_i32_0 : i32, i32
  }
  func.func @transform_27(%arg0: i32) -> (i32, i32, i32) {
    %c0_i32 = arith.constant 0 : i32
    %c0_i32_0 = arith.constant 0 : i32
    %c0_i32_1 = arith.constant 0 : i32
    %c0_i32_2 = arith.constant 0 : i32
    return %c0_i32, %c0_i32_0, %c0_i32_1 : i32, i32, i32
  }
  func.func @transform_28(%arg0: i32) -> (i32, i32) {
    %c0_i32 = arith.constant 0 : i32
    %c0_i32_0 = arith.constant 0 : i32
    %c0_i32_1 = arith.constant 0 : i32
    return %c0_i32, %c0_i32_0 : i32, i32
  }
  func.func @transform_29(%arg0: i32) -> (i32, i32) {
    %c0_i32 = arith.constant 0 : i32
    %c0_i32_0 = arith.constant 0 : i32
    %c0_i32_1 = arith.constant 0 : i32
    return %c0_i32, %c0_i32_0 : i32, i32
  }
  func.func @transform_30(%arg0: i32) -> (i32, i32) {
    %c0_i32 = arith.constant 0 : i32
    %c0_i32_0 = arith.constant 0 : i32
    %c0_i32_1 = arith.constant 0 : i32
    return %c0_i32, %c0_i32_0 : i32, i32
  }
  func.func @transform_31(%arg0: i32) -> (i32, i32, i32) {
    %c0_i32 = arith.constant 0 : i32
    %c0_i32_0 = arith.constant 0 : i32
    %c0_i32_1 = arith.constant 0 : i32
    return %arg0, %c0_i32, %c0_i32_0 : i32, i32, i32
  }
  func.func @transform_32(%arg0: i32) -> (i32, i32, i32) {
    %c0_i32 = arith.constant 0 : i32
    %c0_i32_0 = arith.constant 0 : i32
    %c0_i32_1 = arith.constant 0 : i32
    return %arg0, %c0_i32, %c0_i32_0 : i32, i32, i32
  }
}

</mosaic_0001>

<bundles_post_ra>
// kernel: model_forward.1
= control target key start
LH: loop header
LB: loop body
LE: loop exit
PB: predicated region body
PF: predicated region fallthrough
CT: control target
= control target key end

     0   :  { %s9943_s6 = smov 1   ;;  %s9944_s10 = smov 2   ;;  %s10880_s0 = inlined_call_operand.smem [shape: u32[33], index: -1, kind: input, shape index: {}] }
   0x1   :  { %s10010_s5 = sld [smem:[%s10880_s0]]   ;;  %s9945_s14 = smov 3  }
   0x2   :  { %s10015_s9 = sld [smem:[%s10880_s0 + %s9943_s6]]   ;;  %s9946_s18 = smov 4  }
   0x3   :  { %s10020_s13 = sld [smem:[%s10880_s0 + %s9944_s10]]   ;;  %s9947_s22 = smov 5  }
   0x4   :  { %s10025_s17 = sld [smem:[%s10880_s0 + %s9945_s14]]   ;;  %s9948_s26 = smov 6  }
   0x5   :  { %s10030_s21 = sld [smem:[%s10880_s0 + %s9946_s18]]   ;;  %s9949_s30 = smov 7  }
   0x6   :  { %s10035_s25 = sld [smem:[%s10880_s0 + %s9947_s22]]   ;;  %s9950_s4 = smov 8  }
   0x7   :  { %10914 = sst [smem:[#allocation31_spill]] %s10010_s5  ;;  %s9951_s10 = smov 9  }
   0x8   :  { %10915 = sst [smem:[#allocation32_spill]] %s10015_s9  ;;  %s9952_s15 = smov 10  }
   0x9   :  { %s10040_s29 = sld [smem:[%s10880_s0 + %s9948_s26]]   ;;  %s9953_s20 = smov 11  }
   0xa   :  { %s10045_s3 = sld [smem:[%s10880_s0 + %s9949_s30]]   ;;  %s9954_s26 = smov 12  }
   0xb   :  { %10916 = sst [smem:[#allocation33_spill]] %s10030_s21  ;;  %s9955_s1 = smov 13  }
   0xc   :  { %s10050_s8 = sld [smem:[%s10880_s0 + %s9950_s4]]   ;;  %s9956_s7 = smov 14  }
   0xd   :  { %s10055_s14 = sld [smem:[%s10880_s0 + %s9951_s10]]   ;;  %s9958_s22 = smov 16  }
   0xe   :  { %s10060_s19 = sld [smem:[%s10880_s0 + %s9952_s15]]   ;;  %s9957_s15 = smov 15  }
   0xf   :  { %s10065_s24 = sld [smem:[%s10880_s0 + %s9953_s20]]   ;;  %s9959_s28 = smov 17  }
  0x10   :  { %10917 = sst [smem:[#allocation34_spill]] %s10045_s3 }
  0x11   :  { %s10070_s30 = sld [smem:[%s10880_s0 + %s9954_s26]]  }
  0x12   :  { %10918 = sst [smem:[#allocation35_spill]] %s10050_s8 }
  0x13   :  { %s10075_s6 = sld [smem:[%s10880_s0 + %s9955_s1]]  }
  0x14   :  { %10919 = sst [smem:[#allocation36_spill]] %s10060_s19 }
  0x15   :  { %10920 = sst [smem:[#allocation37_spill]] %s10065_s24 }
  0x16   :  { %s10080_s12 = sld [smem:[%s10880_s0 + %s9956_s7]]   ;;  %s9960_s7 = smov 18  }
  0x17   :  { %10921 = sst [smem:[#allocation38_spill]] %s10070_s30 }
  0x18   :  { %s10085_s20 = sld [smem:[%s10880_s0 + %s9957_s15]]   ;;  %s9961_s15 = smov 19  }
  0x19   :  { %10922 = sst [smem:[#allocation39_spill]] %s10075_s6 }
  0x1a   :  { %s10090_s27 = sld [smem:[%s10880_s0 + %s9958_s22]]   ;;  %s9962_s22 = smov 20  }
  0x1b   :  { %s10095_s4 = sld [smem:[%s10880_s0 + %s9959_s28]]   ;;  %s9963_s28 = smov 21  }
  0x1c   :  { %s10100_s9 = sld [smem:[%s10880_s0 + %s9960_s7]]   ;;  %s9964_s7 = smov 22  }
  0x1d   :  { %s10120_s6 = sld [smem:[%s10880_s0 + %s9964_s7]]   ;;  %s9968_s7 = smov 26  }
  0x1e   :  { %10923 = sst [smem:[#allocation40_spill]] %s10085_s20 }
  0x1f   :  { %s10105_s20 = sld [smem:[%s10880_s0 + %s9961_s15]]   ;;  %s9965_s15 = smov 23  }
  0x20   :  { %10924 = sst [smem:[#allocation41_spill]] %s10090_s27 }
  0x21   :  { %10925 = sst [smem:[#allocation42_spill]] %s10095_s4 }
  0x22   :  { %10926 = sst [smem:[#allocation43_spill]] %s10100_s9 }
  0x23   :  { %s10110_s27 = sld [smem:[%s10880_s0 + %s9962_s22]]   ;;  %s9966_s22 = smov 24  }
  0x24   :  { %s10115_s4 = sld [smem:[%s10880_s0 + %s9963_s28]]   ;;  %s9967_s28 = smov 25  }
  0x25   :  { %10927 = sst [smem:[#allocation44_spill]] %s10105_s20 }
  0x26   :  { %10929 = sst [smem:[#allocation46_spill]] %s10120_s6 }
  0x27   :  { %s10125_s20 = sld [smem:[%s10880_s0 + %s9965_s15]]   ;;  %s9969_s15 = smov 27  }
  0x28   :  { %s10130_s24 = sld [smem:[%s10880_s0 + %s9966_s22]]   ;;  %s9970_s22 = smov 28  }
  0x29   :  { %s10140_s6 = sld [smem:[%s10880_s0 + %s9968_s7]]   ;;  %s9972_s7 = smov 30  }
  0x2a   :  { %10928 = sst [smem:[#allocation45_spill]] %s10115_s4 }
  0x2b   :  { %s10135_s4 = sld [smem:[%s10880_s0 + %s9967_s28]]   ;;  %s9971_s28 = smov 29  }
  0x2c   :  { %s10150_s19 = sld [smem:[%s10880_s0 + %s9970_s22]]   ;;  %s9974_s22 = smov 32  }
  0x2d   :  { %10930 = sst [smem:[#allocation47_spill]] %s10125_s20 }
  0x2e   :  { %s10145_s20 = sld [smem:[%s10880_s0 + %s9969_s15]]   ;;  %s9973_s15 = smov 31  }
  0x2f   :  { %10932 = sst [smem:[#allocation49_spill]] %s10140_s6 }
  0x30   :  { %s10160_s6 = sld [smem:[%s10880_s0 + %s9972_s7]]  }
  0x31   :  { %10931 = sst [smem:[#allocation48_spill]] %s10135_s4 }
  0x32   :  { %s10155_s4 = sld [smem:[%s10880_s0 + %s9971_s28]]  }
  0x33   :  { %s10170_s8 = sld [smem:[%s10880_s0 + %s9974_s22]]  }
  0x34   :  { %10933 = sst [smem:[#allocation50_spill]] %s10145_s20 }
  0x35   :  { %s10165_s20 = sld [smem:[%s10880_s0 + %s9973_s15]]  }
  0x38   :  { %10934 = sst [smem:[#allocation51_spill]] %s10155_s4 }
  0x39   :  { %71 = vsyncpa [#allocation4], 0 }
  0x3a   :  { %72 = vsyncpa [#allocation7], 0 }
  0x3b   :  { %73 = vsyncpa [#allocation10], 0 }
  0x3c   :  { %74 = vsyncpa [#allocation13], 0 }
  0x3d   :  { %75 = vsyncpa [#allocation16], 0 }
  0x3e   :  { %76 = vsyncpa [#allocation19], 0 }
  0x3f   :  { %77 = vsyncpa [#allocation5], 0 }
  0x40   :  { %79 = vsyncpa [#allocation5 + $0x1], 0 }
  0x41   :  { %80 = vsyncpa [#allocation22], 0 }
  0x42   :  { %82 = vsyncpa [#allocation22 + $0x1], 0  ;;  %s10172_s28 = smov 0   ;;  %s10174_s1 = smov 0  }
  0x43   :  { %s10176_s2 = smov 0   ;;  %s10178_s7 = smov 0  }
  0x44 LB: > { %s10935_s9 = sld [smem:[#allocation43_spill]]  ;;  %s10937_s30 = sld [smem:[#allocation38_spill]]  ;;  %s9941_s7 = sphi %s10178_s7, %s10995_s7   ;;  %s9937_s2 = sphi %s10176_s2, %s10997_s2   ;;  %s9933_s1 = sphi %s10174_s1, %s10999_s1   ;;  %s9929_s28 = sphi %s10172_s28, %s10998_s28  }
  0x45   : > { %s10936_s4 = sld [smem:[#allocation51_spill]]  ;;  %s10938_s21 = sld [smem:[#allocation33_spill]] }
  0x46   : > { %10939 = sst [smem:[#allocation52_spill]] %s9929_s28  ;;  %s10193_s0 = sadd.s32 4294967295, %s9941_s7  }
  0x47   : > { %10940 = sst [smem:[#allocation53_spill]] %s9937_s2  ;;  %s7466_s10 = sadd.s32 4294967294, %s9941_s7  }
  0x48   : > { %10941 = sst [smem:[#allocation54_spill]] %s9941_s7  ;;  %s10197_s11 = sadd.s32 1, %s9941_s7  }
  0x49   : > { %10942 = sst [smem:[#allocation55_spill]] %s10197_s11  ;;  %s756_s15 = sadd.s32 1, %s9937_s2 }
  0x4a   : > { %s753_s16 = ssub.s32 %s9941_s7, %s10197_s11  ;;  %p766_p0 = scmp.ne.s32.totalorder %s9937_s2, %s9933_s1 }
  0x4b   : > { %p754_p1 = scmp.eq.s32.totalorder %s753_s16, 0  ;;  %p767_p2 = scmp.eq.s32.totalorder %s10193_s0, 1 }
  0x4c   : > { %p772_p3 = scmp.ne.s32.totalorder %s9933_s1, %s9929_s28  ;;  %p773_p4 = scmp.eq.s32.totalorder %s7466_s10, 1 }
  0x4d   : > { %s10208_s18 = scalar_select %p754_p1, %s9937_s2, %s756_s15  }
  0x4e   : > { %p10210_p5 = por %p767_p2, %p766_p0  ;;  %p10214_p6 = por %p773_p4, %p772_p3 }
  0x4f   : > { %10943 = sst [smem:[#allocation56_spill]] %s10208_s18  ;;  %p7467_p7 = scmp.ge.s32.totalorder %s9941_s7, 1 }
  0x50   : > { %s10944_s22 = scalar_select %p10210_p5, 1, 0 }
  0x51   : > { %s10945_s23 = scalar_select %p10214_p6, 1, 0 }
  0x52   : > { %p806_p8 = scmp.lt.s32.totalorder %s9941_s7, 3  ;;  %p10893_p9 = scmp.eq.s32.totalorder %s10193_s0, 0 }
  0x53   : > { %10946 = sst [smem:[#allocation57_spill]] %s10945_s23  ;;  %s9975_s10 = smov [#allocation6]  }
  0x54   : > { %p10221_p10 = pnand %p7467_p7, %p806_p8  ;;  %s834_s15 = sshll.u32 %s9975_s10, 4  ;;  %s835_s15 = int_to_ptr.vmem [resolvable:$true] %s834_s15 }
  0x55   : > { %s9976_s18 = smov [#allocation9]   ;;  %s9543_s11 = scalar_lea.hbm %s10938_s21, 8192 }
  0x56   : > { %s10947_s26 = scalar_select %p10221_p10, 1, 0 }
  0x57   : > { %p8525_p11 = pneg %p10221_p10  ;;  %s878_s2 = sshll.u32 %s9976_s18, 4  ;;  %s10233_s2 = int_to_ptr.vmem [resolvable:$true] %s878_s2 }
  0x58   : > { %p9544_p13 = scmp.ne.s32.totalorder %s10938_s21, %s9543_s11  ;;  %p9550_p3 = scmp.lt.u32.totalorder %s9543_s11, %s10938_s21 }
  0x59   : > { %p10229_p12 = pnand %p10893_p9, %p8525_p11 }
  0x5b   : > { %p10239_p0 = pneg %p10229_p12 }
  0x5d   : > { %p9546_p1 = pnand %p10239_p0, %p9544_p13 }
  0x5f   : > { %p9547_p2 = pneg %p9546_p1 }
  0x61   : > { %p9552_p4 = pnand %p9550_p3, %p9547_p2 }
  0x63   : > { %9555 = shalt.err (!%p9552_p4)
}
  0x64   : > { %s9556_s10 = scalar_lea.vmem %s835_s15, 8192  ;;  %p9564_p9 = scmp.lt.s32.totalorder %s835_s15, %s835_s15 }
  0x65   : > { %p9557_p7 = scmp.ne.s32.totalorder %s835_s15, %s9556_s10  ;;  %p9565_p6 = scmp.lt.s32.totalorder %s9556_s10, %s9556_s10 }
  0x67   : > { %p9559_p8 = pnand %p9557_p7, %p10239_p0  ;;  %p9566_p5 = por %p9565_p6, %p9564_p9 }
  0x69   : > { %p9560_p11 = pneg %p9559_p8 }
  0x6b   : > { %p9567_p10 = pnand %p9566_p5, %p9560_p11 }
  0x6d   : > { %9570 = shalt.err (!%p9567_p10)
}
  0x6e   : > { %s10897_s18 = smov 128   ;;  %s10898_s11 = smov 8  }
  0x6f   : > { %8531 = dma.hbm_to_vmem [thread:$0]  (!%p10229_p12), %s10938_s21, 8192, %s835_s15, [#allocation7], %s10897_s18, %s10897_s18, %s10898_s11  }
  0x70   : > { %s9571_s28 = scalar_lea.hbm %s10937_s30, 6144 }
  0x71   : > { %p9572_p13 = scmp.ne.s32.totalorder %s10937_s30, %s9571_s28  ;;  %p9578_p5 = scmp.lt.u32.totalorder %s9571_s28, %s10937_s30 }
  0x73   : > { %p9574_p1 = pnand %p9572_p13, %p10239_p0 }
  0x75   : > { %p9575_p6 = pneg %p9574_p1 }
  0x77   : > { %p9580_p9 = pnand %p9578_p5, %p9575_p6 }
  0x79   : > { %9583 = shalt.err (!%p9580_p9)
}
  0x7a   : > { %s9584_s10 = scalar_lea.vmem %s10233_s2, 6144  ;;  %p9592_p4 = scmp.lt.s32.totalorder %s10233_s2, %s10233_s2 }
  0x7b   : > { %p9585_p10 = scmp.ne.s32.totalorder %s10233_s2, %s9584_s10  ;;  %p9593_p7 = scmp.lt.s32.totalorder %s9584_s10, %s9584_s10 }
  0x7d   : > { %p9587_p2 = pnand %p9585_p10, %p10239_p0  ;;  %p9594_p8 = por %p9593_p7, %p9592_p4 }
  0x7f   : > { %p9588_p3 = pneg %p9587_p2 }
  0x81   : > { %p9595_p11 = pnand %p9594_p8, %p9588_p3 }
  0x83   : > { %9598 = shalt.err (!%p9595_p11)
}
  0x84   : > { %s9979_s15 = smov 192   ;;  %s9980_s28 = smov 12  }
  0x85   : > { %8537 = dma.hbm_to_vmem [thread:$0]  (!%p10229_p12), %s10937_s30, 6144, %s10233_s2, [#allocation10], %s9979_s15, %s9979_s15, %s9980_s28  }
  0x86   : > { %s9981_s18 = smov [#allocation12]   ;;  %s9599_s21 = scalar_lea.hbm %s10935_s9, 4096 }
  0x87   : > { %s916_s11 = sshll.u32 %s9981_s18, 4  ;;  %p9600_p13 = scmp.ne.s32.totalorder %s10935_s9, %s9599_s21  ;;  %s917_s11 = int_to_ptr.vmem [resolvable:$true] %s916_s11 }
  0x88   : > { %p9606_p5 = scmp.lt.u32.totalorder %s9599_s21, %s10935_s9 }
  0x89   : > { %p9602_p1 = pnand %p9600_p13, %p10239_p0 }
  0x8b   : > { %p9603_p6 = pneg %p9602_p1 }
  0x8d   : > { %p9608_p9 = pnand %p9606_p5, %p9603_p6 }
  0x8f   : > { %9611 = shalt.err (!%p9608_p9)
}
  0x90   : > { %s9612_s10 = scalar_lea.vmem %s917_s11, 4096  ;;  %p9620_p4 = scmp.lt.s32.totalorder %s917_s11, %s917_s11 }
  0x91   : > { %p9613_p10 = scmp.ne.s32.totalorder %s917_s11, %s9612_s10  ;;  %p9621_p7 = scmp.lt.s32.totalorder %s9612_s10, %s9612_s10 }
  0x93   : > { %p9615_p2 = pnand %p9613_p10, %p10239_p0  ;;  %p9622_p8 = por %p9621_p7, %p9620_p4 }
  0x95   : > { %p9616_p3 = pneg %p9615_p2 }
  0x97   : > { %p9623_p11 = pnand %p9622_p8, %p9616_p3 }
  0x99   : > { %9626 = shalt.err (!%p9623_p11)
}
  0x9a   : > { %s10950_s2 = smov 8   ;;  %s10951_s18 = smov 128  }
  0x9b   : > { %8543 = dma.hbm_to_vmem [thread:$0]  (!%p10229_p12), %s10935_s9, 4096, %s917_s11, [#allocation13], %s10951_s18, %s10951_s18, %s10950_s2  }
  0x9c   : > { %s9982_s21 = smov [#allocation15]   ;;  %s9983_s28 = smov [#allocation3]  }
  0x9d   : > { %s954_s15 = sshll.u32 %s9982_s21, 4  ;;  %s818_s30 = sshll.u32 %s9983_s28, 4  ;;  %s955_s15 = int_to_ptr.vmem [resolvable:$true] %s954_s15  ;;  %s819_s30 = int_to_ptr.vmem [resolvable:$true] %s818_s30 }
  0x9e   : > { %s9627_s10 = scalar_lea.hbm %s10130_s24, 1024 }
  0x9f   : > { %p9628_p13 = scmp.ne.s32.totalorder %s10130_s24, %s9627_s10  ;;  %p9634_p5 = scmp.lt.u32.totalorder %s9627_s10, %s10130_s24 }
  0xa1   : > { %p9630_p1 = pnand %p9628_p13, %p10239_p0 }
  0xa3   : > { %p9631_p6 = pneg %p9630_p1 }
  0xa5   : > { %p9636_p9 = pnand %p9634_p5, %p9631_p6 }
  0xa7   : > { %9639 = shalt.err (!%p9636_p9)
}
  0xa8   : > { %s9640_s7 = scalar_lea.vmem %s955_s15, 1024  ;;  %p9648_p4 = scmp.lt.s32.totalorder %s955_s15, %s955_s15 }
  0xa9   : > { %p9641_p10 = scmp.ne.s32.totalorder %s955_s15, %s9640_s7  ;;  %p9649_p7 = scmp.lt.s32.totalorder %s9640_s7, %s9640_s7 }
  0xab   : > { %p9643_p2 = pnand %p9641_p10, %p10239_p0  ;;  %p9650_p8 = por %p9649_p7, %p9648_p4 }
  0xad   : > { %p9644_p3 = pneg %p9643_p2 }
  0xaf   : > { %p9651_p11 = pnand %p9650_p8, %p9644_p3 }
  0xb1   : > { %9654 = shalt.err (!%p9651_p11)
}
  0xb2   : > { %s10902_s11 = smov 64   ;;  %s10904_s2 = smov 4  }
  0xb3   : > { %8549 = dma.hbm_to_vmem [thread:$0]  (!%p10229_p12), %s10130_s24, 1024, %s955_s15, [#allocation16], %s10902_s11, %s10902_s11, %s10904_s2  }
  0xb4   : > { %s9655_s18 = scalar_lea.hbm %s10020_s13, 32768 }
  0xb5   : > { %p9656_p13 = scmp.ne.s32.totalorder %s10020_s13, %s9655_s18  ;;  %p9662_p5 = scmp.lt.u32.totalorder %s9655_s18, %s10020_s13 }
  0xb7   : > { %p9658_p1 = pnand %p9656_p13, %p10239_p0 }
  0xb9   : > { %p9659_p6 = pneg %p9658_p1 }
  0xbb   : > { %p9664_p9 = pnand %p9662_p5, %p9659_p6 }
  0xbd   : > { %9667 = shalt.err (!%p9664_p9)
}
  0xbe   : > { %s9668_s7 = scalar_lea.vmem %s819_s30, 32768  ;;  %p9676_p4 = scmp.lt.s32.totalorder %s819_s30, %s819_s30 }
  0xbf   : > { %p9669_p10 = scmp.ne.s32.totalorder %s819_s30, %s9668_s7  ;;  %p9677_p7 = scmp.lt.s32.totalorder %s9668_s7, %s9668_s7 }
  0xc1   : > { %p9671_p2 = pnand %p9669_p10, %p10239_p0  ;;  %p9678_p8 = por %p9677_p7, %p9676_p4 }
  0xc3   : > { %p9672_p3 = pneg %p9671_p2 }
  0xc5   : > { %p9679_p11 = pnand %p9678_p8, %p9672_p3 }
  0xc7   : > { %9682 = shalt.err (!%p9679_p11)
}
  0xc8   : > { %s9986_s21 = smov 256   ;;  %s9987_s15 = smov 16  }
  0xc9   : > { %8528 = dma.hbm_to_vmem [thread:$0]  (!%p10229_p12), %s10020_s13, 32768, %s819_s30, [#allocation4], %s9986_s21, %s9986_s21, %s9987_s15  }
  0xca   : > { %s9988_s28 = smov [#allocation8]   ;;  %s9989_s18 = smov [#allocation11]  }
  0xcb   : > { %s850_s10 = sshll.u32 %s9988_s28, 4  ;;  %s894_s11 = sshll.u32 %s9989_s18, 4  ;;  %s851_s10 = int_to_ptr.vmem [resolvable:$true] %s850_s10  ;;  %s895_s11 = int_to_ptr.vmem [resolvable:$true] %s894_s11 }
  0xcc   : > { %s9683_s2 = scalar_lea.hbm %s10040_s29, 2048 }
  0xcd   : > { %p9684_p13 = scmp.ne.s32.totalorder %s10040_s29, %s9683_s2  ;;  %p9690_p5 = scmp.lt.u32.totalorder %s9683_s2, %s10040_s29 }
  0xcf   : > { %p9686_p1 = pnand %p9684_p13, %p10239_p0 }
  0xd1   : > { %p9687_p6 = pneg %p9686_p1 }
  0xd3   : > { %p9692_p9 = pnand %p9690_p5, %p9687_p6 }
  0xd5   : > { %9695 = shalt.err (!%p9692_p9)
}
  0xd6   : > { %s9696_s7 = scalar_lea.vmem %s851_s10, 2048  ;;  %p9704_p4 = scmp.lt.s32.totalorder %s851_s10, %s851_s10 }
  0xd7   : > { %p9697_p10 = scmp.ne.s32.totalorder %s851_s10, %s9696_s7  ;;  %p9705_p7 = scmp.lt.s32.totalorder %s9696_s7, %s9696_s7 }
  0xd9   : > { %p9699_p2 = pnand %p9697_p10, %p10239_p0  ;;  %p9706_p8 = por %p9705_p7, %p9704_p4 }
  0xdb   : > { %p9700_p3 = pneg %p9699_p2 }
  0xdd   : > { %p9707_p11 = pnand %p9706_p8, %p9700_p3 }
  0xdf   : > { %9710 = shalt.err (!%p9707_p11)
}
  0xe0   : > { %s10952_s30 = smov 4   ;;  %s10953_s21 = smov 64  }
  0xe1   : > { %8534 = dma.hbm_to_vmem [thread:$0]  (!%p10229_p12), %s10040_s29, 2048, %s851_s10, [#allocation7], %s10953_s21, %s10953_s21, %s10952_s30  }
  0xe2   : > { %s9711_s2 = scalar_lea.hbm %s10080_s12, 2048 }
  0xe3   : > { %p9712_p13 = scmp.ne.s32.totalorder %s10080_s12, %s9711_s2  ;;  %p9718_p5 = scmp.lt.u32.totalorder %s9711_s2, %s10080_s12 }
  0xe5   : > { %p9714_p1 = pnand %p9712_p13, %p10239_p0 }
  0xe7   : > { %p9715_p6 = pneg %p9714_p1 }
  0xe9   : > { %p9720_p9 = pnand %p9718_p5, %p9715_p6 }
  0xeb   : > { %9723 = shalt.err (!%p9720_p9)
}
  0xec   : > { %s9724_s15 = scalar_lea.vmem %s895_s11, 2048  ;;  %p9732_p4 = scmp.lt.s32.totalorder %s895_s11, %s895_s11 }
  0xed   : > { %p9725_p10 = scmp.ne.s32.totalorder %s895_s11, %s9724_s15  ;;  %p9733_p7 = scmp.lt.s32.totalorder %s9724_s15, %s9724_s15 }
  0xef   : > { %p9727_p2 = pnand %p9725_p10, %p10239_p0  ;;  %p9734_p8 = por %p9733_p7, %p9732_p4 }
  0xf1   : > { %p9728_p3 = pneg %p9727_p2 }
  0xf3   : > { %p9735_p11 = pnand %p9734_p8, %p9728_p3 }
  0xf5   : > { %9738 = shalt.err (!%p9735_p11)
}
  0xf6   : > { %8540 = dma.hbm_to_vmem [thread:$0]  (!%p10229_p12), %s10080_s12, 2048, %s895_s11, [#allocation10], %s10953_s21, %s10953_s21, %s10952_s30  }
  0xf7   : > { %s9990_s28 = smov [#allocation14]   ;;  %s9991_s18 = smov [#allocation17]  }
  0xf8   : > { %s932_s10 = sshll.u32 %s9990_s28, 4  ;;  %s976_s7 = sshll.u32 %s9991_s18, 4  ;;  %s933_s10 = int_to_ptr.vmem [resolvable:$true] %s932_s10  ;;  %s977_s7 = int_to_ptr.vmem [resolvable:$true] %s976_s7 }
  0xf9   : > { %s9739_s2 = scalar_lea.hbm %s10110_s27, 4096 }
  0xfa   : > { %p9740_p13 = scmp.ne.s32.totalorder %s10110_s27, %s9739_s2  ;;  %p9746_p5 = scmp.lt.u32.totalorder %s9739_s2, %s10110_s27 }
  0xfc   : > { %p9742_p1 = pnand %p9740_p13, %p10239_p0 }
  0xfe   : > { %p9743_p6 = pneg %p9742_p1 }
 0x100   : > { %p9748_p9 = pnand %p9746_p5, %p9743_p6 }
 0x102   : > { %9751 = shalt.err (!%p9748_p9)
}
 0x103   : > { %s9752_s15 = scalar_lea.vmem %s933_s10, 4096  ;;  %p9760_p4 = scmp.lt.s32.totalorder %s933_s10, %s933_s10 }
 0x104   : > { %p9753_p10 = scmp.ne.s32.totalorder %s933_s10, %s9752_s15  ;;  %p9761_p7 = scmp.lt.s32.totalorder %s9752_s15, %s9752_s15 }
 0x106   : > { %p9755_p2 = pnand %p9753_p10, %p10239_p0  ;;  %p9762_p8 = por %p9761_p7, %p9760_p4 }
 0x108   : > { %p9756_p3 = pneg %p9755_p2 }
 0x10a   : > { %p9763_p11 = pnand %p9762_p8, %p9756_p3 }
 0x10c   : > { %9766 = shalt.err (!%p9763_p11)
}
 0x10d   : > { %8546 = dma.hbm_to_vmem [thread:$0]  (!%p10229_p12), %s10110_s27, 4096, %s933_s10, [#allocation13], %s10953_s21, %s10953_s21, %s10952_s30  }
 0x10e   : > { %s9767_s11 = scalar_lea.hbm %s10150_s19, 1024 }
 0x10f   : > { %p9768_p13 = scmp.ne.s32.totalorder %s10150_s19, %s9767_s11  ;;  %p9774_p5 = scmp.lt.u32.totalorder %s9767_s11, %s10150_s19 }
 0x111   : > { %p9770_p1 = pnand %p9768_p13, %p10239_p0 }
 0x113   : > { %p9771_p6 = pneg %p9770_p1 }
 0x115   : > { %p9776_p9 = pnand %p9774_p5, %p9771_p6 }
 0x117   : > { %9779 = shalt.err (!%p9776_p9)
}
 0x118   : > { %s9780_s28 = scalar_lea.vmem %s977_s7, 1024  ;;  %p9788_p4 = scmp.lt.s32.totalorder %s977_s7, %s977_s7 }
 0x119   : > { %p9781_p10 = scmp.ne.s32.totalorder %s977_s7, %s9780_s28  ;;  %p9789_p7 = scmp.lt.s32.totalorder %s9780_s28, %s9780_s28 }
 0x11b   : > { %p9783_p2 = pnand %p9781_p10, %p10239_p0  ;;  %p9790_p8 = por %p9789_p7, %p9788_p4 }
 0x11d   : > { %p9784_p3 = pneg %p9783_p2 }
 0x11f   : > { %p9791_p11 = pnand %p9790_p8, %p9784_p3 }
 0x121   : > { %9794 = shalt.err (!%p9791_p11)
}
 0x122   : > { %8552 = dma.hbm_to_vmem [thread:$0]  (!%p10229_p12), %s10150_s19, 1024, %s977_s7, [#allocation16], %s10953_s21, %s10953_s21, %s10952_s30  }
 0x123   : > { %s9992_s10 = smov [#allocation18]   ;;  %s9795_s2 = scalar_lea.hbm %s10936_s4, 1024 }
 0x124   : > { %s989_s18 = sshll.u32 %s9992_s10, 4  ;;  %p9796_p13 = scmp.ne.s32.totalorder %s10936_s4, %s9795_s2  ;;  %s990_s18 = int_to_ptr.vmem [resolvable:$true] %s989_s18 }
 0x125   : > { %p9802_p5 = scmp.lt.u32.totalorder %s9795_s2, %s10936_s4 }
 0x126   : > { %p9798_p1 = pnand %p9796_p13, %p10239_p0 }
 0x128   : > { %p9799_p6 = pneg %p9798_p1 }
 0x12a   : > { %p9804_p9 = pnand %p9802_p5, %p9799_p6 }
 0x12c   : > { %9807 = shalt.err (!%p9804_p9)
}
 0x12d   : > { %s9808_s15 = scalar_lea.vmem %s990_s18, 1024  ;;  %p9816_p4 = scmp.lt.s32.totalorder %s990_s18, %s990_s18 }
 0x12e   : > { %p9809_p10 = scmp.ne.s32.totalorder %s990_s18, %s9808_s15  ;;  %p9817_p7 = scmp.lt.s32.totalorder %s9808_s15, %s9808_s15 }
 0x130   : > { %p9811_p2 = pnand %p9809_p10, %p10239_p0  ;;  %p9818_p8 = por %p9817_p7, %p9816_p4 }
 0x132   : > { %p9812_p3 = pneg %p9811_p2 }
 0x134   : > { %p9819_p11 = pnand %p9818_p8, %p9812_p3 }
 0x136   : > { %9822 = shalt.err (!%p9819_p11)
}
 0x137   : > { %8555 = dma.hbm_to_vmem [thread:$0]  (!%p10229_p12), %s10936_s4, 1024, %s990_s18, [#allocation19], %s10953_s21, %s10953_s21, %s10952_s30  }
 0x138   : > { %p10954_p13 = scmp.ne.s32.totalorder %s10947_s26, 0 }
 0x139   : > { %p10955_p1 = scmp.eq.s32.totalorder (!%p10954_p13), %s10193_s0, 0 }
 0x13a   : > { %1023 = sbr.rel (%p10954_p13) target bundleno = 8519 (0x2147), region = 144 }
 0x141   : > { %9896 = dma.done.wait (%p10955_p1), [#allocation4], 32768   ;;  %p10956_p0 = pmov %p10955_p1 }
 0x143   : > { %9898 = vsyncadd (%p10956_p0), [#allocation4], 4294934528  ;;  %p10957_p6 = pmov %p10956_p0 }
 0x144   : > { %p10958_p5 = pmov %p10956_p0 }
 0x145   : > { %9900 = dma.done.wait (%p10957_p6), [#allocation7], 10240  }
 0x146   : > { %9902 = vsyncadd (%p10958_p5), [#allocation7], 4294957056  ;;  %p10959_p9 = pmov %p10956_p0 }
 0x147   : > { %p10960_p12 = pmov %p10956_p0 }
 0x148   : > { %9904 = dma.done.wait (%p10959_p9), [#allocation10], 8192  }
 0x149   : > { %9906 = vsyncadd (%p10960_p12), [#allocation10], 4294959104  ;;  %p10961_p10 = pmov %p10956_p0 }
 0x14a   : > { %p10962_p2 = pmov %p10956_p0 }
 0x14b   : > { %9908 = dma.done.wait (%p10961_p10), [#allocation13], 8192  }
 0x14c   : > { %9910 = vsyncadd (%p10962_p2), [#allocation13], 4294959104  ;;  %p10963_p3 = pmov %p10956_p0 }
 0x14d   : > { %p10964_p4 = pmov %p10956_p0 }
 0x14e   : > { %9912 = dma.done.wait (%p10963_p3), [#allocation16], 2048  }
 0x14f   : > { %9914 = vsyncadd (%p10964_p4), [#allocation16], 4294965248  ;;  %p10965_p7 = pmov %p10956_p0 }
 0x150   : > { %p10966_p8 = pmov %p10956_p0 }
 0x151   : > { %9916 = dma.done.wait (%p10965_p7), [#allocation19], 1024  }
 0x152   : > { %9918 = vsyncadd (%p10966_p8), [#allocation19], 4294966272  ;;  %v8753_v0 = vld [vmem:[#allocation3 + $0x4] ss:$16 sps:$4 sm:$0xff]   ;;  %v8755_v1 = vld [vmem:[#allocation3 + $0xc] ss:$16 sps:$4 sm:$0xff]  }
 0x153   : > { %2732 = vmatprep.subr.bf16.mxu0 %v8753_v0  ;;  %v8757_v2 = vld [vmem:[#allocation3] ss:$16 sps:$4 sm:$0xff]   ;;  %v8758_v3 = vld [vmem:[#allocation3 + $0x8] ss:$16 sps:$4 sm:$0xff]   ;;  %2896 = vmatprep.subr.bf16.mxu1 %v8755_v1  ;;  %v8759_v4 = vld [vmem:[#allocation3 + $0x24] ss:$16 sps:$4 sm:$0xff]  }
 0x154   : > { %2733 = vmatpush1.bf16.msra.mxu0 %v8757_v2  ;;  %2897 = vmatpush1.bf16.msra.mxu1 %v8758_v3  ;;  %v8761_v5 = vld [vmem:[#allocation3 + $0x2c] ss:$16 sps:$4 sm:$0xff]   ;;  %v8763_v6 = vld [vmem:[#allocation3 + $0x20] ss:$16 sps:$4 sm:$0xff]   ;;  %v8764_v7 = vld [vmem:[#allocation3 + $0x28] ss:$16 sps:$4 sm:$0xff]  }
 0x155   : > { %2734 = vmatprep.subr.bf16.mxu0 %v8759_v4  ;;  %2898 = vmatprep.subr.bf16.mxu1 %v8761_v5  ;;  %v8765_v8 = vld [vmem:[#allocation3 + $0x44] ss:$16 sps:$4 sm:$0xff]   ;;  %v8767_v9 = vld [vmem:[#allocation3 + $0x4c] ss:$16 sps:$4 sm:$0xff]   ;;  %v8769_v10 = vld [vmem:[#allocation3 + $0x40] ss:$16 sps:$4 sm:$0xff]  }
 0x156   : > { %v8770_v11 = vld [vmem:[#allocation3 + $0x48] ss:$16 sps:$4 sm:$0xff]   ;;  %v8771_v12 = vld [vmem:[#allocation3 + $0x64] ss:$16 sps:$4 sm:$0xff]   ;;  %v8773_v13 = vld [vmem:[#allocation3 + $0x6c] ss:$16 sps:$4 sm:$0xff]  }
 0x157   : > { %v8775_v14 = vld [vmem:[#allocation3 + $0x60] ss:$16 sps:$4 sm:$0xff]   ;;  %v8776_v15 = vld [vmem:[#allocation3 + $0x68] ss:$16 sps:$4 sm:$0xff]   ;;  %v8777_v16 = vld [vmem:[#allocation3 + $0x84] ss:$16 sps:$4 sm:$0xff]  }
 0x158   : > { %2735 = vmatpush1.bf16.msra.mxu0 %v8763_v6  ;;  %2899 = vmatpush1.bf16.msra.mxu1 %v8764_v7  ;;  %v8779_v17 = vld [vmem:[#allocation3 + $0x8c] ss:$16 sps:$4 sm:$0xff]   ;;  %v8781_v18 = vld [vmem:[#allocation3 + $0x80] ss:$16 sps:$4 sm:$0xff]   ;;  %v8782_v19 = vld [vmem:[#allocation3 + $0x88] ss:$16 sps:$4 sm:$0xff]  }
 0x159   : > { %2736 = vmatprep.subr.bf16.mxu0 %v8765_v8  ;;  %2900 = vmatprep.subr.bf16.mxu1 %v8767_v9  ;;  %v8783_v20 = vld [vmem:[#allocation3 + $0xa4] ss:$16 sps:$4 sm:$0xff]   ;;  %v8785_v21 = vld [vmem:[#allocation3 + $0xac] ss:$16 sps:$4 sm:$0xff]   ;;  %v8787_v22 = vld [vmem:[#allocation3 + $0xa0] ss:$16 sps:$4 sm:$0xff]  }
 0x15a   : > { %v8788_v23 = vld [vmem:[#allocation3 + $0xa8] ss:$16 sps:$4 sm:$0xff]   ;;  %v8789_v24 = vld [vmem:[#allocation3 + $0xc4] ss:$16 sps:$4 sm:$0xff]   ;;  %v8791_v25 = vld [vmem:[#allocation3 + $0xcc] ss:$16 sps:$4 sm:$0xff]  }
 0x15b   : > { %v8793_v26 = vld [vmem:[#allocation3 + $0xc0] ss:$16 sps:$4 sm:$0xff]   ;;  %v8794_v27 = vld [vmem:[#allocation3 + $0xc8] ss:$16 sps:$4 sm:$0xff]   ;;  %v8795_v28 = vld [vmem:[#allocation3 + $0xe4] ss:$16 sps:$4 sm:$0xff]  }
 0x15c   : > { %2737 = vmatpush1.bf16.msra.mxu0 %v8769_v10  ;;  %2901 = vmatpush1.bf16.msra.mxu1 %v8770_v11  ;;  %v8797_v29 = vld [vmem:[#allocation3 + $0xec] ss:$16 sps:$4 sm:$0xff]   ;;  %v8799_v30 = vld [vmem:[#allocation3 + $0xe0] ss:$16 sps:$4 sm:$0xff]   ;;  %v8800_v31 = vld [vmem:[#allocation3 + $0xe8] ss:$16 sps:$4 sm:$0xff]  }
 0x15d   : > { %2738 = vmatprep.subr.bf16.mxu0 %v8771_v12  ;;  %2902 = vmatprep.subr.bf16.mxu1 %v8773_v13  ;;  %v8801_v32 = vld [vmem:[#allocation3 + $0x104] ss:$16 sps:$4 sm:$0xff]   ;;  %p1148_p11 = scmp.lt.s32.totalorder %s10193_s0, 1  ;;  %v8803_v33 = vld [vmem:[#allocation3 + $0x10c] ss:$16 sps:$4 sm:$0xff]   ;;  %s10967_s5 = sld [smem:[#allocation31_spill]] }
 0x15e   : > { %v8805_v34 = vld [vmem:[#allocation3 + $0x100] ss:$16 sps:$4 sm:$0xff]   ;;  %v8806_v35 = vld [vmem:[#allocation3 + $0x108] ss:$16 sps:$4 sm:$0xff]   ;;  %v8807_v36 = vld [vmem:[#allocation3 + $0x124] ss:$16 sps:$4 sm:$0xff]  }
 0x15f   : > { %s10398_s23 = scalar_select %p1148_p11, %s10193_s0, 1  ;;  %v8809_v37 = vld [vmem:[#allocation3 + $0x12c] ss:$16 sps:$4 sm:$0xff]   ;;  %v8811_v38 = vld [vmem:[#allocation3 + $0x120] ss:$16 sps:$4 sm:$0xff]   ;;  %vm3723_vm0 = vcmask 1040384  }
 0x160   : > { %2739 = vmatpush1.bf16.msra.mxu0 %v8775_v14  ;;  %2903 = vmatpush1.bf16.msra.mxu1 %v8776_v15  ;;  %v8812_v39 = vld [vmem:[#allocation3 + $0x128] ss:$16 sps:$4 sm:$0xff]   ;;  %v8813_v40 = vld [vmem:[#allocation3 + $0x144] ss:$16 sps:$4 sm:$0xff]   ;;  %v8815_v41 = vld [vmem:[#allocation3 + $0x14c] ss:$16 sps:$4 sm:$0xff]  }
 0x161   : > { %2740 = vmatprep.subr.bf16.mxu0 %v8777_v16  ;;  %2904 = vmatprep.subr.bf16.mxu1 %v8779_v17  ;;  %s8025_s26 = sshll.u32 %s10398_s23, 6  ;;  %v8817_v42 = vld [vmem:[#allocation3 + $0x140] ss:$16 sps:$4 sm:$0xff]   ;;  %v8818_v43 = vld [vmem:[#allocation3 + $0x148] ss:$16 sps:$4 sm:$0xff]   ;;  %s10968_s3 = sld [smem:[#allocation34_spill]] }
 0x162   : > { %v8819_v44 = vld [vmem:[#allocation3 + $0x164] ss:$16 sps:$4 sm:$0xff]   ;;  %v8821_v45 = vld [vmem:[#allocation3 + $0x16c] ss:$16 sps:$4 sm:$0xff]   ;;  %v8823_v47 = vld [vmem:[#allocation3 + $0x160] ss:$16 sps:$4 sm:$0xff]  }
 0x163   : > { %s10402_s16 = scalar_lea.vmem %s10967_s5, %s8025_s26  ;;  %v8824_v49 = vld [vmem:[#allocation3 + $0x168] ss:$16 sps:$4 sm:$0xff]   ;;  %v8825_v50 = vld [vmem:[#allocation3 + $0x184] ss:$16 sps:$4 sm:$0xff]   ;;  %v8827_v51 = vld [vmem:[#allocation3 + $0x18c] ss:$16 sps:$4 sm:$0xff]  }
 0x164   : > { %2741 = vmatpush1.bf16.msra.mxu0 %v8781_v18  ;;  %2905 = vmatpush1.bf16.msra.mxu1 %v8782_v19  ;;  %v1159_v46 = vld [vmem:[%s10402_s16 + $0x8] sm:$0xff]  ;;  %v8829_v52 = vld [vmem:[#allocation3 + $0x180] ss:$16 sps:$4 sm:$0xff]   ;;  %v8831_v54 = vld [vmem:[#allocation3 + $0x1a4] ss:$16 sps:$4 sm:$0xff]   ;;  %s10969_s30 = sld [smem:[#allocation35_spill]] }
 0x165   : > { %2742 = vmatprep.subr.bf16.mxu0 %v8783_v20  ;;  %2906 = vmatprep.subr.bf16.mxu1 %v8785_v21  ;;  %v1423_v48 = vpack.c.bf16 %v1159_v46, %v1159_v46  ;;  %v8830_v53 = vld [vmem:[#allocation3 + $0x188] ss:$16 sps:$4 sm:$0xff]   ;;  %v8833_v55 = vld [vmem:[#allocation3 + $0x1ac] ss:$16 sps:$4 sm:$0xff]   ;;  %v8835_v56 = vld [vmem:[#allocation3 + $0x1a0] ss:$16 sps:$4 sm:$0xff]  }
 0x166   : > { %v8836_v57 = vld [vmem:[#allocation3 + $0x1a8] ss:$16 sps:$4 sm:$0xff]   ;;  %v8837_v58 = vld [vmem:[#allocation3 + $0x1c4] ss:$16 sps:$4 sm:$0xff]   ;;  %v8839_v59 = vld [vmem:[#allocation3 + $0x1cc] ss:$16 sps:$4 sm:$0xff]  }
 0x167   : > { %2764 = vmatprep.mubr.bf16.mxu0 %v1423_v48  ;;  %2928 = vmatprep.mubr.bf16.mxu1 %v1423_v48  ;;  %v8841_v60 = vld [vmem:[#allocation3 + $0x1c0] ss:$16 sps:$4 sm:$0xff]   ;;  %v8842_v61 = vld [vmem:[#allocation3 + $0x1c8] ss:$16 sps:$4 sm:$0xff]   ;;  %v8843_v62 = vld [vmem:[#allocation3 + $0x1e4] ss:$16 sps:$4 sm:$0xff]  }
 0x168   : > { %2743 = vmatpush1.bf16.msra.mxu0 %v8787_v22  ;;  %2907 = vmatpush1.bf16.msra.mxu1 %v8788_v23  ;;  %v8845_v63 = vld [vmem:[#allocation3 + $0x1ec] ss:$16 sps:$4 sm:$0xff]   ;;  %v8847_v0 = vld [vmem:[#allocation3 + $0x1e0] ss:$16 sps:$4 sm:$0xff]   ;;  %v8848_v1 = vld [vmem:[#allocation3 + $0x1e8] ss:$16 sps:$4 sm:$0xff]  }
 0x169   : > { %2744 = vmatprep.subr.bf16.mxu0 %v8789_v24  ;;  %2908 = vmatprep.subr.bf16.mxu1 %v8791_v25  ;;  %v1158_v2 = vld [vmem:[%s10402_s16] sm:$0xff]  ;;  %v8854_v4 = vld [vmem:[#allocation3 + $0x20c] ss:$16 sps:$4 sm:$0xff]   ;;  %v8852_v7 = vld [vmem:[#allocation3 + $0x208] ss:$16 sps:$4 sm:$0xff]   ;;  %s10970_s21 = sld [smem:[#allocation36_spill]] }
 0x16a   : > { %v8851_v3 = vld [vmem:[#allocation3 + $0x204] ss:$16 sps:$4 sm:$0xff]   ;;  %v1422_v5 = vpack.c.bf16 %v1158_v2, %v1158_v2  ;;  %v8849_v6 = vld [vmem:[#allocation3 + $0x200] ss:$16 sps:$4 sm:$0xff]   ;;  %v8860_v9 = vld [vmem:[#allocation3 + $0x22c] ss:$16 sps:$4 sm:$0xff]  }
 0x16b   : > { %v8857_v8 = vld [vmem:[#allocation3 + $0x224] ss:$16 sps:$4 sm:$0xff]   ;;  %v8855_v10 = vld [vmem:[#allocation3 + $0x220] ss:$16 sps:$4 sm:$0xff]   ;;  %v8858_v11 = vld [vmem:[#allocation3 + $0x228] ss:$16 sps:$4 sm:$0xff]  }
 0x16c   : > { %2745 = vmatpush1.bf16.msra.mxu0 %v8793_v26  ;;  %2909 = vmatpush1.bf16.msra.mxu1 %v8794_v27  ;;  %v8863_v12 = vld [vmem:[#allocation3 + $0x244] ss:$16 sps:$4 sm:$0xff]   ;;  %v8866_v13 = vld [vmem:[#allocation3 + $0x24c] ss:$16 sps:$4 sm:$0xff]   ;;  %v8861_v14 = vld [vmem:[#allocation3 + $0x240] ss:$16 sps:$4 sm:$0xff]  }
 0x16d   : > { %2746 = vmatprep.subr.bf16.mxu0 %v8795_v28  ;;  %2910 = vmatprep.subr.bf16.mxu1 %v8797_v29  ;;  %v8864_v15 = vld [vmem:[#allocation3 + $0x248] ss:$16 sps:$4 sm:$0xff]   ;;  %v8869_v16 = vld [vmem:[#allocation3 + $0x264] ss:$16 sps:$4 sm:$0xff]   ;;  %v8872_v17 = vld [vmem:[#allocation3 + $0x26c] ss:$16 sps:$4 sm:$0xff]  }
 0x16e   : > { %v8867_v18 = vld [vmem:[#allocation3 + $0x260] ss:$16 sps:$4 sm:$0xff]   ;;  %v8870_v19 = vld [vmem:[#allocation3 + $0x268] ss:$16 sps:$4 sm:$0xff]   ;;  %v8875_v20 = vld [vmem:[#allocation3 + $0x284] ss:$16 sps:$4 sm:$0xff]  }
 0x16f   : > { %v8878_v21 = vld [vmem:[#allocation3 + $0x28c] ss:$16 sps:$4 sm:$0xff]   ;;  %v8873_v22 = vld [vmem:[#allocation3 + $0x280] ss:$16 sps:$4 sm:$0xff]   ;;  %v8876_v23 = vld [vmem:[#allocation3 + $0x288] ss:$16 sps:$4 sm:$0xff]  }
 0x170   : > { %2747 = vmatpush1.bf16.msra.mxu0 %v8799_v30  ;;  %2911 = vmatpush1.bf16.msra.mxu1 %v8800_v31  ;;  %v8881_v24 = vld [vmem:[#allocation3 + $0x2a4] ss:$16 sps:$4 sm:$0xff]   ;;  %v8884_v25 = vld [vmem:[#allocation3 + $0x2ac] ss:$16 sps:$4 sm:$0xff]   ;;  %v8879_v26 = vld [vmem:[#allocation3 + $0x2a0] ss:$16 sps:$4 sm:$0xff]  }
 0x171   : > { %2748 = vmatprep.subr.bf16.mxu0 %v8801_v32  ;;  %2912 = vmatprep.subr.bf16.mxu1 %v8803_v33  ;;  %v8882_v27 = vld [vmem:[#allocation3 + $0x2a8] ss:$16 sps:$4 sm:$0xff]   ;;  %v8887_v28 = vld [vmem:[#allocation3 + $0x2c4] ss:$16 sps:$4 sm:$0xff]   ;;  %v8890_v29 = vld [vmem:[#allocation3 + $0x2cc] ss:$16 sps:$4 sm:$0xff]  }
 0x172   : > { %v1161_v30 = vld [vmem:[%s10402_s16 + $0x18] sm:$0xff]  ;;  %v8885_v31 = vld [vmem:[#allocation3 + $0x2c0] ss:$16 sps:$4 sm:$0xff]   ;;  %v8911_v46 = vld [vmem:[#allocation3 + $0x344] ss:$16 sps:$4 sm:$0xff]   ;;  %vm9995_vm1 = vmmov 0  }
 0x173   : > { %v1425_v32 = vpack.c.bf16 %v1161_v30, %v1161_v30  ;;  %v8888_v33 = vld [vmem:[#allocation3 + $0x2c8] ss:$16 sps:$4 sm:$0xff]   ;;  %v8909_v48 = vld [vmem:[#allocation3 + $0x340] ss:$16 sps:$4 sm:$0xff]   ;;  %v8941_v2 = vld [vmem:[#allocation3 + $0x3e4] ss:$16 sps:$4 sm:$0xff]  }
 0x174   : > { %2749 = vmatpush1.bf16.msra.mxu0 %v8805_v34  ;;  %2913 = vmatpush1.bf16.msra.mxu1 %v8806_v35  ;;  %v8893_v34 = vld [vmem:[#allocation3 + $0x2e4] ss:$16 sps:$4 sm:$0xff]   ;;  %v8896_v35 = vld [vmem:[#allocation3 + $0x2ec] ss:$16 sps:$4 sm:$0xff]   ;;  %s10971_s7 = sld [smem:[#allocation37_spill]]  ;;  %s10973_s28 = sld [smem:[#allocation39_spill]] }
 0x175   : > { %2750 = vmatprep.subr.bf16.mxu0 %v8807_v36  ;;  %2914 = vmatprep.subr.bf16.mxu1 %v8809_v37  ;;  %v8891_v36 = vld [vmem:[#allocation3 + $0x2e0] ss:$16 sps:$4 sm:$0xff]   ;;  %v8894_v37 = vld [vmem:[#allocation3 + $0x2e8] ss:$16 sps:$4 sm:$0xff]   ;;  %v8977_v30 = vld [vmem:[#allocation3 + $0x4a4] ss:$16 sps:$4 sm:$0xff]  }
 0x176   : > { %vm4145_vm2 = vcmask 1043456   ;;  %vm4146_vm3 = vcmask 1044480   ;;  %vm4069_vm4 = vcmask 261120   ;;  %vm4116_vm5 = vcmask 72704   ;;  %s10908_s18 = smov 96   ;;  %s9998_s2 = smov 64  }
 0x177   : > { %vm4120_vm6 = vcmask 65536   ;;  %s10906_s15 = smov 32   ;;  %vm4194_vm7 = vcmask 253952   ;;  %vm4368_vm8 = vcmask 523520   ;;  %vm4370_vm9 = vcmask 516352   ;;  %s10975_s26 = sld [smem:[#allocation40_spill]] }
 0x178   : > { %2751 = vmatpush1.bf16.msra.mxu0 %v8811_v38  ;;  %2915 = vmatpush1.bf16.msra.mxu1 %v8812_v39  ;;  %v8899_v38 = vld [vmem:[#allocation3 + $0x304] ss:$16 sps:$4 sm:$0xff]   ;;  %v8902_v39 = vld [vmem:[#allocation3 + $0x30c] ss:$16 sps:$4 sm:$0xff]   ;;  %vm4540_vm10 = vcmask 785920   ;;  %vm4542_vm11 = vcmask 778752  }
 0x179   : > { %2752 = vmatprep.subr.bf16.mxu0 %v8813_v40  ;;  %2916 = vmatprep.subr.bf16.mxu1 %v8815_v41  ;;  %v8897_v40 = vld [vmem:[#allocation3 + $0x300] ss:$16 sps:$4 sm:$0xff]   ;;  %v8900_v41 = vld [vmem:[#allocation3 + $0x308] ss:$16 sps:$4 sm:$0xff]   ;;  %vm4712_vm12 = vcmask 1048320   ;;  %vm4714_vm13 = vcmask 1041152  }
 0x17a   : > { %s10972_s11 = smov %s10971_s7  ;;  %s10974_s10 = smov %s10973_s28  ;;  %vm6920_vm14 = vcmask 1047553   ;;  %vm6947_vm15 = vcmask 1046528  }
 0x17b   : > { %p10990_p1 = scmp.ne.s32.totalorder %s10944_s22, 0  ;;  %s10000_s9 = smov [#allocation20]  }
 0x17c   : > { %2753 = vmatpush1.bf16.msra.mxu0 %v8817_v42  ;;  %2917 = vmatpush1.bf16.msra.mxu1 %v8818_v43  ;;  %v8905_v42 = vld [vmem:[#allocation3 + $0x324] ss:$16 sps:$4 sm:$0xff]   ;;  %v8908_v43 = vld [vmem:[#allocation3 + $0x32c] ss:$16 sps:$4 sm:$0xff]  }
 0x17d   : > { %2754 = vmatprep.subr.bf16.mxu0 %v8819_v44  ;;  %2918 = vmatprep.subr.bf16.mxu1 %v8821_v45  ;;  %v8903_v44 = vld [vmem:[#allocation3 + $0x320] ss:$16 sps:$4 sm:$0xff]   ;;  %v8906_v45 = vld [vmem:[#allocation3 + $0x328] ss:$16 sps:$4 sm:$0xff]  }
 0x180   : > { %2755 = vmatpush1.bf16.msra.mxu0 %v8823_v47  ;;  %2919 = vmatpush1.bf16.msra.mxu1 %v8824_v49  ;;  %v8914_v47 = vld [vmem:[#allocation3 + $0x34c] ss:$16 sps:$4 sm:$0xff]   ;;  %v8912_v49 = vld [vmem:[#allocation3 + $0x348] ss:$16 sps:$4 sm:$0xff]  }
 0x181   : > { %2756 = vmatprep.subr.bf16.mxu0 %v8825_v50  ;;  %2920 = vmatprep.subr.bf16.mxu1 %v8827_v51  ;;  %v8917_v50 = vld [vmem:[#allocation3 + $0x364] ss:$16 sps:$4 sm:$0xff]   ;;  %v8920_v51 = vld [vmem:[#allocation3 + $0x36c] ss:$16 sps:$4 sm:$0xff]  }
 0x184   : > { %2757 = vmatpush1.bf16.msra.mxu0 %v8829_v52  ;;  %2921 = vmatpush1.bf16.msra.mxu1 %v8830_v53  ;;  %v8915_v52 = vld [vmem:[#allocation3 + $0x360] ss:$16 sps:$4 sm:$0xff]   ;;  %v8918_v53 = vld [vmem:[#allocation3 + $0x368] ss:$16 sps:$4 sm:$0xff]  }
 0x185   : > { %2758 = vmatprep.subr.bf16.mxu0 %v8831_v54  ;;  %2922 = vmatprep.subr.bf16.mxu1 %v8833_v55  ;;  %v8923_v54 = vld [vmem:[#allocation3 + $0x384] ss:$16 sps:$4 sm:$0xff]   ;;  %v8926_v55 = vld [vmem:[#allocation3 + $0x38c] ss:$16 sps:$4 sm:$0xff]  }
 0x188   : > { %2759 = vmatpush1.bf16.msra.mxu0 %v8835_v56  ;;  %2923 = vmatpush1.bf16.msra.mxu1 %v8836_v57  ;;  %v8921_v56 = vld [vmem:[#allocation3 + $0x380] ss:$16 sps:$4 sm:$0xff]   ;;  %v8924_v57 = vld [vmem:[#allocation3 + $0x388] ss:$16 sps:$4 sm:$0xff]  }
 0x189   : > { %2760 = vmatprep.subr.bf16.mxu0 %v8837_v58  ;;  %2924 = vmatprep.subr.bf16.mxu1 %v8839_v59  ;;  %v8929_v58 = vld [vmem:[#allocation3 + $0x3a4] ss:$16 sps:$4 sm:$0xff]   ;;  %v8932_v59 = vld [vmem:[#allocation3 + $0x3ac] ss:$16 sps:$4 sm:$0xff]  }
 0x18c   : > { %2761 = vmatpush1.bf16.msra.mxu0 %v8841_v60  ;;  %2925 = vmatpush1.bf16.msra.mxu1 %v8842_v61  ;;  %v8927_v60 = vld [vmem:[#allocation3 + $0x3a0] ss:$16 sps:$4 sm:$0xff]   ;;  %v8930_v61 = vld [vmem:[#allocation3 + $0x3a8] ss:$16 sps:$4 sm:$0xff]  }
 0x18d   : > { %2762 = vmatprep.subr.bf16.mxu0 %v8843_v62  ;;  %2926 = vmatprep.subr.bf16.mxu1 %v8845_v63  ;;  %v8935_v62 = vld [vmem:[#allocation3 + $0x3c4] ss:$16 sps:$4 sm:$0xff]   ;;  %v8938_v63 = vld [vmem:[#allocation3 + $0x3cc] ss:$16 sps:$4 sm:$0xff]  }
 0x190   : > { %2763 = vmatpush1.bf16.msra.mxu0 %v8847_v0  ;;  %2927 = vmatpush1.bf16.msra.mxu1 %v8848_v1  ;;  %v8933_v0 = vld [vmem:[#allocation3 + $0x3c0] ss:$16 sps:$4 sm:$0xff]   ;;  %v8936_v1 = vld [vmem:[#allocation3 + $0x3c8] ss:$16 sps:$4 sm:$0xff]  }
 0x191   : > { %2773 = vmatprep.subr.bf16.mxu0 %v8851_v3  ;;  %2937 = vmatprep.subr.bf16.mxu1 %v8854_v4  ;;  %v8944_v3 = vld [vmem:[#allocation3 + $0x3ec] ss:$16 sps:$4 sm:$0xff]   ;;  %v8939_v4 = vld [vmem:[#allocation3 + $0x3e0] ss:$16 sps:$4 sm:$0xff]  }
 0x193   : > { %2765 = vmatmul.mubr.bf16.vlgmr.msra.gmra.mrb[0].mxu0 %v1422_v5  ;;  %2929 = vmatmul.mubr.bf16.vlgmr.msra.gmra.mrb[0].mxu1 %v1422_v5  ;;  %v8942_v5 = vld [vmem:[#allocation3 + $0x3e8] ss:$16 sps:$4 sm:$0xff]  }
 0x194   : > { %2774 = vmatpush1.bf16.msra.mxu0 %v8849_v6  ;;  %2938 = vmatpush1.bf16.msra.mxu1 %v8852_v7  ;;  %v8947_v6 = vld [vmem:[#allocation3 + $0x404] ss:$16 sps:$4 sm:$0xff]  }
 0x195   : > { %2775 = vmatprep.subr.bf16.mxu0 %v8857_v8  ;;  %2939 = vmatprep.subr.bf16.mxu1 %v8860_v9  ;;  %v1160_v7 = vld [vmem:[%s10402_s16 + $0x10] sm:$0xff]  ;;  %v8950_v8 = vld [vmem:[#allocation3 + $0x40c] ss:$16 sps:$4 sm:$0xff]  }
 0x196   : > { %2805 = vmatprep.mubr.bf16.mxu0 %v1425_v32  ;;  %2969 = vmatprep.mubr.bf16.mxu1 %v1425_v32  ;;  %v8945_v9 = vld [vmem:[#allocation3 + $0x400] ss:$16 sps:$4 sm:$0xff]  }
 0x197   : > { %v8975_v32 = vld [vmem:[#allocation3 + $0x4a0] ss:$16 sps:$4 sm:$0xff]  }
 0x198   : > { %2776 = vmatpush1.bf16.msra.mxu0 %v8855_v10  ;;  %2940 = vmatpush1.bf16.msra.mxu1 %v8858_v11  ;;  %v8948_v10 = vld [vmem:[#allocation3 + $0x408] ss:$16 sps:$4 sm:$0xff]   ;;  %v1424_v11 = vpack.c.bf16 %v1160_v7, %v1160_v7  ;;  %v9040_v7 = vld [vmem:[#allocation3 + $0x5ec] ss:$16 sps:$4 sm:$0xff]  }
 0x199   : > { %2777 = vmatprep.subr.bf16.mxu0 %v8863_v12  ;;  %2941 = vmatprep.subr.bf16.mxu1 %v8866_v13  ;;  %v8953_v12 = vld [vmem:[#allocation3 + $0x424] ss:$16 sps:$4 sm:$0xff]   ;;  %v8956_v13 = vld [vmem:[#allocation3 + $0x42c] ss:$16 sps:$4 sm:$0xff]  }
 0x19c   : > { %2778 = vmatpush1.bf16.msra.mxu0 %v8861_v14  ;;  %2942 = vmatpush1.bf16.msra.mxu1 %v8864_v15  ;;  %v1163_v14 = vld [vmem:[%s10402_s16 + $0x28] sm:$0xff] }
 0x19d   : > { %2779 = vmatprep.subr.bf16.mxu0 %v8869_v16  ;;  %2943 = vmatprep.subr.bf16.mxu1 %v8872_v17  ;;  %v1427_v15 = vpack.c.bf16 %v1163_v14, %v1163_v14  ;;  %v8951_v16 = vld [vmem:[#allocation3 + $0x420] ss:$16 sps:$4 sm:$0xff]   ;;  %v8954_v17 = vld [vmem:[#allocation3 + $0x428] ss:$16 sps:$4 sm:$0xff]  }
 0x1a0   : > { %2780 = vmatpush1.bf16.msra.mxu0 %v8867_v18  ;;  %2944 = vmatpush1.bf16.msra.mxu1 %v8870_v19  ;;  %v8959_v18 = vld [vmem:[#allocation3 + $0x444] ss:$16 sps:$4 sm:$0xff]   ;;  %v8962_v19 = vld [vmem:[#allocation3 + $0x44c] ss:$16 sps:$4 sm:$0xff]  }
 0x1a1   : > { %2781 = vmatprep.subr.bf16.mxu0 %v8875_v20  ;;  %2945 = vmatprep.subr.bf16.mxu1 %v8878_v21  ;;  %v8957_v20 = vld [vmem:[#allocation3 + $0x440] ss:$16 sps:$4 sm:$0xff]   ;;  %v8960_v21 = vld [vmem:[#allocation3 + $0x448] ss:$16 sps:$4 sm:$0xff]  }
 0x1a4   : > { %2782 = vmatpush1.bf16.msra.mxu0 %v8873_v22  ;;  %2946 = vmatpush1.bf16.msra.mxu1 %v8876_v23  ;;  %v8965_v22 = vld [vmem:[#allocation3 + $0x464] ss:$16 sps:$4 sm:$0xff]   ;;  %v8968_v23 = vld [vmem:[#allocation3 + $0x46c] ss:$16 sps:$4 sm:$0xff]  }
 0x1a5   : > { %2783 = vmatprep.subr.bf16.mxu0 %v8881_v24  ;;  %2947 = vmatprep.subr.bf16.mxu1 %v8884_v25  ;;  %v8963_v24 = vld [vmem:[#allocation3 + $0x460] ss:$16 sps:$4 sm:$0xff]   ;;  %v8966_v25 = vld [vmem:[#allocation3 + $0x468] ss:$16 sps:$4 sm:$0xff]  }
 0x1a8   : > { %2784 = vmatpush1.bf16.msra.mxu0 %v8879_v26  ;;  %2948 = vmatpush1.bf16.msra.mxu1 %v8882_v27  ;;  %v8971_v26 = vld [vmem:[#allocation3 + $0x484] ss:$16 sps:$4 sm:$0xff]   ;;  %v8974_v27 = vld [vmem:[#allocation3 + $0x48c] ss:$16 sps:$4 sm:$0xff]  }
 0x1a9   : > { %2785 = vmatprep.subr.bf16.mxu0 %v8887_v28  ;;  %2949 = vmatprep.subr.bf16.mxu1 %v8890_v29  ;;  %v8969_v28 = vld [vmem:[#allocation3 + $0x480] ss:$16 sps:$4 sm:$0xff]   ;;  %v8972_v29 = vld [vmem:[#allocation3 + $0x488] ss:$16 sps:$4 sm:$0xff]  }
 0x1ac   : > { %2786 = vmatpush1.bf16.msra.mxu0 %v8885_v31  ;;  %2950 = vmatpush1.bf16.msra.mxu1 %v8888_v33  ;;  %v8980_v31 = vld [vmem:[#allocation3 + $0x4ac] ss:$16 sps:$4 sm:$0xff]   ;;  %v8978_v33 = vld [vmem:[#allocation3 + $0x4a8] ss:$16 sps:$4 sm:$0xff]  }
 0x1ad   : > { %2787 = vmatprep.subr.bf16.mxu0 %v8893_v34  ;;  %2951 = vmatprep.subr.bf16.mxu1 %v8896_v35  ;;  %v8983_v34 = vld [vmem:[#allocation3 + $0x4c4] ss:$16 sps:$4 sm:$0xff]   ;;  %v8986_v35 = vld [vmem:[#allocation3 + $0x4cc] ss:$16 sps:$4 sm:$0xff]  }
 0x1b0   : > { %2788 = vmatpush1.bf16.msra.mxu0 %v8891_v36  ;;  %2952 = vmatpush1.bf16.msra.mxu1 %v8894_v37  ;;  %v8981_v36 = vld [vmem:[#allocation3 + $0x4c0] ss:$16 sps:$4 sm:$0xff]   ;;  %v8984_v37 = vld [vmem:[#allocation3 + $0x4c8] ss:$16 sps:$4 sm:$0xff]  }
 0x1b1   : > { %2789 = vmatprep.subr.bf16.mxu0 %v8899_v38  ;;  %2953 = vmatprep.subr.bf16.mxu1 %v8902_v39  ;;  %v8989_v38 = vld [vmem:[#allocation3 + $0x4e4] ss:$16 sps:$4 sm:$0xff]   ;;  %v8992_v39 = vld [vmem:[#allocation3 + $0x4ec] ss:$16 sps:$4 sm:$0xff]  }
 0x1b4   : > { %2790 = vmatpush1.bf16.msra.mxu0 %v8897_v40  ;;  %2954 = vmatpush1.bf16.msra.mxu1 %v8900_v41  ;;  %v8987_v40 = vld [vmem:[#allocation3 + $0x4e0] ss:$16 sps:$4 sm:$0xff]   ;;  %v8990_v41 = vld [vmem:[#allocation3 + $0x4e8] ss:$16 sps:$4 sm:$0xff]  }
 0x1b5   : > { %2791 = vmatprep.subr.bf16.mxu0 %v8905_v42  ;;  %2955 = vmatprep.subr.bf16.mxu1 %v8908_v43  ;;  %v8995_v42 = vld [vmem:[#allocation3 + $0x504] ss:$16 sps:$4 sm:$0xff]   ;;  %v8998_v43 = vld [vmem:[#allocation3 + $0x50c] ss:$16 sps:$4 sm:$0xff]  }
 0x1b8   : > { %2792 = vmatpush1.bf16.msra.mxu0 %v8903_v44  ;;  %2956 = vmatpush1.bf16.msra.mxu1 %v8906_v45  ;;  %v8993_v44 = vld [vmem:[#allocation3 + $0x500] ss:$16 sps:$4 sm:$0xff]   ;;  %v8996_v45 = vld [vmem:[#allocation3 + $0x508] ss:$16 sps:$4 sm:$0xff]  }
 0x1b9   : > { %2793 = vmatprep.subr.bf16.mxu0 %v8911_v46  ;;  %2957 = vmatprep.subr.bf16.mxu1 %v8914_v47  ;;  %v9001_v46 = vld [vmem:[#allocation3 + $0x524] ss:$16 sps:$4 sm:$0xff]   ;;  %v9004_v47 = vld [vmem:[#allocation3 + $0x52c] ss:$16 sps:$4 sm:$0xff]  }
 0x1bc   : > { %2794 = vmatpush1.bf16.msra.mxu0 %v8909_v48  ;;  %2958 = vmatpush1.bf16.msra.mxu1 %v8912_v49  ;;  %v8999_v48 = vld [vmem:[#allocation3 + $0x520] ss:$16 sps:$4 sm:$0xff]   ;;  %v9002_v49 = vld [vmem:[#allocation3 + $0x528] ss:$16 sps:$4 sm:$0xff]  }
 0x1bd   : > { %2795 = vmatprep.subr.bf16.mxu0 %v8917_v50  ;;  %2959 = vmatprep.subr.bf16.mxu1 %v8920_v51  ;;  %v9007_v50 = vld [vmem:[#allocation3 + $0x544] ss:$16 sps:$4 sm:$0xff]   ;;  %v9010_v51 = vld [vmem:[#allocation3 + $0x54c] ss:$16 sps:$4 sm:$0xff]  }
 0x1c0   : > { %2796 = vmatpush1.bf16.msra.mxu0 %v8915_v52  ;;  %2960 = vmatpush1.bf16.msra.mxu1 %v8918_v53  ;;  %v9005_v52 = vld [vmem:[#allocation3 + $0x540] ss:$16 sps:$4 sm:$0xff]   ;;  %v9008_v53 = vld [vmem:[#allocation3 + $0x548] ss:$16 sps:$4 sm:$0xff]  }
 0x1c1   : > { %2797 = vmatprep.subr.bf16.mxu0 %v8923_v54  ;;  %2961 = vmatprep.subr.bf16.mxu1 %v8926_v55  ;;  %v9013_v54 = vld [vmem:[#allocation3 + $0x564] ss:$16 sps:$4 sm:$0xff]   ;;  %v9016_v55 = vld [vmem:[#allocation3 + $0x56c] ss:$16 sps:$4 sm:$0xff]  }
 0x1c4   : > { %2798 = vmatpush1.bf16.msra.mxu0 %v8921_v56  ;;  %2962 = vmatpush1.bf16.msra.mxu1 %v8924_v57  ;;  %v9011_v56 = vld [vmem:[#allocation3 + $0x560] ss:$16 sps:$4 sm:$0xff]   ;;  %v9014_v57 = vld [vmem:[#allocation3 + $0x568] ss:$16 sps:$4 sm:$0xff]  }
 0x1c5   : > { %2799 = vmatprep.subr.bf16.mxu0 %v8929_v58  ;;  %2963 = vmatprep.subr.bf16.mxu1 %v8932_v59  ;;  %v9019_v58 = vld [vmem:[#allocation3 + $0x584] ss:$16 sps:$4 sm:$0xff]   ;;  %v9022_v59 = vld [vmem:[#allocation3 + $0x58c] ss:$16 sps:$4 sm:$0xff]  }
 0x1c8   : > { %2800 = vmatpush1.bf16.msra.mxu0 %v8927_v60  ;;  %2964 = vmatpush1.bf16.msra.mxu1 %v8930_v61  ;;  %v9017_v60 = vld [vmem:[#allocation3 + $0x580] ss:$16 sps:$4 sm:$0xff]   ;;  %v9020_v61 = vld [vmem:[#allocation3 + $0x588] ss:$16 sps:$4 sm:$0xff]  }
 0x1c9   : > { %2801 = vmatprep.subr.bf16.mxu0 %v8935_v62  ;;  %2965 = vmatprep.subr.bf16.mxu1 %v8938_v63  ;;  %v9025_v62 = vld [vmem:[#allocation3 + $0x5a4] ss:$16 sps:$4 sm:$0xff]   ;;  %v9028_v63 = vld [vmem:[#allocation3 + $0x5ac] ss:$16 sps:$4 sm:$0xff]  }
 0x1cc   : > { %2802 = vmatpush1.bf16.msra.mxu0 %v8933_v0  ;;  %2966 = vmatpush1.bf16.msra.mxu1 %v8936_v1  ;;  %v9023_v0 = vld [vmem:[#allocation3 + $0x5a0] ss:$16 sps:$4 sm:$0xff]   ;;  %v9026_v1 = vld [vmem:[#allocation3 + $0x5a8] ss:$16 sps:$4 sm:$0xff]  }
 0x1cd   : > { %2803 = vmatprep.subr.bf16.mxu0 %v8941_v2  ;;  %2967 = vmatprep.subr.bf16.mxu1 %v8944_v3  ;;  %v9031_v2 = vld [vmem:[#allocation3 + $0x5c4] ss:$16 sps:$4 sm:$0xff]   ;;  %v9034_v3 = vld [vmem:[#allocation3 + $0x5cc] ss:$16 sps:$4 sm:$0xff]  }
 0x1d0   : > { %2804 = vmatpush1.bf16.msra.mxu0 %v8939_v4  ;;  %2968 = vmatpush1.bf16.msra.mxu1 %v8942_v5  ;;  %v9029_v4 = vld [vmem:[#allocation3 + $0x5c0] ss:$16 sps:$4 sm:$0xff]   ;;  %v9032_v5 = vld [vmem:[#allocation3 + $0x5c8] ss:$16 sps:$4 sm:$0xff]  }
 0x1d1   : > { %2814 = vmatprep.subr.bf16.mxu0 %v8947_v6  ;;  %2978 = vmatprep.subr.bf16.mxu1 %v8950_v8  ;;  %v9037_v6 = vld [vmem:[#allocation3 + $0x5e4] ss:$16 sps:$4 sm:$0xff]   ;;  %v9035_v8 = vld [vmem:[#allocation3 + $0x5e0] ss:$16 sps:$4 sm:$0xff]  }
 0x1d3   : > { %2806 = vmatmul.mubr.bf16.vlgmr.msra.gmra.mrb[0].mxu0 %v1424_v11  ;;  %2970 = vmatmul.mubr.bf16.vlgmr.msra.gmra.mrb[0].mxu1 %v1424_v11  ;;  %v1162_v11 = vld [vmem:[%s10402_s16 + $0x20] sm:$0xff] }
 0x1d4   : > { %2815 = vmatpush1.bf16.msra.mxu0 %v8945_v9  ;;  %2979 = vmatpush1.bf16.msra.mxu1 %v8948_v10  ;;  %v9038_v9 = vld [vmem:[#allocation3 + $0x5e8] ss:$16 sps:$4 sm:$0xff]   ;;  %v9043_v10 = vld [vmem:[#allocation3 + $0x604] ss:$16 sps:$4 sm:$0xff]   ;;  %v1426_v14 = vpack.c.bf16 %v1162_v11, %v1162_v11  ;;  %v9136_v11 = vld [vmem:[#allocation3 + $0x7ec] ss:$16 sps:$4 sm:$0xff]  }
 0x1d5   : > { %2816 = vmatprep.subr.bf16.mxu0 %v8953_v12  ;;  %2980 = vmatprep.subr.bf16.mxu1 %v8956_v13  ;;  %v9046_v12 = vld [vmem:[#allocation3 + $0x60c] ss:$16 sps:$4 sm:$0xff]   ;;  %v9041_v13 = vld [vmem:[#allocation3 + $0x600] ss:$16 sps:$4 sm:$0xff]  }
 0x1d6   : > { %2846 = vmatprep.mubr.bf16.mxu0 %v1427_v15  ;;  %3010 = vmatprep.mubr.bf16.mxu1 %v1427_v15  ;;  %v1165_v15 = vld [vmem:[%s10402_s16 + $0x38] sm:$0xff] }
 0x1d8   : > { %2817 = vmatpush1.bf16.msra.mxu0 %v8951_v16  ;;  %2981 = vmatpush1.bf16.msra.mxu1 %v8954_v17  ;;  %v9044_v16 = vld [vmem:[#allocation3 + $0x608] ss:$16 sps:$4 sm:$0xff]   ;;  %v9049_v17 = vld [vmem:[#allocation3 + $0x624] ss:$16 sps:$4 sm:$0xff]  }
 0x1d9   : > { %2818 = vmatprep.subr.bf16.mxu0 %v8959_v18  ;;  %2982 = vmatprep.subr.bf16.mxu1 %v8962_v19  ;;  %v9052_v18 = vld [vmem:[#allocation3 + $0x62c] ss:$16 sps:$4 sm:$0xff]   ;;  %v9047_v19 = vld [vmem:[#allocation3 + $0x620] ss:$16 sps:$4 sm:$0xff]  }
 0x1dc   : > { %2819 = vmatpush1.bf16.msra.mxu0 %v8957_v20  ;;  %2983 = vmatpush1.bf16.msra.mxu1 %v8960_v21  ;;  %v9050_v20 = vld [vmem:[#allocation3 + $0x628] ss:$16 sps:$4 sm:$0xff]   ;;  %v1429_v21 = vpack.c.bf16 %v1165_v15, %v1165_v15  ;;  %v9139_v15 = vld [vmem:[#allocation6 + $0x4] ss:$8 sps:$4 sm:$0xff]  }
 0x1dd   : > { %2820 = vmatprep.subr.bf16.mxu0 %v8965_v22  ;;  %2984 = vmatprep.subr.bf16.mxu1 %v8968_v23  ;;  %v9055_v22 = vld [vmem:[#allocation3 + $0x644] ss:$16 sps:$4 sm:$0xff]   ;;  %v9058_v23 = vld [vmem:[#allocation3 + $0x64c] ss:$16 sps:$4 sm:$0xff]  }
 0x1e0   : > { %2821 = vmatpush1.bf16.msra.mxu0 %v8963_v24  ;;  %2985 = vmatpush1.bf16.msra.mxu1 %v8966_v25  ;;  %v9053_v24 = vld [vmem:[#allocation3 + $0x640] ss:$16 sps:$4 sm:$0xff]   ;;  %v9056_v25 = vld [vmem:[#allocation3 + $0x648] ss:$16 sps:$4 sm:$0xff]  }
 0x1e1   : > { %2822 = vmatprep.subr.bf16.mxu0 %v8971_v26  ;;  %2986 = vmatprep.subr.bf16.mxu1 %v8974_v27  ;;  %v9061_v26 = vld [vmem:[#allocation3 + $0x664] ss:$16 sps:$4 sm:$0xff]   ;;  %v9064_v27 = vld [vmem:[#allocation3 + $0x66c] ss:$16 sps:$4 sm:$0xff]  }
 0x1e4   : > { %2823 = vmatpush1.bf16.msra.mxu0 %v8969_v28  ;;  %2987 = vmatpush1.bf16.msra.mxu1 %v8972_v29  ;;  %v9059_v28 = vld [vmem:[#allocation3 + $0x660] ss:$16 sps:$4 sm:$0xff]   ;;  %v9062_v29 = vld [vmem:[#allocation3 + $0x668] ss:$16 sps:$4 sm:$0xff]  }
 0x1e5   : > { %2824 = vmatprep.subr.bf16.mxu0 %v8977_v30  ;;  %2988 = vmatprep.subr.bf16.mxu1 %v8980_v31  ;;  %v9067_v30 = vld [vmem:[#allocation3 + $0x684] ss:$16 sps:$4 sm:$0xff]   ;;  %v9070_v31 = vld [vmem:[#allocation3 + $0x68c] ss:$16 sps:$4 sm:$0xff]  }
 0x1e8   : > { %2825 = vmatpush1.bf16.msra.mxu0 %v8975_v32  ;;  %2989 = vmatpush1.bf16.msra.mxu1 %v8978_v33  ;;  %v9065_v32 = vld [vmem:[#allocation3 + $0x680] ss:$16 sps:$4 sm:$0xff]   ;;  %v9068_v33 = vld [vmem:[#allocation3 + $0x688] ss:$16 sps:$4 sm:$0xff]  }
 0x1e9   : > { %2826 = vmatprep.subr.bf16.mxu0 %v8983_v34  ;;  %2990 = vmatprep.subr.bf16.mxu1 %v8986_v35  ;;  %v9073_v34 = vld [vmem:[#allocation3 + $0x6a4] ss:$16 sps:$4 sm:$0xff]   ;;  %v9076_v35 = vld [vmem:[#allocation3 + $0x6ac] ss:$16 sps:$4 sm:$0xff]  }
 0x1ec   : > { %2827 = vmatpush1.bf16.msra.mxu0 %v8981_v36  ;;  %2991 = vmatpush1.bf16.msra.mxu1 %v8984_v37  ;;  %v9071_v36 = vld [vmem:[#allocation3 + $0x6a0] ss:$16 sps:$4 sm:$0xff]   ;;  %v9074_v37 = vld [vmem:[#allocation3 + $0x6a8] ss:$16 sps:$4 sm:$0xff]  }
 0x1ed   : > { %2828 = vmatprep.subr.bf16.mxu0 %v8989_v38  ;;  %2992 = vmatprep.subr.bf16.mxu1 %v8992_v39  ;;  %v9079_v38 = vld [vmem:[#allocation3 + $0x6c4] ss:$16 sps:$4 sm:$0xff]   ;;  %v9082_v39 = vld [vmem:[#allocation3 + $0x6cc] ss:$16 sps:$4 sm:$0xff]  }
 0x1f0   : > { %2829 = vmatpush1.bf16.msra.mxu0 %v8987_v40  ;;  %2993 = vmatpush1.bf16.msra.mxu1 %v8990_v41  ;;  %v9077_v40 = vld [vmem:[#allocation3 + $0x6c0] ss:$16 sps:$4 sm:$0xff]   ;;  %v9080_v41 = vld [vmem:[#allocation3 + $0x6c8] ss:$16 sps:$4 sm:$0xff]  }
 0x1f1   : > { %2830 = vmatprep.subr.bf16.mxu0 %v8995_v42  ;;  %2994 = vmatprep.subr.bf16.mxu1 %v8998_v43  ;;  %v9085_v42 = vld [vmem:[#allocation3 + $0x6e4] ss:$16 sps:$4 sm:$0xff]   ;;  %v9088_v43 = vld [vmem:[#allocation3 + $0x6ec] ss:$16 sps:$4 sm:$0xff]  }
 0x1f4   : > { %2831 = vmatpush1.bf16.msra.mxu0 %v8993_v44  ;;  %2995 = vmatpush1.bf16.msra.mxu1 %v8996_v45  ;;  %v9083_v44 = vld [vmem:[#allocation3 + $0x6e0] ss:$16 sps:$4 sm:$0xff]   ;;  %v9086_v45 = vld [vmem:[#allocation3 + $0x6e8] ss:$16 sps:$4 sm:$0xff]  }
 0x1f5   : > { %2832 = vmatprep.subr.bf16.mxu0 %v9001_v46  ;;  %2996 = vmatprep.subr.bf16.mxu1 %v9004_v47  ;;  %v9091_v46 = vld [vmem:[#allocation3 + $0x704] ss:$16 sps:$4 sm:$0xff]   ;;  %v9094_v47 = vld [vmem:[#allocation3 + $0x70c] ss:$16 sps:$4 sm:$0xff]  }
 0x1f8   : > { %2833 = vmatpush1.bf16.msra.mxu0 %v8999_v48  ;;  %2997 = vmatpush1.bf16.msra.mxu1 %v9002_v49  ;;  %v9089_v48 = vld [vmem:[#allocation3 + $0x700] ss:$16 sps:$4 sm:$0xff]   ;;  %v9092_v49 = vld [vmem:[#allocation3 + $0x708] ss:$16 sps:$4 sm:$0xff]  }
 0x1f9   : > { %2834 = vmatprep.subr.bf16.mxu0 %v9007_v50  ;;  %2998 = vmatprep.subr.bf16.mxu1 %v9010_v51  ;;  %v9097_v50 = vld [vmem:[#allocation3 + $0x724] ss:$16 sps:$4 sm:$0xff]   ;;  %v9100_v51 = vld [vmem:[#allocation3 + $0x72c] ss:$16 sps:$4 sm:$0xff]  }
 0x1fc   : > { %2835 = vmatpush1.bf16.msra.mxu0 %v9005_v52  ;;  %2999 = vmatpush1.bf16.msra.mxu1 %v9008_v53  ;;  %v9095_v52 = vld [vmem:[#allocation3 + $0x720] ss:$16 sps:$4 sm:$0xff]   ;;  %v9098_v53 = vld [vmem:[#allocation3 + $0x728] ss:$16 sps:$4 sm:$0xff]  }
 0x1fd   : > { %2836 = vmatprep.subr.bf16.mxu0 %v9013_v54  ;;  %3000 = vmatprep.subr.bf16.mxu1 %v9016_v55  ;;  %v9103_v54 = vld [vmem:[#allocation3 + $0x744] ss:$16 sps:$4 sm:$0xff]   ;;  %v9106_v55 = vld [vmem:[#allocation3 + $0x74c] ss:$16 sps:$4 sm:$0xff]  }
 0x200   : > { %2837 = vmatpush1.bf16.msra.mxu0 %v9011_v56  ;;  %3001 = vmatpush1.bf16.msra.mxu1 %v9014_v57  ;;  %v9101_v56 = vld [vmem:[#allocation3 + $0x740] ss:$16 sps:$4 sm:$0xff]   ;;  %v9104_v57 = vld [vmem:[#allocation3 + $0x748] ss:$16 sps:$4 sm:$0xff]  }
 0x201   : > { %2838 = vmatprep.subr.bf16.mxu0 %v9019_v58  ;;  %3002 = vmatprep.subr.bf16.mxu1 %v9022_v59  ;;  %v9109_v58 = vld [vmem:[#allocation3 + $0x764] ss:$16 sps:$4 sm:$0xff]   ;;  %v9112_v59 = vld [vmem:[#allocation3 + $0x76c] ss:$16 sps:$4 sm:$0xff]  }
 0x204   : > { %2839 = vmatpush1.bf16.msra.mxu0 %v9017_v60  ;;  %3003 = vmatpush1.bf16.msra.mxu1 %v9020_v61  ;;  %v9107_v60 = vld [vmem:[#allocation3 + $0x760] ss:$16 sps:$4 sm:$0xff]   ;;  %v9110_v61 = vld [vmem:[#allocation3 + $0x768] ss:$16 sps:$4 sm:$0xff]  }
 0x205   : > { %2840 = vmatprep.subr.bf16.mxu0 %v9025_v62  ;;  %3004 = vmatprep.subr.bf16.mxu1 %v9028_v63  ;;  %v9115_v62 = vld [vmem:[#allocation3 + $0x784] ss:$16 sps:$4 sm:$0xff]   ;;  %v9118_v63 = vld [vmem:[#allocation3 + $0x78c] ss:$16 sps:$4 sm:$0xff]  }
 0x208   : > { %2841 = vmatpush1.bf16.msra.mxu0 %v9023_v0  ;;  %3005 = vmatpush1.bf16.msra.mxu1 %v9026_v1  ;;  %v9113_v0 = vld [vmem:[#allocation3 + $0x780] ss:$16 sps:$4 sm:$0xff]   ;;  %v9116_v1 = vld [vmem:[#allocation3 + $0x788] ss:$16 sps:$4 sm:$0xff]  }
 0x209   : > { %2842 = vmatprep.subr.bf16.mxu0 %v9031_v2  ;;  %3006 = vmatprep.subr.bf16.mxu1 %v9034_v3  ;;  %v9121_v2 = vld [vmem:[#allocation3 + $0x7a4] ss:$16 sps:$4 sm:$0xff]   ;;  %v9124_v3 = vld [vmem:[#allocation3 + $0x7ac] ss:$16 sps:$4 sm:$0xff]  }
 0x20c   : > { %2843 = vmatpush1.bf16.msra.mxu0 %v9029_v4  ;;  %3007 = vmatpush1.bf16.msra.mxu1 %v9032_v5  ;;  %v9119_v4 = vld [vmem:[#allocation3 + $0x7a0] ss:$16 sps:$4 sm:$0xff]   ;;  %v9122_v5 = vld [vmem:[#allocation3 + $0x7a8] ss:$16 sps:$4 sm:$0xff]  }
 0x20d   : > { %2844 = vmatprep.subr.bf16.mxu0 %v9037_v6  ;;  %3008 = vmatprep.subr.bf16.mxu1 %v9040_v7  ;;  %v9127_v6 = vld [vmem:[#allocation3 + $0x7c4] ss:$16 sps:$4 sm:$0xff]   ;;  %v9130_v7 = vld [vmem:[#allocation3 + $0x7cc] ss:$16 sps:$4 sm:$0xff]  }
 0x210   : > { %2845 = vmatpush1.bf16.msra.mxu0 %v9035_v8  ;;  %3009 = vmatpush1.bf16.msra.mxu1 %v9038_v9  ;;  %v9125_v8 = vld [vmem:[#allocation3 + $0x7c0] ss:$16 sps:$4 sm:$0xff]   ;;  %v9128_v9 = vld [vmem:[#allocation3 + $0x7c8] ss:$16 sps:$4 sm:$0xff]  }
 0x211   : > { %2855 = vmatprep.subr.bf16.mxu0 %v9043_v10  ;;  %3019 = vmatprep.subr.bf16.mxu1 %v9046_v12  ;;  %v9133_v10 = vld [vmem:[#allocation3 + $0x7e4] ss:$16 sps:$4 sm:$0xff]   ;;  %v9131_v12 = vld [vmem:[#allocation3 + $0x7e0] ss:$16 sps:$4 sm:$0xff]  }
 0x213   : > { %2847 = vmatmul.mubr.bf16.vlgmr.msra.gmra.mrb[0].mxu0 %v1426_v14  ;;  %3011 = vmatmul.mubr.bf16.vlgmr.msra.gmra.mrb[0].mxu1 %v1426_v14  ;;  %v1164_v14 = vld [vmem:[%s10402_s16 + $0x30] sm:$0xff]  ;;  %s10976_s16 = sld [smem:[#allocation41_spill]] }
 0x214   : > { %2856 = vmatpush1.bf16.msra.mxu0 %v9041_v13  ;;  %3020 = vmatpush1.bf16.msra.mxu1 %v9044_v16  ;;  %v9134_v13 = vld [vmem:[#allocation3 + $0x7e8] ss:$16 sps:$4 sm:$0xff]  }
 0x215   : > { %2857 = vmatprep.subr.bf16.mxu0 %v9049_v17  ;;  %3021 = vmatprep.subr.bf16.mxu1 %v9052_v18  ;;  %v9137_v16 = vld [vmem:[#allocation6] ss:$8 sps:$4 sm:$0xff]   ;;  %v1428_v17 = vpack.c.bf16 %v1164_v14, %v1164_v14  ;;  %v9142_v18 = vld [vmem:[#allocation6 + $0x14] ss:$8 sps:$4 sm:$0xff]  }
 0x216   : > { %2887 = vmatprep.mubr.bf16.mxu0 %v1429_v21  ;;  %3051 = vmatprep.mubr.bf16.mxu1 %v1429_v21  ;;  %v9143_v21 = vld [vmem:[#allocation6 + $0x20] ss:$8 sps:$4 sm:$0xff]  }
 0x218   : > { %2858 = vmatpush1.bf16.msra.mxu0 %v9047_v19  ;;  %3022 = vmatpush1.bf16.msra.mxu1 %v9050_v20  ;;  %v9140_v19 = vld [vmem:[#allocation6 + $0x10] ss:$8 sps:$4 sm:$0xff]   ;;  %v9145_v20 = vld [vmem:[#allocation6 + $0x24] ss:$8 sps:$4 sm:$0xff]  }
 0x219   : > { %2859 = vmatprep.subr.bf16.mxu0 %v9055_v22  ;;  %3023 = vmatprep.subr.bf16.mxu1 %v9058_v23  ;;  %v9148_v22 = vld [vmem:[#allocation6 + $0x34] ss:$8 sps:$4 sm:$0xff]   ;;  %v9146_v23 = vld [vmem:[#allocation6 + $0x30] ss:$8 sps:$4 sm:$0xff]  }
 0x21c   : > { %2860 = vmatpush1.bf16.msra.mxu0 %v9053_v24  ;;  %3024 = vmatpush1.bf16.msra.mxu1 %v9056_v25  ;;  %v9151_v24 = vld [vmem:[#allocation6 + $0x44] ss:$8 sps:$4 sm:$0xff]   ;;  %v9149_v25 = vld [vmem:[#allocation6 + $0x40] ss:$8 sps:$4 sm:$0xff]  }
 0x21d   : > { %2861 = vmatprep.subr.bf16.mxu0 %v9061_v26  ;;  %3025 = vmatprep.subr.bf16.mxu1 %v9064_v27  ;;  %v9154_v26 = vld [vmem:[#allocation6 + $0x54] ss:$8 sps:$4 sm:$0xff]   ;;  %v9152_v27 = vld [vmem:[#allocation6 + $0x50] ss:$8 sps:$4 sm:$0xff]  }
 0x220   : > { %2862 = vmatpush1.bf16.msra.mxu0 %v9059_v28  ;;  %3026 = vmatpush1.bf16.msra.mxu1 %v9062_v29  ;;  %v9157_v28 = vld [vmem:[#allocation6 + $0x64] ss:$8 sps:$4 sm:$0xff]   ;;  %v9155_v29 = vld [vmem:[#allocation6 + $0x60] ss:$8 sps:$4 sm:$0xff]  }
 0x221   : > { %2863 = vmatprep.subr.bf16.mxu0 %v9067_v30  ;;  %3027 = vmatprep.subr.bf16.mxu1 %v9070_v31  ;;  %v9160_v30 = vld [vmem:[#allocation6 + $0x74] ss:$8 sps:$4 sm:$0xff]   ;;  %v9158_v31 = vld [vmem:[#allocation6 + $0x70] ss:$8 sps:$4 sm:$0xff]  }
 0x224   : > { %2864 = vmatpush1.bf16.msra.mxu0 %v9065_v32  ;;  %3028 = vmatpush1.bf16.msra.mxu1 %v9068_v33  ;;  %v9163_v32 = vld [vmem:[#allocation6 + $0x84] ss:$8 sps:$4 sm:$0xff]   ;;  %v9161_v33 = vld [vmem:[#allocation6 + $0x80] ss:$8 sps:$4 sm:$0xff]  }
 0x225   : > { %2865 = vmatprep.subr.bf16.mxu0 %v9073_v34  ;;  %3029 = vmatprep.subr.bf16.mxu1 %v9076_v35  ;;  %v9166_v34 = vld [vmem:[#allocation6 + $0x94] ss:$8 sps:$4 sm:$0xff]   ;;  %v9164_v35 = vld [vmem:[#allocation6 + $0x90] ss:$8 sps:$4 sm:$0xff]  }
 0x228   : > { %2866 = vmatpush1.bf16.msra.mxu0 %v9071_v36  ;;  %3030 = vmatpush1.bf16.msra.mxu1 %v9074_v37  ;;  %v9169_v36 = vld [vmem:[#allocation6 + $0xa4] ss:$8 sps:$4 sm:$0xff]   ;;  %v9167_v37 = vld [vmem:[#allocation6 + $0xa0] ss:$8 sps:$4 sm:$0xff]  }
 0x229   : > { %2867 = vmatprep.subr.bf16.mxu0 %v9079_v38  ;;  %3031 = vmatprep.subr.bf16.mxu1 %v9082_v39  ;;  %v9172_v38 = vld [vmem:[#allocation6 + $0xb4] ss:$8 sps:$4 sm:$0xff]   ;;  %v9170_v39 = vld [vmem:[#allocation6 + $0xb0] ss:$8 sps:$4 sm:$0xff]  }
 0x22c   : > { %2868 = vmatpush1.bf16.msra.mxu0 %v9077_v40  ;;  %3032 = vmatpush1.bf16.msra.mxu1 %v9080_v41  ;;  %v9175_v40 = vld [vmem:[#allocation6 + $0xc4] ss:$8 sps:$4 sm:$0xff]   ;;  %v9173_v41 = vld [vmem:[#allocation6 + $0xc0] ss:$8 sps:$4 sm:$0xff]  }
 0x22d   : > { %2869 = vmatprep.subr.bf16.mxu0 %v9085_v42  ;;  %3033 = vmatprep.subr.bf16.mxu1 %v9088_v43  ;;  %v9178_v42 = vld [vmem:[#allocation6 + $0xd4] ss:$8 sps:$4 sm:$0xff]   ;;  %v9176_v43 = vld [vmem:[#allocation6 + $0xd0] ss:$8 sps:$4 sm:$0xff]  }
 0x230   : > { %2870 = vmatpush1.bf16.msra.mxu0 %v9083_v44  ;;  %3034 = vmatpush1.bf16.msra.mxu1 %v9086_v45  ;;  %v9181_v44 = vld [vmem:[#allocation6 + $0xe4] ss:$8 sps:$4 sm:$0xff]   ;;  %v9179_v45 = vld [vmem:[#allocation6 + $0xe0] ss:$8 sps:$4 sm:$0xff]  }
 0x231   : > { %2871 = vmatprep.subr.bf16.mxu0 %v9091_v46  ;;  %3035 = vmatprep.subr.bf16.mxu1 %v9094_v47  ;;  %v9184_v46 = vld [vmem:[#allocation6 + $0xf4] ss:$8 sps:$4 sm:$0xff]   ;;  %v9182_v47 = vld [vmem:[#allocation6 + $0xf0] ss:$8 sps:$4 sm:$0xff]  }
 0x234   : > { %2872 = vmatpush1.bf16.msra.mxu0 %v9089_v48  ;;  %3036 = vmatpush1.bf16.msra.mxu1 %v9092_v49  ;;  %v9187_v48 = vld [vmem:[#allocation6 + $0x104] ss:$8 sps:$4 sm:$0xff]  }
 0x235   : > { %2873 = vmatprep.subr.bf16.mxu0 %v9097_v50  ;;  %3037 = vmatprep.subr.bf16.mxu1 %v9100_v51  ;;  %v9233_v49 = vld [vmem:[#allocation8 + $0x40] sm:$0xff]   ;;  %v9235_v51 = vld [vmem:[#allocation8 + $0x48] sm:$0xff]  }
 0x236   : > { %v9234_v50 = vld [vmem:[#allocation8] sm:$0xff]  }
 0x238   : > { %2874 = vmatpush1.bf16.msra.mxu0 %v9095_v52  ;;  %3038 = vmatpush1.bf16.msra.mxu1 %v9098_v53  ;;  %v9236_v52 = vld [vmem:[#allocation8 + $0x8] sm:$0xff]   ;;  %v9237_v53 = vld [vmem:[#allocation8 + $0x50] sm:$0xff]  }
 0x239   : > { %2875 = vmatprep.subr.bf16.mxu0 %v9103_v54  ;;  %3039 = vmatprep.subr.bf16.mxu1 %v9106_v55  ;;  %v9238_v54 = vld [vmem:[#allocation8 + $0x10] sm:$0xff]   ;;  %v9239_v55 = vld [vmem:[#allocation8 + $0x58] sm:$0xff]  }
 0x23c   : > { %2876 = vmatpush1.bf16.msra.mxu0 %v9101_v56  ;;  %3040 = vmatpush1.bf16.msra.mxu1 %v9104_v57  ;;  %v9240_v56 = vld [vmem:[#allocation8 + $0x18] sm:$0xff]   ;;  %v9241_v57 = vld [vmem:[#allocation8 + $0x60] sm:$0xff]  }
 0x23d   : > { %2877 = vmatprep.subr.bf16.mxu0 %v9109_v58  ;;  %3041 = vmatprep.subr.bf16.mxu1 %v9112_v59  ;;  %v9242_v58 = vld [vmem:[#allocation8 + $0x20] sm:$0xff]   ;;  %v9243_v59 = vld [vmem:[#allocation8 + $0x68] sm:$0xff]  }
 0x240   : > { %2878 = vmatpush1.bf16.msra.mxu0 %v9107_v60  ;;  %3042 = vmatpush1.bf16.msra.mxu1 %v9110_v61  ;;  %v9244_v60 = vld [vmem:[#allocation8 + $0x28] sm:$0xff]   ;;  %v9245_v61 = vld [vmem:[#allocation8 + $0x70] sm:$0xff]  }
 0x241   : > { %2879 = vmatprep.subr.bf16.mxu0 %v9115_v62  ;;  %3043 = vmatprep.subr.bf16.mxu1 %v9118_v63  ;;  %v1432_v62 = vlaneseq }
 0x243   : > { %v10412_v63 = vshrl.u32 %v1432_v62, 7 }
 0x244   : > { %2880 = vmatpush1.bf16.msra.mxu0 %v9113_v0  ;;  %3044 = vmatpush1.bf16.msra.mxu1 %v9116_v1  ;;  %v10418_v1 = vld [vmem:[%s10025_s17] sm:$0xf] }
 0x245   : > { %2881 = vmatprep.subr.bf16.mxu0 %v9121_v2  ;;  %3045 = vmatprep.subr.bf16.mxu1 %v9124_v3  ;;  %v10415_v0 = vsub.s32 0, %v10412_v63  ;;  %v10421_v2 = vsub.s32 1, %v10412_v63  ;;  %v1446_v3 = vsub.s32 3, %v10412_v63 }
 0x248   : > { %2882 = vmatpush1.bf16.msra.mxu0 %v9119_v4  ;;  %3046 = vmatpush1.bf16.msra.mxu1 %v9122_v5  ;;  %v1435_v4 = vrot.slane %v10418_v1, %v10415_v0  ;;  %v1439_v5 = vrot.slane %v10418_v1, %v10421_v2 }
 0x249   : > { %2883 = vmatprep.subr.bf16.mxu0 %v9127_v6  ;;  %3047 = vmatprep.subr.bf16.mxu1 %v9130_v7  ;;  %v1447_v6 = vrot.slane %v10418_v1, %v1446_v3 }
 0x24c   : > { %2884 = vmatpush1.bf16.msra.mxu0 %v9125_v8  ;;  %3048 = vmatpush1.bf16.msra.mxu1 %v9128_v9 }
 0x24d   : > { %2885 = vmatprep.subr.bf16.mxu0 %v9133_v10  ;;  %3049 = vmatprep.subr.bf16.mxu1 %v9136_v11 }
 0x250   : > { %2886 = vmatpush1.bf16.msra.mxu0 %v9131_v12  ;;  %3050 = vmatpush1.bf16.msra.mxu1 %v9134_v13 }
 0x251   : > { %3460 = vmatprep.subr.bf16.mxu0 %v9139_v15  ;;  %8026 = vmatprep.subr.bf16.mxu1 %v9233_v49  ;;  %v9229_v49 = vld [vmem:[#allocation6 + $0x1e4] ss:$8 sps:$4 sm:$0xff]  }
 0x253   : > { %2888 = vmatmul.mubr.bf16.vlgmr.msra.gmra.mrb[0].mxu0 %v1428_v17  ;;  %3052 = vmatmul.mubr.bf16.vlgmr.msra.gmra.mrb[0].mxu1 %v1428_v17 }
 0x254   : > { %3461 = vmatpush1.bf16.msra.mxu0 %v9137_v16  ;;  %8027 = vmatpush3.bf16.msra.mxu1 %v9234_v50  ;;  %v9227_v50 = vld [vmem:[#allocation6 + $0x1e0] ss:$8 sps:$4 sm:$0xff]  }
 0x255   : > { %3462 = vmatprep.subr.bf16.mxu0 %v9142_v18  ;;  %8028 = vmatprep.subr.bf16.mxu1 %v9235_v51 }
 0x258   : > { %3463 = vmatpush1.bf16.msra.mxu0 %v9140_v19  ;;  %8029 = vmatpush3.bf16.msra.mxu1 %v9236_v52  ;;  %v9185_v19 = vld [vmem:[#allocation6 + $0x100] ss:$8 sps:$4 sm:$0xff]   ;;  %v9232_v52 = vld [vmem:[#allocation6 + $0x1f4] ss:$8 sps:$4 sm:$0xff]  }
 0x259   : > { %3464 = vmatprep.subr.bf16.mxu0 %v9145_v20  ;;  %8030 = vmatprep.subr.bf16.mxu1 %v9237_v53  ;;  %v9230_v53 = vld [vmem:[#allocation6 + $0x1f0] ss:$8 sps:$4 sm:$0xff]  }
 0x25c   : > { %3465 = vmatpush1.bf16.msra.mxu0 %v9143_v21  ;;  %8031 = vmatpush3.bf16.msra.mxu1 %v9238_v54  ;;  %v9190_v21 = vld [vmem:[#allocation6 + $0x114] ss:$8 sps:$4 sm:$0xff]  }
 0x25d   : > { %3466 = vmatprep.subr.bf16.mxu0 %v9148_v22  ;;  %8032 = vmatprep.subr.bf16.mxu1 %v9239_v55 }
 0x260   : > { %3467 = vmatpush1.bf16.msra.mxu0 %v9146_v23  ;;  %8033 = vmatpush3.bf16.msra.mxu1 %v9240_v56  ;;  %v9188_v23 = vld [vmem:[#allocation6 + $0x110] ss:$8 sps:$4 sm:$0xff]  }
 0x261   : > { %3468 = vmatprep.subr.bf16.mxu0 %v9151_v24  ;;  %8034 = vmatprep.subr.bf16.mxu1 %v9241_v57  ;;  %v9193_v24 = vld [vmem:[#allocation6 + $0x124] ss:$8 sps:$4 sm:$0xff]   ;;  %v9246_v56 = vld [vmem:[#allocation8 + $0x30] sm:$0xff]   ;;  %v9247_v57 = vld [vmem:[#allocation8 + $0x78] sm:$0xff]  }
 0x264   : > { %3469 = vmatpush1.bf16.msra.mxu0 %v9149_v25  ;;  %8035 = vmatpush3.bf16.msra.mxu1 %v9242_v58  ;;  %v9191_v25 = vld [vmem:[#allocation6 + $0x120] ss:$8 sps:$4 sm:$0xff]   ;;  %v9248_v58 = vld [vmem:[#allocation8 + $0x38] sm:$0xff]  }
 0x265   : > { %3470 = vmatprep.subr.bf16.mxu0 %v9154_v26  ;;  %8036 = vmatprep.subr.bf16.mxu1 %v9243_v59  ;;  %v9196_v26 = vld [vmem:[#allocation6 + $0x134] ss:$8 sps:$4 sm:$0xff]   ;;  %v3128_v59 = vld [vmem:[%s10035_s25] sm:$0x3] }
 0x268   : > { %3471 = vmatpush1.bf16.msra.mxu0 %v9152_v27  ;;  %8037 = vmatpush3.bf16.msra.mxu1 %v9244_v60  ;;  %v9194_v27 = vld [vmem:[#allocation6 + $0x130] ss:$8 sps:$4 sm:$0xff]   ;;  %v3133_v60 = vrot.slane %v3128_v59, %v10415_v0 }
 0x269   : > { %3472 = vmatprep.subr.bf16.mxu0 %v9157_v28  ;;  %8038 = vmatprep.subr.bf16.mxu1 %v9245_v61  ;;  %v9199_v28 = vld [vmem:[#allocation6 + $0x144] ss:$8 sps:$4 sm:$0xff]   ;;  %v3137_v61 = vrot.slane %v3128_v59, %v10421_v2  ;;  %v7830_v59 = vld [vmem:[%s10970_s21] ss:$0 sm:$0xff] }
 0x26c   : > { %3473 = vmatpush1.bf16.msra.mxu0 %v9155_v29  ;;  %v9197_v29 = vld [vmem:[#allocation6 + $0x140] ss:$8 sps:$4 sm:$0xff]   ;;  %8039 = vmatpush3.bf16.msra.mxu1 %v9246_v56 }
 0x26d   : > { %3474 = vmatprep.subr.bf16.mxu0 %v9160_v30  ;;  %v9202_v30 = vld [vmem:[#allocation6 + $0x154] ss:$8 sps:$4 sm:$0xff]   ;;  %8040 = vmatprep.subr.bf16.mxu1 %v9247_v57 }
 0x270   : > { %3475 = vmatpush1.bf16.msra.mxu0 %v9158_v31  ;;  %v9200_v31 = vld [vmem:[#allocation6 + $0x150] ss:$8 sps:$4 sm:$0xff]   ;;  %8041 = vmatpush3.bf16.msra.mxu1 %v9248_v58 }
 0x271   : > { %3476 = vmatprep.subr.bf16.mxu0 %v9163_v32  ;;  %v9205_v32 = vld [vmem:[#allocation6 + $0x164] ss:$8 sps:$4 sm:$0xff]  }
 0x274   : > { %3477 = vmatpush1.bf16.msra.mxu0 %v9161_v33  ;;  %v9203_v33 = vld [vmem:[#allocation6 + $0x160] ss:$8 sps:$4 sm:$0xff]  }
 0x275   : > { %3478 = vmatprep.subr.bf16.mxu0 %v9166_v34  ;;  %v9208_v34 = vld [vmem:[#allocation6 + $0x174] ss:$8 sps:$4 sm:$0xff]  }
 0x278   : > { %3479 = vmatpush1.bf16.msra.mxu0 %v9164_v35  ;;  %v9206_v35 = vld [vmem:[#allocation6 + $0x170] ss:$8 sps:$4 sm:$0xff]  }
 0x279   : > { %3480 = vmatprep.subr.bf16.mxu0 %v9169_v36  ;;  %v9211_v36 = vld [vmem:[#allocation6 + $0x184] ss:$8 sps:$4 sm:$0xff]  }
 0x27c   : > { %3481 = vmatpush1.bf16.msra.mxu0 %v9167_v37  ;;  %v9209_v37 = vld [vmem:[#allocation6 + $0x180] ss:$8 sps:$4 sm:$0xff]  }
 0x27d   : > { %3482 = vmatprep.subr.bf16.mxu0 %v9172_v38  ;;  %v9214_v38 = vld [vmem:[#allocation6 + $0x194] ss:$8 sps:$4 sm:$0xff]  }
 0x280   : > { %3483 = vmatpush1.bf16.msra.mxu0 %v9170_v39  ;;  %v9212_v39 = vld [vmem:[#allocation6 + $0x190] ss:$8 sps:$4 sm:$0xff]  }
 0x281   : > { %3484 = vmatprep.subr.bf16.mxu0 %v9175_v40  ;;  %v9217_v40 = vld [vmem:[#allocation6 + $0x1a4] ss:$8 sps:$4 sm:$0xff]  }
 0x284   : > { %3485 = vmatpush1.bf16.msra.mxu0 %v9173_v41  ;;  %v9215_v41 = vld [vmem:[#allocation6 + $0x1a0] ss:$8 sps:$4 sm:$0xff]  }
 0x285   : > { %3486 = vmatprep.subr.bf16.mxu0 %v9178_v42  ;;  %v9220_v42 = vld [vmem:[#allocation6 + $0x1b4] ss:$8 sps:$4 sm:$0xff]  }
 0x288   : > { %3487 = vmatpush1.bf16.msra.mxu0 %v9176_v43  ;;  %v9218_v43 = vld [vmem:[#allocation6 + $0x1b0] ss:$8 sps:$4 sm:$0xff]  }
 0x289   : > { %3488 = vmatprep.subr.bf16.mxu0 %v9181_v44  ;;  %v9223_v44 = vld [vmem:[#allocation6 + $0x1c4] ss:$8 sps:$4 sm:$0xff]  }
 0x28c   : > { %3489 = vmatpush1.bf16.msra.mxu0 %v9179_v45  ;;  %v9221_v45 = vld [vmem:[#allocation6 + $0x1c0] ss:$8 sps:$4 sm:$0xff]  }
 0x28d   : > { %3490 = vmatprep.subr.bf16.mxu0 %v9184_v46  ;;  %v9226_v46 = vld [vmem:[#allocation6 + $0x1d4] ss:$8 sps:$4 sm:$0xff]  }
 0x290   : > { %3491 = vmatpush1.bf16.msra.mxu0 %v9182_v47  ;;  %v9224_v47 = vld [vmem:[#allocation6 + $0x1d0] ss:$8 sps:$4 sm:$0xff]  }
 0x291   : > { %3501 = vmatprep.subr.bf16.mxu0 %v9187_v48  ;;  %v10432_v48 = vsub.s32 2, %v10412_v63 }
 0x293   : > { %v1443_v51 = vrot.slane %v10418_v1, %v10432_v48 }
 0x326   : > { %v2889_v7 = vpop.f32.mrb[0].mxu0  ;;  %v10429_v8 = vpop.f32.mrb[0].mxu1 }
 0x327   : > { %v8447_v9 = vadd.f32 %v2889_v7, %v1435_v4  ;;  %v2891_v10 = vpop.f32.mrb[1].mxu0  ;;  %v3055_v11 = vpop.f32.mrb[1].mxu1  ;;  %v8449_v54 = vadd.f32 %v10429_v8, %v1443_v51 }
 0x328   : > { %v8448_v12 = vadd.f32 %v2891_v10, %v1439_v5  ;;  %v8450_v13 = vadd.f32 %v3055_v11, %v1447_v6  ;;  %v2893_v14 = vpop.f32.mrb[2].mxu0  ;;  %v3057_v15 = vpop.f32.mrb[2].mxu1 }
 0x329   : > { %v2894_v16 = vpop.f32.mrb[3].mxu0  ;;  %v3058_v17 = vpop.f32.mrb[3].mxu1  ;;  %v3124_v20 = vpack.c.bf16 %v8447_v9, %v8447_v9  ;;  %v3126_v55 = vpack.c.bf16 %v8449_v54, %v8449_v54  ;;  %v7813_v9 = vld [vmem:[%s10968_s3] ss:$0 sm:$0xff]  ;;  %v3726_v15 = vld [vmem:[%s10055_s14 + $0x8] sm:$0x1] }
 0x32a   : > { %v3125_v18 = vpack.c.bf16 %v8448_v12, %v8448_v12  ;;  %v3127_v22 = vpack.c.bf16 %v8450_v13, %v8450_v13  ;;  %v3719_v17 = vld [vmem:[%s10969_s30] sm:$0x1]  ;;  %s10977_s30 = sld [smem:[#allocation42_spill]] }
 0x32c   : > { %3492 = vmatprep.mubr.bf16.mxu0 %v3125_v18 }
 0x32d   : > { %3493 = vmatmul.mubr.bf16.vlgmr.msra.gmra.mrb[4].mxu0 %v3124_v20 }
 0x32e   : > { %3502 = vmatpush1.bf16.msra.mxu0 %v9185_v19  ;;  %3533 = vmatprep.mubr.bf16.mxu0 %v3127_v22 }
 0x32f   : > { %3503 = vmatprep.subr.bf16.mxu0 %v9190_v21  ;;  %v3725_v21 = vld [vmem:[%s10055_s14] sm:$0xff] }
 0x332   : > { %3504 = vmatpush1.bf16.msra.mxu0 %v9188_v23  ;;  %v9249_v23 = vld [vmem:[#allocation9] ss:$12 sps:$4 sm:$0xff]  }
 0x333   : > { %3505 = vmatprep.subr.bf16.mxu0 %v9193_v24  ;;  %v9251_v24 = vld [vmem:[#allocation9 + $0x4] ss:$12 sps:$4 sm:$0xff]  }
 0x334   : > { %3950 = vmatprep.subr.bf16.mxu1 %v9251_v24 }
 0x336   : > { %3506 = vmatpush1.bf16.msra.mxu0 %v9191_v25  ;;  %v9254_v25 = vld [vmem:[#allocation9 + $0x1c] ss:$12 sps:$4 sm:$0xff]  }
 0x337   : > { %3507 = vmatprep.subr.bf16.mxu0 %v9196_v26  ;;  %v9252_v26 = vld [vmem:[#allocation9 + $0x18] ss:$12 sps:$4 sm:$0xff]  }
 0x33a   : > { %3508 = vmatpush1.bf16.msra.mxu0 %v9194_v27 }
 0x33b   : > { %3509 = vmatprep.subr.bf16.mxu0 %v9199_v28 }
 0x33e   : > { %3510 = vmatpush1.bf16.msra.mxu0 %v9197_v29 }
 0x33f   : > { %3511 = vmatprep.subr.bf16.mxu0 %v9202_v30 }
 0x342   : > { %3512 = vmatpush1.bf16.msra.mxu0 %v9200_v31 }
 0x343   : > { %3513 = vmatprep.subr.bf16.mxu0 %v9205_v32 }
 0x346   : > { %3514 = vmatpush1.bf16.msra.mxu0 %v9203_v33 }
 0x347   : > { %3515 = vmatprep.subr.bf16.mxu0 %v9208_v34 }
 0x34a   : > { %3516 = vmatpush1.bf16.msra.mxu0 %v9206_v35 }
 0x34b   : > { %3517 = vmatprep.subr.bf16.mxu0 %v9211_v36  ;;  %v9257_v36 = vld [vmem:[#allocation9 + $0x34] ss:$12 sps:$4 sm:$0xff]  }
 0x34e   : > { %3518 = vmatpush1.bf16.msra.mxu0 %v9209_v37  ;;  %v9255_v37 = vld [vmem:[#allocation9 + $0x30] ss:$12 sps:$4 sm:$0xff]  }
 0x34f   : > { %3519 = vmatprep.subr.bf16.mxu0 %v9214_v38  ;;  %v9260_v38 = vld [vmem:[#allocation9 + $0x4c] ss:$12 sps:$4 sm:$0xff]  }
 0x352   : > { %3520 = vmatpush1.bf16.msra.mxu0 %v9212_v39  ;;  %v9258_v39 = vld [vmem:[#allocation9 + $0x48] ss:$12 sps:$4 sm:$0xff]  }
 0x353   : > { %3521 = vmatprep.subr.bf16.mxu0 %v9217_v40  ;;  %v9261_v40 = vld [vmem:[#allocation9 + $0x60] ss:$12 sps:$4 sm:$0xff]  }
 0x356   : > { %3522 = vmatpush1.bf16.msra.mxu0 %v9215_v41  ;;  %v9263_v41 = vld [vmem:[#allocation9 + $0x64] ss:$12 sps:$4 sm:$0xff]  }
 0x357   : > { %3523 = vmatprep.subr.bf16.mxu0 %v9220_v42  ;;  %v9266_v42 = vld [vmem:[#allocation9 + $0x7c] ss:$12 sps:$4 sm:$0xff]  }
 0x35a   : > { %3524 = vmatpush1.bf16.msra.mxu0 %v9218_v43  ;;  %v9264_v43 = vld [vmem:[#allocation9 + $0x78] ss:$12 sps:$4 sm:$0xff]  }
 0x35b   : > { %3525 = vmatprep.subr.bf16.mxu0 %v9223_v44  ;;  %v9993_v44 = vmov 0  }
 0x35e   : > { %3526 = vmatpush1.bf16.msra.mxu0 %v9221_v45  ;;  %v9269_v45 = vld [vmem:[#allocation9 + $0x94] ss:$12 sps:$4 sm:$0xff]  }
 0x35f   : > { %3527 = vmatprep.subr.bf16.mxu0 %v9226_v46  ;;  %v9994_v46 = vmov 0.0  }
 0x362   : > { %3528 = vmatpush1.bf16.msra.mxu0 %v9224_v47  ;;  %v9267_v47 = vld [vmem:[#allocation9 + $0x90] ss:$12 sps:$4 sm:$0xff]  }
 0x363   : > { %3529 = vmatprep.subr.bf16.mxu0 %v9229_v49  ;;  %v9272_v49 = vld [vmem:[#allocation9 + $0xac] ss:$12 sps:$4 sm:$0xff]  }
 0x366   : > { %3530 = vmatpush1.bf16.msra.mxu0 %v9227_v50  ;;  %v9270_v50 = vld [vmem:[#allocation9 + $0xa8] ss:$12 sps:$4 sm:$0xff]  }
 0x367   : > { %3531 = vmatprep.subr.bf16.mxu0 %v9232_v52 }
 0x36a   : > { %3532 = vmatpush1.bf16.msra.mxu0 %v9230_v53 }
 0x36b   : > { %8243 = vmatprep.subr.bf16.mxu0 %v9994_v46 }
 0x36d   : > { %3534 = vmatmul.mubr.bf16.vlgmr.msra.gmra.mrb[4].mxu0 %v3126_v55 }
 0x36e   : > { %8247 = vmatprep.mubr.msk.bf16.mxu0 %vm9995_vm1, %v9994_v46 }
 0x440   : > { %v3535_v62 = vpop.f32.mrb[4].mxu0 }
 0x441   : > { %v8451_v63 = vadd.f32 %v3535_v62, %v3133_v60  ;;  %v3537_v1 = vpop.f32.mrb[5].mxu0 }
 0x442   : > { %v8452_v3 = vadd.f32 %v3537_v1, %v3137_v61  ;;  %v3539_v4 = vpop.f32.mrb[6].mxu0 }
 0x443   : > { %v3540_v5 = vpop.f32.mrb[7].mxu0  ;;  %v3574_v7 = vpack.c.bf16 %v8451_v63, %v8451_v63  ;;  %v7831_v63 = vld [vmem:[%s10971_s7] ss:$0 sm:$0xff]  ;;  %s10978_s7 = sld [smem:[#allocation44_spill]] }
 0x444   : > { %v3575_v6 = vpack.c.bf16 %v8452_v3, %v8452_v3  ;;  %v9273_v5 = vld [vmem:[#allocation9 + $0x8] ss:$12 sps:$4 sm:$0xff]  }
 0x446   : > { %3711 = vmatprep.mubr.bf16.mxu1 %v3575_v6 }
 0x447   : > { %3712 = vmatmul.mubr.bf16.vlgmr.msra.gmra.mrb[4].mxu1 %v3574_v7  ;;  %v9274_v7 = vld [vmem:[#allocation9 + $0x20] ss:$12 sps:$4 sm:$0xff]  }
 0x448   : > { %3951 = vmatpush1.bf16.msra.mxu1 %v9249_v23  ;;  %3982 = vmatprep.mubr.bf16.mxu1 %v9993_v44 }
 0x449   : > { %3952 = vmatprep.subr.bf16.mxu1 %v9254_v25 }
 0x44c   : > { %3953 = vmatpush1.bf16.msra.mxu1 %v9252_v26 }
 0x44d   : > { %3954 = vmatprep.subr.bf16.mxu1 %v9257_v36 }
 0x450   : > { %3955 = vmatpush1.bf16.msra.mxu1 %v9255_v37 }
 0x451   : > { %3956 = vmatprep.subr.bf16.mxu1 %v9260_v38 }
 0x454   : > { %3957 = vmatpush1.bf16.msra.mxu1 %v9258_v39 }
 0x455   : > { %3958 = vmatprep.subr.bf16.mxu1 %v9263_v41  ;;  %v9996_v41 = vmov 65535  }
 0x458   : > { %3959 = vmatpush1.bf16.msra.mxu1 %v9261_v40 }
 0x459   : > { %3960 = vmatprep.subr.bf16.mxu1 %v9266_v42  ;;  %v4147_v42 = vsel %vm4145_vm2, 4294967295, %v9996_v41 }
 0x45c   : > { %3961 = vmatpush1.bf16.msra.mxu1 %v9264_v43 }
 0x45d   : > { %3962 = vmatprep.subr.bf16.mxu1 %v9269_v45 }
 0x460   : > { %3963 = vmatpush1.bf16.msra.mxu1 %v9267_v47  ;;  %v10483_v47 = vsel %vm4146_vm3, %v4147_v42, 0 }
 0x461   : > { %3964 = vmatprep.subr.bf16.mxu1 %v9272_v49 }
 0x464   : > { %3965 = vmatpush1.bf16.msra.mxu1 %v9270_v50 }
 0x465   : > { %8195 = vmatprep.subr.bf16.mxu1 %v9994_v46 }
 0x51a   : > { %v8042_v8 = vpop.f32.mrb[4].mxu1 }
 0x51b   : > { %v8043_v10 = vpop.f32.mrb[5].mxu1 }
 0x51c   : > { %v8044_v11 = vadd.f32 %v8043_v10, %v8042_v8  ;;  %v8045_v12 = vpop.f32.mrb[6].mxu1  ;;  %v9275_v8 = vld [vmem:[#allocation9 + $0x38] ss:$12 sps:$4 sm:$0xff]   ;;  %v9277_v10 = vld [vmem:[#allocation9 + $0x68] ss:$12 sps:$4 sm:$0xff]  }
 0x51d   : > { %v8046_v13 = vpop.f32.mrb[7].mxu1  ;;  %v9279_v12 = vld [vmem:[#allocation9 + $0x98] ss:$12 sps:$4 sm:$0xff]  }
 0x51e   : > { %v3714_v14 = vadd.f32 %v8044_v11, %v7813_v9  ;;  %v9276_v9 = vld [vmem:[#allocation9 + $0x50] ss:$12 sps:$4 sm:$0xff]   ;;  %v9278_v11 = vld [vmem:[#allocation9 + $0x80] ss:$12 sps:$4 sm:$0xff]  }
 0x51f   : > { %v9280_v13 = vld [vmem:[#allocation9 + $0xb0] ss:$12 sps:$4 sm:$0xff]  }
 0x520   : > { %v3721_v16 = vrot.slane %v3714_v14, 7  ;;  %v3805_v14 = vld [vmem:[%s10973_s28] sm:$0x7]  ;;  %s10980_s28 = sld [smem:[#allocation45_spill]] }
 0x522   : > { %v10443_v18 = vadd.f32 %v3726_v15, %v3721_v16  ;;  %v3724_v20 = vsel %vm3723_vm0, %v3719_v17, %v3721_v16  ;;  %v3814_v15 = vrot.slane %v3805_v14, %v10421_v2  ;;  %v3810_v16 = vrot.slane %v3805_v14, %v10415_v0 }
 0x523   : > { %v10449_v22 = vadd.f32 %v3725_v21, %v3724_v20 }
 0x524   : > { %v3733_v19 = vsel %vm3723_vm0, %v10443_v18, 0.0 }
 0x525   : > { %3734 = vadd.xlane.f32.xlu0 %v3733_v19 }
 0x529   : > { %3731 = vadd.xlane.f32.xlu0 %v10449_v22 }
 0x5b2   : > { %v3735_v27 = vpop.xlane.xlu0 %3734 }
 0x5b3   : > { %v3738_v28 = vmul.f32 0.0078125, %v3735_v27 }
 0x5b5   : > { %v3740_v31 = vsub.f32 %v10443_v18, %v3738_v28 }
 0x5b6   : > { %v3732_v29 = vpop.xlane.xlu0 %3731 }
 0x5b7   : > { %v3737_v30 = vmul.f32 0.0078125, %v3732_v29  ;;  %v3742_v34 = vmul.f32 %v3740_v31, %v3740_v31  ;;  %v3818_v29 = vrot.slane %v3805_v14, %v10432_v48 }
 0x5b9   : > { %v3739_v32 = vsub.f32 %v10449_v22, %v3737_v30  ;;  %v3745_v35 = vsel %vm3723_vm0, %v3742_v34, 0.0 }
 0x5bb   : > { %v3741_v33 = vmul.f32 %v3739_v32, %v3739_v32 }
 0x5bd   : > { %3743 = vadd.xlane.f32.xlu1 %v3741_v33 }
 0x5c1   : > { %3746 = vadd.xlane.f32.xlu1 %v3745_v35 }
 0x64a   : > { %v3744_v51 = vpop.xlane.xlu1 %3743 }
 0x64b   : > { %v3748_v52 = vmul.f32 0.0078125, %v3744_v51 }
 0x64d   : > { %v3750_v53 = vadd.f32 1e-06, %v3748_v52 }
 0x64e   : > { %v3747_v54 = vpop.xlane.xlu1 %3746 }
 0x64f   : > { %9433 = vrsqrt.f32 %v3750_v53  ;;  %v3749_v55 = vmul.f32 0.0078125, %v3747_v54 }
 0x651   : > { %v3751_v56 = vadd.f32 1e-06, %v3749_v55 }
 0x653   : > { %9435 = vrsqrt.f32 %v3751_v56 }
 0x659   : > { %v9434_v57 = vpop.eup %9433 }
 0x65a   : > { %v3754_v58 = vmul.f32 %v9434_v57, %v3739_v32 }
 0x65c   : > { %v3762_v62 = vmul.f32 %v7830_v59, %v3754_v58 }
 0x65d   : > { %v9436_v60 = vpop.eup %9435 }
 0x65e   : > { %v3755_v61 = vmul.f32 %v9436_v60, %v3740_v31  ;;  %v3770_v3 = vadd.f32 %v7831_v63, %v3762_v62 }
 0x660   : > { %v3763_v1 = vmul.f32 %v7830_v59, %v3755_v61 }
 0x662   : > { %v3771_v4 = vadd.f32 %v7831_v63, %v3763_v1 }
 0x664   : > { %v3804_v6 = vpack.c.bf16 %v3771_v4, %v3770_v3 }
 0x666   : > { %3983 = vmatmul.mubr.bf16.vlgmr.msra.gmra.mrb[8].mxu1 %v3804_v6 }
 0x667   : > { %8196 = vmatpush3.bf16.msra.mxu1 %v9273_v5  ;;  %8211 = vmatprep.mubr.msk.bf16.mxu1 %vm9995_vm1, %v9994_v46 }
 0x668   : > { %8197 = vmatprep.subr.bf16.mxu1 %v9994_v46 }
 0x66b   : > { %8198 = vmatpush3.bf16.msra.mxu1 %v9274_v7 }
 0x66c   : > { %8199 = vmatprep.subr.bf16.mxu1 %v9994_v46 }
 0x66f   : > { %8200 = vmatpush3.bf16.msra.mxu1 %v9275_v8 }
 0x670   : > { %8201 = vmatprep.subr.bf16.mxu1 %v9994_v46 }
 0x673   : > { %8202 = vmatpush3.bf16.msra.mxu1 %v9276_v9 }
 0x674   : > { %8203 = vmatprep.subr.bf16.mxu1 %v9994_v46 }
 0x677   : > { %8204 = vmatpush3.bf16.msra.mxu1 %v9277_v10 }
 0x678   : > { %8205 = vmatprep.subr.bf16.mxu1 %v9994_v46 }
 0x67b   : > { %8206 = vmatpush3.bf16.msra.mxu1 %v9278_v11 }
 0x67c   : > { %8207 = vmatprep.subr.bf16.mxu1 %v9994_v46 }
 0x67f   : > { %8208 = vmatpush3.bf16.msra.mxu1 %v9279_v12 }
 0x680   : > { %8209 = vmatprep.subr.bf16.mxu1 %v9994_v46 }
 0x683   : > { %8210 = vmatpush3.bf16.msra.mxu1 %v9280_v13 }
 0x684   : > { %8215 = vmatprep.subr.bf16.mxu1 %v9994_v46 }
 0x686   : > { %8212 = vmatmul.mubr.bf16.vlgmr.msra.gmra.mrb[12].mxu1 %v3804_v6 }
 0x687   : > { %8219 = vmatprep.mubr.msk.bf16.mxu1 %vm9995_vm1, %v9994_v46 }
 0x739   : > { %v3984_v17 = vpop.f32.mrb[8].mxu1 }
 0x73a   : > { %v3986_v19 = vpop.f32.mrb[9].mxu1  ;;  %v3985_v23 = vadd.f32 %v3984_v17, %v3810_v16 }
 0x73b   : > { %v3987_v20 = vadd.f32 %v3986_v19, %v3814_v15  ;;  %v3988_v21 = vpop.f32.mrb[10].mxu1 }
 0x73c   : > { %v3989_v24 = vadd.f32 %v3988_v21, %v3810_v16  ;;  %v3990_v25 = vpop.f32.mrb[11].mxu1 }
 0x73d   : > { %v3991_v26 = vadd.f32 %v3990_v25, %v3814_v15  ;;  %4034 = vxpose.xlu0.b32.start [1/2] (short) (narrow) %v3987_v20, 32 }
 0x73e   : > { %v10477_v27 = vpack.c.bf16 %v3989_v24, %v3985_v23 }
 0x73f   : > { %v8673_v28 = vpack.i.bf16 %v3991_v26, %v3987_v20 }
 0x741   : > { %4035 = vxpose.xlu0.b32.end [2/2] (short) (narrow) %v3991_v26, 32 }
 0x759   : > { %v4027_v30 = vpop.f32.mrb[12].mxu1 }
 0x75a   : > { %v8213_v31 = vpop.f32.mrb[13].mxu1  ;;  %v4028_v33 = vadd.f32 %v4027_v30, %v3818_v29 }
 0x75b   : > { %v4030_v32 = vpop.f32.mrb[14].mxu1 }
 0x75c   : > { %v4031_v34 = vadd.f32 %v4030_v32, %v3818_v29  ;;  %v8214_v35 = vpop.f32.mrb[15].mxu1 }
 0x75e   : > { %v10480_v36 = vpack.c.bf16 %v4031_v34, %v4028_v33 }
 0x760   : > { %v4150_v49 = vand.u32 %v10483_v47, %v10480_v36 }
 0x7bd   : > { %v4050_v37 = vpop.trf.xlu0 }
 0x7c1   : > { %v4051_v38 = vpop.trf.xlu0 }
 0x7c2   : > { %v4067_v39 = vpack.c.bf16 %v4051_v38, %v4050_v37 }
 0x7c4   : > { %8216 = vmatpush3.bf16.msra.mxu1 %v4067_v39 }
 0x7c5   : > { %v4052_v40 = vpop.trf.xlu0  ;;  %8217 = vmatprep.subr.bf16.mxu1 %v9994_v46 }
 0x7c9   : > { %v4053_v43 = vpop.trf.xlu0 }
 0x7ca   : > { %v4068_v45 = vpack.c.bf16 %v4053_v43, %v4052_v40 }
 0x7cc   : > { %8218 = vmatpush3.bf16.msra.mxu1 %v4068_v45 }
 0x7cd   : > { %8223 = vmatprep.subr.bf16.mxu1 %v9994_v46 }
 0x7cf   : > { %8220 = vmatmul.mubr.msk.bf16.vlgmr.msra.gmra.mrb[16].mxu1 %vm4069_vm4, %v10477_v27 }
 0x7d0   : > { %8224 = vmatpush3.bf16.msra.mxu1 %v4150_v49  ;;  %8225 = vmatprep.mubr.msk.bf16.mxu1 %vm9995_vm1, %v9994_v46 }
 0x7d1   : > { %8229 = vmatprep.subr.bf16.mxu1 %v9994_v46 }
 0x8a2   : > { %v4107_v50 = vpop.f32.mrb[16].mxu1 }
 0x8a3   : > { %v4114_v51 = vmul.f32 0.17677669, %v4107_v50  ;;  %v8221_v52 = vpop.f32.mrb[17].mxu1 }
 0x8a4   : > { %v4110_v53 = vpop.f32.mrb[18].mxu1 }
 0x8a5   : > { %v4115_v54 = vmul.f32 0.17677669, %v4110_v53  ;;  %v8222_v55 = vpop.f32.mrb[19].mxu1  ;;  %v4117_v56 = vsel %vm4116_vm5, %v4114_v51, -inf }
 0x8a6   : > { %4118 = vmax.xlane.f32.xlu1 %v4117_v56 }
 0x8a7   : > { %v4121_v57 = vsel %vm4120_vm6, %v4115_v54, -inf }
 0x8aa   : > { %4122 = vmax.xlane.f32.xlu1 %v4121_v57 }
 0x8bb   : > { %8674 = vrot.lane.b32.xlu1 %v8673_v28, %s10908_s18 }
 0x8bf   : > { %8679 = vrot.lane.b32.xlu1 %v8673_v28, %s9998_s2 }
 0x8c3   : > { %8684 = vrot.lane.b32.xlu1 %v8673_v28, %s10906_s15 }
 0x8c7   : > { %4239 = vrot.lane.b32.xlu1 %v10477_v27, %s10908_s18 }
 0x8cb   : > { %4412 = vrot.lane.b32.xlu1 %v10477_v27, %s9998_s2 }
 0x933   : > { %v4119_v58 = vpop.xlane.xlu1 %4118 }
 0x934   : > { %v4124_v59 = vsub.f32 %v4114_v51, %v4119_v58 }
 0x936   : > { %v4126_v60 = vmul.f32 1.442695, %v4124_v59 }
 0x937   : > { %v4123_v61 = vpop.xlane.xlu1 %4122 }
 0x938   : > { %9437 = vpow2.f32 %v4126_v60  ;;  %v4125_v62 = vsub.f32 %v4115_v54, %v4123_v61 }
 0x93a   : > { %v4128_v63 = vmul.f32 1.442695, %v4125_v62 }
 0x93b   : > { %v8675_v6 = vpop.permute.xlu1 %8674 }
 0x93c   : > { %9439 = vpow2.f32 %v4128_v63  ;;  %v8676_v9 = vunpack.i.l.bf16 %v8675_v6  ;;  %v8677_v12 = vunpack.i.h.bf16 %v8675_v6 }
 0x93f   : > { %v8680_v7 = vpop.permute.xlu1 %8679 }
 0x940   : > { %v8681_v8 = vunpack.i.l.bf16 %v8680_v7  ;;  %v8682_v10 = vunpack.i.h.bf16 %v8680_v7 }
 0x942   : > { %v9438_v1 = vpop.eup %9437  ;;  %v8688_v11 = vpack.i.bf16 %v8681_v8, %v8676_v9  ;;  %v8690_v14 = vpack.i.bf16 %v8682_v10, %v8677_v12 }
 0x943   : > { %v4130_v3 = vsel %vm4116_vm5, %v9438_v1, 0.0  ;;  %v8685_v13 = vpop.permute.xlu1 %8684 }
 0x944   : > { %4131 = vadd.xlane.f32.xlu1 %v4130_v3  ;;  %v8686_v15 = vunpack.i.l.bf16 %v8685_v13  ;;  %v8687_v16 = vunpack.i.h.bf16 %v8685_v13 }
 0x946   : > { %v9440_v4 = vpop.eup %9439 }
 0x947   : > { %v4133_v5 = vsel %vm4120_vm6, %v9440_v4, 0.0  ;;  %v4240_v17 = vpop.permute.xlu1 %4239 }
 0x948   : > { %4134 = vadd.xlane.f32.xlu0 %v4133_v5 }
 0x94b   : > { %v4413_v19 = vpop.permute.xlu1 %4412 }
 0x95e   : > { %4584 = vrot.lane.b32.xlu0 %v10477_v27, %s10906_s15 }
 0x977   : > { %8689 = vxpose.xlu1.b32.start [1/2] (short) (narrow) %v8688_v11, 32 }
 0x97b   : > { %8691 = vxpose.xlu1.b32.end [2/2] (short) (narrow) %v8690_v14, 32 }
 0x97c   : > { %4550 = vxpose.xlu0.b32.start [1/2] (short) (narrow) %v8686_v15, 32 }
 0x980   : > { %4551 = vxpose.xlu0.b32.end [2/2] (short) (narrow) %v8687_v16, 32 }
 0x9d1   : > { %v4132_v20 = vpop.xlane.xlu1 %4131 }
 0x9d2   : > { %9441 = vrcp.f32 %v4132_v20 }
 0x9d5   : > { %v4135_v21 = vpop.xlane.xlu0 %4134 }
 0x9d6   : > { %9443 = vrcp.f32 %v4135_v21 }
 0x9d9   : > { %v4585_v29 = vpop.permute.xlu0 %4584 }
 0x9dc   : > { %v9442_v23 = vpop.eup %9441 }
 0x9dd   : > { %v4138_v25 = vmul.f32 %v9442_v23, %v9438_v1 }
 0x9e0   : > { %v9444_v24 = vpop.eup %9443 }
 0x9e1   : > { %v4139_v26 = vmul.f32 %v9444_v24, %v9440_v4 }
 0x9e3   : > { %v4140_v27 = vpack.c.bf16 %v4139_v26, %v4138_v25 }
 0x9e5   : > { %8226 = vmatmul.mubr.msk.bf16.vlgmr.msra.gmra.mrb[20].mxu1 %vm4116_vm5, %v4140_v27 }
 0x9e6   : > { %8233 = vmatprep.mubr.msk.bf16.mxu1 %vm9995_vm1, %v9994_v46 }
 0x9f7   : > { %v8692_v28 = vpop.trf.xlu1 }
 0x9f8   : > { %v8696_v30 = vunpack.i.h.bf16 %v8692_v28  ;;  %v8693_v31 = vunpack.i.l.bf16 %v8692_v28 }
 0x9fb   : > { %v8697_v32 = vpop.trf.xlu1 }
 0x9fc   : > { %v8701_v33 = vunpack.i.h.bf16 %v8697_v32  ;;  %v8698_v34 = vunpack.i.l.bf16 %v8697_v32  ;;  %v4566_v35 = vpop.trf.xlu0 }
 0x9fe   : > { %v4236_v37 = vpack.c.bf16 %v8698_v34, %v8693_v31  ;;  %v4410_v38 = vpack.c.bf16 %v8701_v33, %v8696_v30 }
 0x9ff   : > { %v8702_v39 = vpop.trf.xlu1 }
 0xa00   : > { %8230 = vmatpush3.bf16.msra.mxu1 %v4236_v37  ;;  %8244 = vmatpush3.bf16.msra.mxu0 %v4410_v38  ;;  %v4567_v40 = vpop.trf.xlu0  ;;  %v8706_v41 = vunpack.i.h.bf16 %v8702_v39  ;;  %v8703_v42 = vunpack.i.l.bf16 %v8702_v39 }
 0xa01   : > { %8231 = vmatprep.subr.bf16.mxu1 %v9994_v46  ;;  %8245 = vmatprep.subr.bf16.mxu0 %v9994_v46  ;;  %v4582_v54 = vpack.c.bf16 %v4567_v40, %v4566_v35 }
 0xa03   : > { %v8707_v43 = vpop.trf.xlu1 }
 0xa04   : > { %v8711_v45 = vunpack.i.h.bf16 %v8707_v43  ;;  %v8708_v49 = vunpack.i.l.bf16 %v8707_v43  ;;  %v4568_v50 = vpop.trf.xlu0 }
 0xa06   : > { %v4237_v51 = vpack.c.bf16 %v8708_v49, %v8703_v42  ;;  %v4411_v52 = vpack.c.bf16 %v8711_v45, %v8706_v41 }
 0xa08   : > { %8232 = vmatpush3.bf16.msra.mxu1 %v4237_v51  ;;  %8246 = vmatpush3.bf16.msra.mxu0 %v4411_v52  ;;  %v4569_v53 = vpop.trf.xlu0 }
 0xa09   : > { %8257 = vmatprep.subr.bf16.mxu0 %v9994_v46  ;;  %8237 = vmatprep.subr.bf16.mxu1 %v9994_v46  ;;  %v4583_v55 = vpack.c.bf16 %v4569_v53, %v4568_v50 }
 0xa0b   : > { %8234 = vmatmul.mubr.msk.bf16.vlgmr.msra.gmra.mrb[24].mxu1 %vm4069_vm4, %v4240_v17  ;;  %8248 = vmatmul.mubr.msk.bf16.vlgmr.msra.gmra.mrb[8].mxu0 %vm4069_vm4, %v4413_v19 }
 0xa0c   : > { %8258 = vmatpush3.bf16.msra.mxu0 %v4582_v54  ;;  %8261 = vmatprep.mubr.msk.bf16.mxu0 %vm9995_vm1, %v9994_v46 }
 0xa0d   : > { %8259 = vmatprep.subr.bf16.mxu0 %v9994_v46  ;;  %8239 = vmatprep.mubr.msk.bf16.mxu1 %vm9995_vm1, %v9994_v46 }
 0xa10   : > { %8260 = vmatpush3.bf16.msra.mxu0 %v4583_v55 }
 0xa11   : > { %8271 = vmatprep.subr.bf16.mxu0 %v9994_v46 }
 0xa13   : > { %8262 = vmatmul.mubr.msk.bf16.vlgmr.msra.gmra.mrb[12].mxu0 %vm4069_vm4, %v4585_v29 }
 0xa14   : > { %8287 = vmatprep.mubr.msk.bf16.mxu0 %vm9995_vm1, %v9994_v46 }
 0xab8   : > { %v4186_v56 = vpop.f32.mrb[20].mxu1 }
 0xab9   : > { %4193 = vst.msk [vmem:[#allocation2] sm:$0xff] %vm4069_vm4, %v4186_v56  ;;  %v8227_v57 = vpop.f32.mrb[21].mxu1 }
 0xaba   : > { %v4189_v58 = vpop.f32.mrb[22].mxu1 }
 0xabb   : > { %4195 = vst.msk [vmem:[#allocation2 + $0x8] sm:$0x1] %vm4194_vm7, %v4189_v58  ;;  %v8228_v59 = vpop.f32.mrb[23].mxu1 }
 0xade   : > { %v4278_v60 = vpop.f32.mrb[24].mxu1  ;;  %v4451_v61 = vpop.f32.mrb[8].mxu0 }
 0xadf   : > { %v4285_v62 = vmul.f32 0.17677669, %v4278_v60  ;;  %v8235_v63 = vpop.f32.mrb[25].mxu1  ;;  %v8249_v1 = vpop.f32.mrb[9].mxu0  ;;  %v4458_v8 = vmul.f32 0.17677669, %v4451_v61 }
 0xae0   : > { %v4281_v3 = vpop.f32.mrb[26].mxu1  ;;  %v4454_v4 = vpop.f32.mrb[10].mxu0 }
 0xae1   : > { %v4286_v5 = vmul.f32 0.17677669, %v4281_v3  ;;  %v8236_v6 = vpop.f32.mrb[27].mxu1  ;;  %v8250_v7 = vpop.f32.mrb[11].mxu0  ;;  %v4287_v9 = vsel %vm4116_vm5, %v4285_v62, -inf  ;;  %v4460_v13 = vsel %vm4116_vm5, %v4458_v8, -inf }
 0xae2   : > { %4288 = vmax.xlane.f32.xlu1 %v4287_v9  ;;  %v4459_v11 = vmul.f32 0.17677669, %v4454_v4 }
 0xae3   : > { %v4290_v10 = vsel %vm4120_vm6, %v4286_v5, -inf }
 0xae4   : > { %4291 = vmax.xlane.f32.xlu0 %v4290_v10  ;;  %v4463_v19 = vsel %vm4120_vm6, %v4459_v11, -inf }
 0xae6   : > { %v4623_v12 = vpop.f32.mrb[12].mxu0  ;;  %4461 = vmax.xlane.f32.xlu1 %v4460_v13 }
 0xae7   : > { %v8263_v14 = vpop.f32.mrb[13].mxu0  ;;  %v4630_v17 = vmul.f32 0.17677669, %v4623_v12 }
 0xae8   : > { %v4626_v15 = vpop.f32.mrb[14].mxu0 }
 0xae9   : > { %v8264_v16 = vpop.f32.mrb[15].mxu0  ;;  %v4631_v20 = vmul.f32 0.17677669, %v4626_v15  ;;  %v4632_v21 = vsel %vm4116_vm5, %v4630_v17, -inf }
 0xaea   : > { %4464 = vmax.xlane.f32.xlu1 %v4463_v19 }
 0xaeb   : > { %v4635_v23 = vsel %vm4120_vm6, %v4631_v20, -inf }
 0xaee   : > { %4633 = vmax.xlane.f32.xlu1 %v4632_v21 }
 0xaf2   : > { %4636 = vmax.xlane.f32.xlu1 %v4635_v23 }
 0xb6f   : > { %v4289_v24 = vpop.xlane.xlu1 %4288 }
 0xb70   : > { %v4293_v33 = vsub.f32 %v4285_v62, %v4289_v24 }
 0xb71   : > { %v4292_v35 = vpop.xlane.xlu0 %4291 }
 0xb72   : > { %v4295_v40 = vmul.f32 1.442695, %v4293_v33  ;;  %v4294_v41 = vsub.f32 %v4286_v5, %v4292_v35  ;;  %v9287_v35 = vld [vmem:[#allocation11 + $0x30] sm:$0xff]  }
 0xb73   : > { %v4462_v25 = vpop.xlane.xlu1 %4461 }
 0xb74   : > { %v4466_v26 = vsub.f32 %v4458_v8, %v4462_v25  ;;  %v4297_v49 = vmul.f32 1.442695, %v4294_v41  ;;  %v9281_v25 = vld [vmem:[#allocation11] sm:$0xff]  }
 0xb75   : > { %8272 = vmatpush3.bf16.msra.mxu0 %v9281_v25  ;;  %v9306_v25 = vld [vmem:[#allocation12 + $0x54] ss:$8 sps:$4 sm:$0xff]  }
 0xb76   : > { %v4468_v27 = vmul.f32 1.442695, %v4466_v26  ;;  %8273 = vmatprep.subr.bf16.mxu0 %v9994_v46  ;;  %v9282_v26 = vld [vmem:[#allocation11 + $0x8] sm:$0xff]  }
 0xb77   : > { %v4465_v28 = vpop.xlane.xlu1 %4464 }
 0xb78   : > { %9445 = vpow2.f32 %v4468_v27  ;;  %v4467_v29 = vsub.f32 %v4459_v11, %v4465_v28  ;;  %v9283_v27 = vld [vmem:[#allocation11 + $0x10] sm:$0xff]   ;;  %v9284_v28 = vld [vmem:[#allocation11 + $0x18] sm:$0xff]  }
 0xb79   : > { %8274 = vmatpush3.bf16.msra.mxu0 %v9282_v26  ;;  %v9304_v26 = vld [vmem:[#allocation12 + $0x50] ss:$8 sps:$4 sm:$0xff]  }
 0xb7a   : > { %v4470_v30 = vmul.f32 1.442695, %v4467_v29  ;;  %8275 = vmatprep.subr.bf16.mxu0 %v9994_v46  ;;  %v9285_v29 = vld [vmem:[#allocation11 + $0x20] sm:$0xff]  }
 0xb7b   : > { %v4634_v31 = vpop.xlane.xlu1 %4633 }
 0xb7c   : > { %9447 = vpow2.f32 %v4470_v30  ;;  %v4638_v32 = vsub.f32 %v4630_v17, %v4634_v31 }
 0xb7d   : > { %8276 = vmatpush3.bf16.msra.mxu0 %v9283_v27  ;;  %v9309_v27 = vld [vmem:[#allocation12 + $0x64] ss:$8 sps:$4 sm:$0xff]  }
 0xb7e   : > { %v4640_v34 = vmul.f32 1.442695, %v4638_v32  ;;  %8277 = vmatprep.subr.bf16.mxu0 %v9994_v46 }
 0xb7f   : > { %v4637_v37 = vpop.xlane.xlu1 %4636 }
 0xb80   : > { %9449 = vpow2.f32 %v4640_v34  ;;  %v4639_v38 = vsub.f32 %v4631_v20, %v4637_v37  ;;  %v9286_v34 = vld [vmem:[#allocation11 + $0x28] sm:$0xff]  }
 0xb81   : > { %8278 = vmatpush3.bf16.msra.mxu0 %v9284_v28  ;;  %v9307_v28 = vld [vmem:[#allocation12 + $0x60] ss:$8 sps:$4 sm:$0xff]  }
 0xb82   : > { %v9446_v39 = vpop.eup %9445  ;;  %v4642_v42 = vmul.f32 1.442695, %v4639_v38  ;;  %8279 = vmatprep.subr.bf16.mxu0 %v9994_v46 }
 0xb83   : > { %v4472_v43 = vsel %vm4116_vm5, %v9446_v39, 0.0 }
 0xb84   : > { %9451 = vpow2.f32 %v4642_v42  ;;  %4473 = vadd.xlane.f32.xlu1 %v4472_v43 }
 0xb85   : > { %9453 = vpow2.f32 %v4295_v40  ;;  %8280 = vmatpush3.bf16.msra.mxu0 %v9285_v29  ;;  %v9288_v40 = vld [vmem:[#allocation11 + $0x38] sm:$0xff]  }
 0xb86   : > { %v9448_v45 = vpop.eup %9447  ;;  %9455 = vpow2.f32 %v4297_v49  ;;  %8281 = vmatprep.subr.bf16.mxu0 %v9994_v46  ;;  %v9312_v29 = vld [vmem:[#allocation12 + $0x74] ss:$8 sps:$4 sm:$0xff]  }
 0xb87   : > { %v4475_v50 = vsel %vm4120_vm6, %v9448_v45, 0.0 }
 0xb88   : > { %4476 = vadd.xlane.f32.xlu1 %v4475_v50 }
 0xb89   : > { %8282 = vmatpush3.bf16.msra.mxu0 %v9286_v34 }
 0xb8a   : > { %v9450_v51 = vpop.eup %9449  ;;  %8283 = vmatprep.subr.bf16.mxu0 %v9994_v46 }
 0xb8b   : > { %v4644_v52 = vsel %vm4116_vm5, %v9450_v51, 0.0 }
 0xb8c   : > { %4645 = vadd.xlane.f32.xlu0 %v4644_v52 }
 0xb8d   : > { %8284 = vmatpush3.bf16.msra.mxu0 %v9287_v35 }
 0xb8e   : > { %v9452_v53 = vpop.eup %9451  ;;  %8285 = vmatprep.subr.bf16.mxu0 %v9994_v46 }
 0xb8f   : > { %v4647_v54 = vsel %vm4120_vm6, %v9452_v53, 0.0  ;;  %v9454_v55 = vpop.eup %9453 }
 0xb90   : > { %4648 = vadd.xlane.f32.xlu1 %v4647_v54  ;;  %v4299_v56 = vsel %vm4116_vm5, %v9454_v55, 0.0  ;;  %v9456_v57 = vpop.eup %9455 }
 0xb91   : > { %v4302_v58 = vsel %vm4120_vm6, %v9456_v57, 0.0  ;;  %8286 = vmatpush3.bf16.msra.mxu0 %v9288_v40  ;;  %v7873_v40 = vld [vmem:[%s10976_s16] ss:$0 sm:$0xff] }
 0xb94   : > { %4300 = vadd.xlane.f32.xlu1 %v4299_v56 }
 0xb98   : > { %4303 = vadd.xlane.f32.xlu1 %v4302_v58 }
 0xba2   : > { %4311 = vrot.lane.b32.xlu0 %v10480_v36, %s10908_s18 }
 0xba9   : > { %4483 = vrot.lane.b32.xlu1 %v10480_v36, %s9998_s2 }
 0xbad   : > { %4655 = vrot.lane.b32.xlu1 %v10480_v36, %s10906_s15 }
 0xc11   : > { %v4474_v59 = vpop.xlane.xlu1 %4473 }
 0xc15   : > { %v4477_v60 = vpop.xlane.xlu1 %4476 }
 0xc19   : > { %v4646_v61 = vpop.xlane.xlu0 %4645 }
 0xc1d   : > { %v4649_v62 = vpop.xlane.xlu1 %4648  ;;  %v4312_v63 = vpop.permute.xlu0 %4311 }
 0xc1e   : > { %v4317_v1 = vand.u32 %v4312_v63, %v10483_v47 }
 0xc20   : > { %8238 = vmatpush3.bf16.msra.mxu1 %v4317_v1 }
 0xc21   : > { %v4301_v3 = vpop.xlane.xlu1 %4300  ;;  %8251 = vmatprep.subr.bf16.mxu1 %v9994_v46 }
 0xc22   : > { %9457 = vrcp.f32 %v4301_v3 }
 0xc25   : > { %v4304_v4 = vpop.xlane.xlu1 %4303 }
 0xc26   : > { %9459 = vrcp.f32 %v4304_v4 }
 0xc27   : > { %9461 = vrcp.f32 %v4477_v60  ;;  %v7872_v60 = vld [vmem:[%s10975_s26] ss:$0 sm:$0xff] }
 0xc28   : > { %9463 = vrcp.f32 %v4474_v59 }
 0xc29   : > { %v4484_v8 = vpop.permute.xlu1 %4483  ;;  %9465 = vrcp.f32 %v4649_v62 }
 0xc2a   : > { %9467 = vrcp.f32 %v4646_v61  ;;  %v4489_v11 = vand.u32 %v4484_v8, %v10483_v47  ;;  %v9294_v8 = vld [vmem:[#allocation12 + $0x14] ss:$8 sps:$4 sm:$0xff]  }
 0xc2c   : > { %v9458_v5 = vpop.eup %9457 }
 0xc2d   : > { %v4307_v7 = vmul.f32 %v9458_v5, %v9454_v55  ;;  %v4656_v15 = vpop.permute.xlu1 %4655 }
 0xc2e   : > { %v4661_v19 = vand.u32 %v4656_v15, %v10483_v47 }
 0xc30   : > { %v9460_v6 = vpop.eup %9459 }
 0xc31   : > { %v4308_v36 = vmul.f32 %v9460_v6, %v9456_v57  ;;  %v9462_v10 = vpop.eup %9461 }
 0xc32   : > { %v9464_v12 = vpop.eup %9463  ;;  %v4481_v13 = vmul.f32 %v9462_v10, %v9448_v45 }
 0xc33   : > { %v4309_v9 = vpack.c.bf16 %v4308_v36, %v4307_v7  ;;  %v4480_v14 = vmul.f32 %v9464_v12, %v9446_v39  ;;  %v9466_v17 = vpop.eup %9465  ;;  %v9289_v7 = vld [vmem:[#allocation12] ss:$8 sps:$4 sm:$0xff]   ;;  %v9291_v36 = vld [vmem:[#allocation12 + $0x4] ss:$8 sps:$4 sm:$0xff]  }
 0xc34   : > { %v9468_v20 = vpop.eup %9467  ;;  %v4653_v21 = vmul.f32 %v9466_v17, %v9452_v53  ;;  %v9297_v17 = vld [vmem:[#allocation12 + $0x24] ss:$8 sps:$4 sm:$0xff]  }
 0xc35   : > { %8240 = vmatmul.mubr.msk.bf16.vlgmr.msra.gmra.mrb[28].mxu1 %vm4116_vm5, %v4309_v9  ;;  %v4482_v16 = vpack.c.bf16 %v4481_v13, %v4480_v14  ;;  %v4652_v23 = vmul.f32 %v9468_v20, %v9450_v51  ;;  %v9300_v20 = vld [vmem:[#allocation12 + $0x34] ss:$8 sps:$4 sm:$0xff]  }
 0xc36   : > { %8252 = vmatpush3.bf16.msra.mxu1 %v4489_v11  ;;  %8253 = vmatprep.mubr.msk.bf16.mxu1 %vm9995_vm1, %v9994_v46 }
 0xc37   : > { %8265 = vmatprep.subr.bf16.mxu1 %v9994_v46  ;;  %v4654_v24 = vpack.c.bf16 %v4653_v21, %v4652_v23  ;;  %v9298_v21 = vld [vmem:[#allocation12 + $0x30] ss:$8 sps:$4 sm:$0xff]   ;;  %v9303_v23 = vld [vmem:[#allocation12 + $0x44] ss:$8 sps:$4 sm:$0xff]  }
 0xc3d   : > { %8254 = vmatmul.mubr.msk.bf16.vlgmr.msra.gmra.mrb[32].mxu1 %vm4116_vm5, %v4482_v16 }
 0xc3e   : > { %8266 = vmatpush3.bf16.msra.mxu1 %v4661_v19  ;;  %8267 = vmatprep.mubr.msk.bf16.mxu1 %vm9995_vm1, %v9994_v46  ;;  %v9295_v19 = vld [vmem:[#allocation12 + $0x20] ss:$8 sps:$4 sm:$0xff]  }
 0xc3f   : > { %4986 = vmatprep.subr.bf16.mxu1 %v9291_v36  ;;  %v9328_v36 = vld [vmem:[#allocation14 + $0x38] sm:$0xff]  }
 0xc45   : > { %8268 = vmatmul.mubr.msk.bf16.vlgmr.msra.gmra.mrb[36].mxu1 %vm4116_vm5, %v4654_v24  ;;  %v9301_v24 = vld [vmem:[#allocation12 + $0x40] ss:$8 sps:$4 sm:$0xff]  }
 0xc46   : > { %5018 = vmatprep.mubr.bf16.mxu1 %v9993_v44  ;;  %4987 = vmatpush1.bf16.msra.mxu1 %v9289_v7  ;;  %v9327_v7 = vld [vmem:[#allocation14 + $0x78] sm:$0xff]  }
 0xc47   : > { %4988 = vmatprep.subr.bf16.mxu1 %v9294_v8  ;;  %v4894_v8 = vld [vmem:[%s10978_s7] sm:$0x3] }
 0xd08   : > { %v4353_v30 = vpop.f32.mrb[28].mxu1 }
 0xd09   : > { %4362 = vrot.lane.b32.xlu0 %v4353_v30, %s10906_s15  ;;  %v8241_v31 = vpop.f32.mrb[29].mxu1  ;;  %v9310_v30 = vld [vmem:[#allocation12 + $0x70] ss:$8 sps:$4 sm:$0xff]  }
 0xd0a   : > { %v4356_v32 = vpop.f32.mrb[30].mxu1 }
 0xd0b   : > { %4364 = vrot.lane.b32.xlu1 %v4356_v32, %s10906_s15  ;;  %v8242_v33 = vpop.f32.mrb[31].mxu1  ;;  %s10979_s15 = smov %s10978_s7  ;;  %s10982_s7 = smov 96  }
 0xd10   : > { %v4525_v37 = vpop.f32.mrb[32].mxu1 }
 0xd11   : > { %4534 = vrot.lane.b32.xlu0 %v4525_v37, %s9998_s2  ;;  %v8255_v38 = vpop.f32.mrb[33].mxu1 }
 0xd12   : > { %v4528_v39 = vpop.f32.mrb[34].mxu1 }
 0xd13   : > { %4536 = vrot.lane.b32.xlu1 %v4528_v39, %s9998_s2  ;;  %v8256_v41 = vpop.f32.mrb[35].mxu1 }
 0xd18   : > { %v4697_v42 = vpop.f32.mrb[36].mxu1 }
 0xd19   : > { %4706 = vrot.lane.b32.xlu0 %v4697_v42, %s10908_s18  ;;  %v8269_v43 = vpop.f32.mrb[37].mxu1 }
 0xd1a   : > { %v4700_v45 = vpop.f32.mrb[38].mxu1 }
 0xd1b   : > { %4708 = vrot.lane.b32.xlu1 %v4700_v45, %s10908_s18  ;;  %v8270_v49 = vpop.f32.mrb[39].mxu1  ;;  %v7874_v45 = vld [vmem:[%s10977_s30] ss:$0 sm:$0xff]  ;;  %s10981_s18 = smov %s10980_s28 }
 0xd7b   : > { %v4363_v50 = vpop.permute.xlu0 %4362 }
 0xd7c   : > { %4369 = vst.msk [vmem:[#allocation2] sm:$0xff] %vm4368_vm8, %v4363_v50 }
 0xd7d   : > { %v4365_v51 = vpop.permute.xlu1 %4364 }
 0xd7e   : > { %4371 = vst.msk [vmem:[#allocation2 + $0x8] sm:$0x1] %vm4370_vm9, %v4365_v51 }
 0xd83   : > { %v4535_v52 = vpop.permute.xlu0 %4534 }
 0xd84   : > { %4541 = vst.msk [vmem:[#allocation2] sm:$0xff] %vm4540_vm10, %v4535_v52 }
 0xd85   : > { %v4537_v53 = vpop.permute.xlu1 %4536 }
 0xd86   : > { %4543 = vst.msk [vmem:[#allocation2 + $0x8] sm:$0x1] %vm4542_vm11, %v4537_v53  ;;  %v9313_v53 = vld [vmem:[#allocation14 + $0x40] sm:$0xff]  }
 0xd87   : > { %8086 = vmatprep.subr.bf16.mxu0 %v9313_v53 }
 0xd8b   : > { %v4707_v54 = vpop.permute.xlu0 %4706 }
 0xd8c   : > { %4713 = vst.msk [vmem:[#allocation2] sm:$0xff] %vm4712_vm12, %v4707_v54  ;;  %v9314_v54 = vld [vmem:[#allocation14] sm:$0xff]  }
 0xd8d   : > { %v4709_v55 = vpop.permute.xlu1 %4708 }
 0xd8e   : > { %4715 = vst.msk [vmem:[#allocation2 + $0x8] sm:$0x1] %vm4714_vm13, %v4709_v55  ;;  %v9315_v55 = vld [vmem:[#allocation14 + $0x48] sm:$0xff]  }
 0xd93   : > { %v4716_v56 = vld [vmem:[#allocation2] sm:$0xff] }
 0xd95   : > { %v4717_v57 = vld [vmem:[#allocation2 + $0x8] sm:$0x1] }
 0xd96   : > { %v4734_v58 = vpack.c.bf16 %v4717_v57, %v4716_v56  ;;  %v9316_v56 = vld [vmem:[#allocation14 + $0x8] sm:$0xff]   ;;  %v9317_v57 = vld [vmem:[#allocation14 + $0x50] sm:$0xff]  }
 0xd98   : > { %8288 = vmatmul.mubr.bf16.vlgmr.msra.gmra.mrb[16].mxu0 %v4734_v58  ;;  %v9318_v58 = vld [vmem:[#allocation14 + $0x10] sm:$0xff]  }
 0xd99   : > { %8087 = vmatpush3.bf16.msra.mxu0 %v9314_v54 }
 0xd9a   : > { %8088 = vmatprep.subr.bf16.mxu0 %v9315_v55 }
 0xd9d   : > { %8089 = vmatpush3.bf16.msra.mxu0 %v9316_v56 }
 0xd9e   : > { %8090 = vmatprep.subr.bf16.mxu0 %v9317_v57 }
 0xda1   : > { %8091 = vmatpush3.bf16.msra.mxu0 %v9318_v58 }
 0xe6b   : > { %v4817_v59 = vpop.f32.mrb[16].mxu0 }
 0xe6c   : > { %v4824_v61 = vadd.f32 %v4817_v59, %v10449_v22  ;;  %v8289_v62 = vpop.f32.mrb[17].mxu0  ;;  %v9292_v22 = vld [vmem:[#allocation12 + $0x10] ss:$8 sps:$4 sm:$0xff]  }
 0xe6d   : > { %v4820_v63 = vpop.f32.mrb[18].mxu0  ;;  %4989 = vmatpush1.bf16.msra.mxu1 %v9292_v22  ;;  %v9319_v59 = vld [vmem:[#allocation14 + $0x58] sm:$0xff]   ;;  %v9322_v62 = vld [vmem:[#allocation14 + $0x20] sm:$0xff]   ;;  %v4899_v22 = vrot.slane %v4894_v8, %v10415_v0 }
 0xe6e   : > { %v10578_v1 = vadd.f32 %v7872_v60, %v4824_v61  ;;  %v4825_v3 = vadd.f32 %v4820_v63, %v10443_v18  ;;  %v8290_v4 = vpop.f32.mrb[19].mxu0  ;;  %4990 = vmatprep.subr.bf16.mxu1 %v9297_v17  ;;  %8092 = vmatprep.subr.bf16.mxu0 %v9319_v59  ;;  %v9321_v61 = vld [vmem:[#allocation14 + $0x60] sm:$0xff]   ;;  %v9323_v63 = vld [vmem:[#allocation14 + $0x68] sm:$0xff]  }
 0xe6f   : > { %v9325_v4 = vld [vmem:[#allocation14 + $0x70] sm:$0xff]  }
 0xe70   : > { %v10581_v5 = vadd.f32 %v7872_v60, %v4825_v3  ;;  %4837 = vadd.xlane.f32.xlu1 %v10578_v1  ;;  %v9320_v60 = vld [vmem:[#allocation14 + $0x18] sm:$0xff]   ;;  %v9324_v3 = vld [vmem:[#allocation14 + $0x28] sm:$0xff]  }
 0xe71   : > { %4991 = vmatpush1.bf16.msra.mxu1 %v9295_v19  ;;  %8093 = vmatpush3.bf16.msra.mxu0 %v9320_v60 }
 0xe72   : > { %v4839_v6 = vsel %vm3723_vm0, %v10581_v5, 0.0  ;;  %4992 = vmatprep.subr.bf16.mxu1 %v9300_v20  ;;  %8094 = vmatprep.subr.bf16.mxu0 %v9321_v61 }
 0xe73   : > { %4840 = vadd.xlane.f32.xlu0 %v4839_v6  ;;  %v9326_v6 = vld [vmem:[#allocation14 + $0x30] sm:$0xff]  }
 0xe75   : > { %4993 = vmatpush1.bf16.msra.mxu1 %v9298_v21  ;;  %8095 = vmatpush3.bf16.msra.mxu0 %v9322_v62 }
 0xe76   : > { %4994 = vmatprep.subr.bf16.mxu1 %v9303_v23  ;;  %8096 = vmatprep.subr.bf16.mxu0 %v9323_v63 }
 0xe79   : > { %4995 = vmatpush1.bf16.msra.mxu1 %v9301_v24  ;;  %8097 = vmatpush3.bf16.msra.mxu0 %v9324_v3 }
 0xe7a   : > { %4996 = vmatprep.subr.bf16.mxu1 %v9306_v25  ;;  %8098 = vmatprep.subr.bf16.mxu0 %v9325_v4 }
 0xe7d   : > { %4997 = vmatpush1.bf16.msra.mxu1 %v9304_v26  ;;  %8099 = vmatpush3.bf16.msra.mxu0 %v9326_v6 }
 0xe7e   : > { %4998 = vmatprep.subr.bf16.mxu1 %v9309_v27  ;;  %8100 = vmatprep.subr.bf16.mxu0 %v9327_v7  ;;  %v7907_v7 = vld [vmem:[%s10980_s28] ss:$0 sm:$0xff]  ;;  %s10983_s28 = smov 32  }
 0xe81   : > { %4999 = vmatpush1.bf16.msra.mxu1 %v9307_v28  ;;  %8101 = vmatpush3.bf16.msra.mxu0 %v9328_v36 }
 0xe82   : > { %5000 = vmatprep.subr.bf16.mxu1 %v9312_v29  ;;  %8291 = vmatprep.subr.bf16.mxu0 %v9994_v46 }
 0xe85   : > { %5001 = vmatpush1.bf16.msra.mxu1 %v9310_v30 }
 0xefd   : > { %v4838_v9 = vpop.xlane.xlu1 %4837 }
 0xefe   : > { %v4842_v10 = vmul.f32 0.0078125, %v4838_v9  ;;  %v4903_v9 = vrot.slane %v4894_v8, %v10421_v2 }
 0xf00   : > { %v4844_v18 = vsub.f32 %v10578_v1, %v4842_v10  ;;  %v4841_v11 = vpop.xlane.xlu0 %4840 }
 0xf01   : > { %v4843_v12 = vmul.f32 0.0078125, %v4841_v11 }
 0xf02   : > { %v4846_v13 = vmul.f32 %v4844_v18, %v4844_v18 }
 0xf03   : > { %v4845_v14 = vsub.f32 %v10581_v5, %v4843_v12 }
 0xf04   : > { %4848 = vadd.xlane.f32.xlu0 %v4846_v13 }
 0xf05   : > { %v4847_v15 = vmul.f32 %v4845_v14, %v4845_v14 }
 0xf07   : > { %v4850_v16 = vsel %vm3723_vm0, %v4847_v15, 0.0 }
 0xf08   : > { %4851 = vadd.xlane.f32.xlu0 %v4850_v16 }
 0xf91   : > { %v4849_v31 = vpop.xlane.xlu0 %4848 }
 0xf92   : > { %v4853_v32 = vmul.f32 0.0078125, %v4849_v31 }
 0xf94   : > { %v4855_v33 = vadd.f32 1e-06, %v4853_v32 }
 0xf95   : > { %v4852_v34 = vpop.xlane.xlu0 %4851 }
 0xf96   : > { %9469 = vrsqrt.f32 %v4855_v33  ;;  %v4854_v35 = vmul.f32 0.0078125, %v4852_v34 }
 0xf98   : > { %v4856_v37 = vadd.f32 1e-06, %v4854_v35 }
 0xf9a   : > { %9471 = vrsqrt.f32 %v4856_v37 }
 0xfa0   : > { %v9470_v38 = vpop.eup %9469 }
 0xfa1   : > { %v4859_v39 = vmul.f32 %v9470_v38, %v4844_v18 }
 0xfa3   : > { %v4867_v43 = vmul.f32 %v7873_v40, %v4859_v39 }
 0xfa4   : > { %v9472_v41 = vpop.eup %9471 }
 0xfa5   : > { %v4860_v42 = vmul.f32 %v9472_v41, %v4845_v14  ;;  %v4875_v50 = vadd.f32 %v7874_v45, %v4867_v43 }
 0xfa7   : > { %v4868_v49 = vmul.f32 %v7873_v40, %v4860_v42 }
 0xfa9   : > { %v4876_v51 = vadd.f32 %v7874_v45, %v4868_v49 }
 0xfab   : > { %v4893_v52 = vpack.c.bf16 %v4876_v51, %v4875_v50 }
 0xfad   : > { %5019 = vmatmul.mubr.bf16.vlgmr.msra.gmra.mrb[40].mxu1 %v4893_v52 }
 0xfae   : > { %5503 = vmatprep.mubr.bf16.mxu1 %v9993_v44 }
0x1080   : > { %v5020_v10 = vpop.f32.mrb[40].mxu1 }
0x1081   : > { %v5021_v18 = vadd.f32 %v5020_v10, %v4899_v22  ;;  %v5022_v11 = vpop.f32.mrb[41].mxu1 }
0x1082   : > { %v5023_v12 = vadd.f32 %v5022_v11, %v4903_v9  ;;  %v5024_v13 = vpop.f32.mrb[42].mxu1  ;;  %v9329_v11 = vld [vmem:[#allocation9 + $0xc0] ss:$12 sps:$4 sm:$0xff]  }
0x1083   : > { %v5029_v14 = vmul.f32 %v5021_v18, %v5021_v18  ;;  %v5025_v15 = vadd.f32 %v5024_v13, %v4899_v22  ;;  %v5026_v16 = vpop.f32.mrb[43].mxu1  ;;  %v9332_v13 = vld [vmem:[#allocation9 + $0xc8] ss:$12 sps:$4 sm:$0xff]  }
0x1084   : > { %v5030_v17 = vmul.f32 %v5023_v12, %v5023_v12  ;;  %v5027_v19 = vadd.f32 %v5026_v16, %v4903_v9 }
0x1085   : > { %v5033_v20 = vmul.f32 %v5029_v14, %v5021_v18  ;;  %v5031_v21 = vmul.f32 %v5025_v15, %v5025_v15  ;;  %v9335_v14 = vld [vmem:[#allocation9 + $0xdc] ss:$12 sps:$4 sm:$0xff]  }
0x1086   : > { %v5034_v23 = vmul.f32 %v5030_v17, %v5023_v12  ;;  %v5032_v24 = vmul.f32 %v5027_v19, %v5027_v19 }
0x1087   : > { %v5037_v25 = vmul.f32 0.044715, %v5033_v20  ;;  %v5035_v26 = vmul.f32 %v5031_v21, %v5025_v15 }
0x1088   : > { %v5038_v27 = vmul.f32 0.044715, %v5034_v23  ;;  %v5036_v28 = vmul.f32 %v5032_v24, %v5027_v19 }
0x1089   : > { %v5041_v29 = vadd.f32 %v5037_v25, %v5021_v18  ;;  %v5039_v30 = vmul.f32 0.044715, %v5035_v26  ;;  %v9336_v25 = vld [vmem:[#allocation9 + $0xe0] ss:$12 sps:$4 sm:$0xff]  }
0x108a   : > { %v5042_v31 = vadd.f32 %v5038_v27, %v5023_v12  ;;  %v5040_v32 = vmul.f32 0.044715, %v5036_v28  ;;  %v9339_v26 = vld [vmem:[#allocation9 + $0xf4] ss:$12 sps:$4 sm:$0xff]   ;;  %v9337_v27 = vld [vmem:[#allocation9 + $0xf0] ss:$12 sps:$4 sm:$0xff]  }
0x108b   : > { %v5045_v33 = vmul.f32 0.7978846, %v5041_v29  ;;  %v5043_v34 = vadd.f32 %v5039_v30, %v5025_v15  ;;  %v9340_v28 = vld [vmem:[#allocation9 + $0xf8] ss:$12 sps:$4 sm:$0xff]   ;;  %v9341_v30 = vld [vmem:[#allocation9 + $0x108] ss:$12 sps:$4 sm:$0xff]  }
0x108c   : > { %v5046_v35 = vmul.f32 0.7978846, %v5042_v31  ;;  %v5044_v37 = vadd.f32 %v5040_v32, %v5027_v19  ;;  %v9343_v29 = vld [vmem:[#allocation9 + $0x10c] ss:$12 sps:$4 sm:$0xff]   ;;  %v9344_v31 = vld [vmem:[#allocation9 + $0x110] ss:$12 sps:$4 sm:$0xff]  }
0x108d   : > { %9473 = vtanh.f32 %v5045_v33  ;;  %v5047_v38 = vmul.f32 0.7978846, %v5043_v34  ;;  %v9347_v32 = vld [vmem:[#allocation9 + $0x124] ss:$12 sps:$4 sm:$0xff]   ;;  %v9345_v33 = vld [vmem:[#allocation9 + $0x120] ss:$12 sps:$4 sm:$0xff]  }
0x108e   : > { %9475 = vtanh.f32 %v5046_v35  ;;  %v5048_v39 = vmul.f32 0.7978846, %v5044_v37  ;;  %v9348_v34 = vld [vmem:[#allocation9 + $0x128] ss:$12 sps:$4 sm:$0xff]   ;;  %v9349_v37 = vld [vmem:[#allocation9 + $0x138] ss:$12 sps:$4 sm:$0xff]  }
0x108f   : > { %9477 = vtanh.f32 %v5047_v38  ;;  %v9351_v35 = vld [vmem:[#allocation9 + $0x13c] ss:$12 sps:$4 sm:$0xff]   ;;  %v9352_v38 = vld [vmem:[#allocation9 + $0x140] ss:$12 sps:$4 sm:$0xff]  }
0x1090   : > { %9479 = vtanh.f32 %v5048_v39  ;;  %v9355_v39 = vld [vmem:[#allocation9 + $0x154] ss:$12 sps:$4 sm:$0xff]  }
0x1097   : > { %v9474_v40 = vpop.eup %9473 }
0x1098   : > { %v9476_v41 = vpop.eup %9475  ;;  %v5053_v42 = vadd.f32 1.0, %v9474_v40  ;;  %v9353_v40 = vld [vmem:[#allocation9 + $0x150] ss:$12 sps:$4 sm:$0xff]  }
0x1099   : > { %v9478_v43 = vpop.eup %9477  ;;  %v5054_v45 = vadd.f32 1.0, %v9476_v41  ;;  %v9356_v41 = vld [vmem:[#allocation9 + $0x158] ss:$12 sps:$4 sm:$0xff]  }
0x109a   : > { %v9480_v49 = vpop.eup %9479  ;;  %v5057_v50 = vmul.f32 0.5, %v5053_v42  ;;  %v5055_v51 = vadd.f32 1.0, %v9478_v43  ;;  %v9359_v42 = vld [vmem:[#allocation9 + $0x16c] ss:$12 sps:$4 sm:$0xff]   ;;  %v9357_v43 = vld [vmem:[#allocation9 + $0x168] ss:$12 sps:$4 sm:$0xff]  }
0x109b   : > { %v5056_v52 = vadd.f32 1.0, %v9480_v49  ;;  %v5058_v53 = vmul.f32 0.5, %v5054_v45  ;;  %v9360_v45 = vld [vmem:[#allocation9 + $0x170] ss:$12 sps:$4 sm:$0xff]  }
0x109c   : > { %v5059_v54 = vmul.f32 0.5, %v5055_v51  ;;  %v5061_v56 = vmul.f32 %v5057_v50, %v5021_v18 }
0x109d   : > { %v5060_v55 = vmul.f32 0.5, %v5056_v52  ;;  %v5062_v58 = vmul.f32 %v5058_v53, %v5023_v12  ;;  %v9331_v12 = vld [vmem:[#allocation9 + $0xc4] ss:$12 sps:$4 sm:$0xff]  }
0x109e   : > { %v5063_v57 = vmul.f32 %v5059_v54, %v5025_v15  ;;  %5471 = vmatprep.subr.bf16.mxu1 %v9331_v12 }
0x109f   : > { %v5064_v59 = vmul.f32 %v5060_v55, %v5027_v19  ;;  %5472 = vmatpush1.bf16.msra.mxu1 %v9329_v11 }
0x10a0   : > { %v5097_v60 = vpack.c.bf16 %v5063_v57, %v5061_v56  ;;  %5473 = vmatprep.subr.bf16.mxu1 %v9335_v14  ;;  %v7910_v57 = vld [vmem:[%s10970_s21 + $0x1] ss:$0 sm:$0xff] }
0x10a1   : > { %v5098_v61 = vpack.c.bf16 %v5064_v59, %v5062_v58 }
0x10a3   : > { %5227 = vmatprep.mubr.bf16.mxu0 %v5098_v61  ;;  %v7911_v61 = vld [vmem:[%s10972_s11 + $0x1] ss:$0 sm:$0xff] }
0x10a4   : > { %5228 = vmatmul.mubr.bf16.vlgmr.msra.gmra.mrb[20].mxu0 %v5097_v60 }
0x10a5   : > { %8307 = vmatprep.mubr.msk.bf16.mxu0 %vm9995_vm1, %v9994_v46  ;;  %8292 = vmatpush3.bf16.msra.mxu0 %v9332_v13 }
0x10a6   : > { %8293 = vmatprep.subr.bf16.mxu0 %v9994_v46 }
0x10a9   : > { %8294 = vmatpush3.bf16.msra.mxu0 %v9336_v25 }
0x10aa   : > { %8295 = vmatprep.subr.bf16.mxu0 %v9994_v46 }
0x10ad   : > { %8296 = vmatpush3.bf16.msra.mxu0 %v9340_v28 }
0x10ae   : > { %8297 = vmatprep.subr.bf16.mxu0 %v9994_v46 }
0x10b1   : > { %8298 = vmatpush3.bf16.msra.mxu0 %v9344_v31 }
0x10b2   : > { %8299 = vmatprep.subr.bf16.mxu0 %v9994_v46 }
0x10b5   : > { %8300 = vmatpush3.bf16.msra.mxu0 %v9348_v34 }
0x10b6   : > { %8301 = vmatprep.subr.bf16.mxu0 %v9994_v46 }
0x10b9   : > { %8302 = vmatpush3.bf16.msra.mxu0 %v9352_v38 }
0x10ba   : > { %8303 = vmatprep.subr.bf16.mxu0 %v9994_v46 }
0x10bd   : > { %8304 = vmatpush3.bf16.msra.mxu0 %v9356_v41 }
0x10be   : > { %8305 = vmatprep.subr.bf16.mxu0 %v9994_v46 }
0x10c1   : > { %8306 = vmatpush3.bf16.msra.mxu0 %v9360_v45 }
0x10c2   : > { %8339 = vmatprep.subr.bf16.mxu0 %v9994_v46 }
0x1177   : > { %v8102_v62 = vpop.f32.mrb[20].mxu0 }
0x1178   : > { %v8103_v63 = vpop.f32.mrb[21].mxu0 }
0x1179   : > { %v8104_v3 = vadd.f32 %v8103_v63, %v8102_v62  ;;  %v8105_v4 = vpop.f32.mrb[22].mxu0 }
0x117a   : > { %v8106_v6 = vpop.f32.mrb[23].mxu0 }
0x117b   : > { %v5236_v36 = vadd.f32 %v8104_v3, %v10578_v1  ;;  %v8107_v8 = vadd.f32 %v8106_v6, %v8105_v4  ;;  %v9333_v1 = vld [vmem:[#allocation9 + $0xd8] ss:$12 sps:$4 sm:$0xff]   ;;  %v7912_v6 = vld [vmem:[%s10974_s10 + $0x3] sm:$0x7]  ;;  %s9827_s10 = sshll.u32 %s10000_s9, 4  ;;  %s9828_s10 = int_to_ptr.vmem [resolvable:$false] %s9827_s10 }
0x117c   : > { %5474 = vmatpush1.bf16.msra.mxu1 %v9333_v1  ;;  %s9829_s11 = scalar_lea.vmem %s9828_s10, 32 }
0x117d   : > { %v5237_v22 = vadd.f32 %v8107_v8, %v10581_v5  ;;  %v10601_v9 = vadd.f32 %v7907_v7, %v5236_v36  ;;  %5475 = vmatprep.subr.bf16.mxu1 %v9339_v26  ;;  %v5331_v36 = vrot.slane %v7912_v6, %v10415_v0  ;;  %v5339_v8 = vrot.slane %v7912_v6, %v10432_v48 }
0x117f   : > { %v10603_v10 = vadd.f32 %v7907_v7, %v5237_v22  ;;  %5251 = vadd.xlane.f32.xlu0 %v10601_v9  ;;  %v5335_v7 = vrot.slane %v7912_v6, %v10421_v2 }
0x1180   : > { %5476 = vmatpush1.bf16.msra.mxu1 %v9337_v27 }
0x1181   : > { %v5253_v18 = vsel %vm3723_vm0, %v10603_v10, 0.0  ;;  %5477 = vmatprep.subr.bf16.mxu1 %v9343_v29 }
0x1182   : > { %5254 = vadd.xlane.f32.xlu1 %v5253_v18 }
0x1184   : > { %5478 = vmatpush1.bf16.msra.mxu1 %v9341_v30 }
0x1185   : > { %5479 = vmatprep.subr.bf16.mxu1 %v9347_v32 }
0x1188   : > { %5480 = vmatpush1.bf16.msra.mxu1 %v9345_v33 }
0x1189   : > { %5481 = vmatprep.subr.bf16.mxu1 %v9351_v35 }
0x118c   : > { %5482 = vmatpush1.bf16.msra.mxu1 %v9349_v37 }
0x118d   : > { %5483 = vmatprep.subr.bf16.mxu1 %v9355_v39 }
0x1190   : > { %5484 = vmatpush1.bf16.msra.mxu1 %v9353_v40 }
0x1191   : > { %5485 = vmatprep.subr.bf16.mxu1 %v9359_v42 }
0x1194   : > { %5486 = vmatpush1.bf16.msra.mxu1 %v9357_v43 }
0x1195   : > { %8311 = vmatprep.subr.bf16.mxu1 %v9994_v46 }
0x120c   : > { %v5252_v5 = vpop.xlane.xlu0 %5251 }
0x120d   : > { %v5256_v15 = vmul.f32 0.0078125, %v5252_v5 }
0x120f   : > { %v10610_v16 = vsub.f32 %v10601_v9, %v5256_v15  ;;  %v5255_v17 = vpop.xlane.xlu1 %5254 }
0x1210   : > { %v5257_v19 = vmul.f32 0.0078125, %v5255_v17 }
0x1211   : > { %v5260_v20 = vmul.f32 %v10610_v16, %v10610_v16 }
0x1212   : > { %v10615_v21 = vsub.f32 %v10603_v10, %v5257_v19 }
0x1213   : > { %5262 = vadd.xlane.f32.xlu1 %v5260_v20 }
0x1214   : > { %v5261_v23 = vmul.f32 %v10615_v21, %v10615_v21 }
0x1216   : > { %v5264_v24 = vsel %vm3723_vm0, %v5261_v23, 0.0 }
0x1217   : > { %5265 = vadd.xlane.f32.xlu0 %v5264_v24 }
0x12a0   : > { %v5263_v49 = vpop.xlane.xlu1 %5262 }
0x12a1   : > { %v5267_v50 = vmul.f32 0.0078125, %v5263_v49 }
0x12a3   : > { %v5269_v51 = vadd.f32 1e-06, %v5267_v50 }
0x12a4   : > { %v5266_v52 = vpop.xlane.xlu0 %5265 }
0x12a5   : > { %9481 = vrsqrt.f32 %v5269_v51  ;;  %v5268_v53 = vmul.f32 0.0078125, %v5266_v52 }
0x12a7   : > { %v5270_v54 = vadd.f32 1e-06, %v5268_v53 }
0x12a9   : > { %9483 = vrsqrt.f32 %v5270_v54 }
0x12af   : > { %v9482_v55 = vpop.eup %9481 }
0x12b0   : > { %v5273_v56 = vmul.f32 %v9482_v55, %v10610_v16 }
0x12b2   : > { %v5281_v60 = vmul.f32 %v7910_v57, %v5273_v56 }
0x12b3   : > { %v9484_v58 = vpop.eup %9483 }
0x12b4   : > { %v5274_v59 = vmul.f32 %v9484_v58, %v10615_v21  ;;  %v5289_v63 = vadd.f32 %v7911_v61, %v5281_v60 }
0x12b6   : > { %v5282_v62 = vmul.f32 %v7910_v57, %v5274_v59 }
0x12b8   : > { %v5290_v3 = vadd.f32 %v7911_v61, %v5282_v62 }
0x12ba   : > { %v5324_v4 = vpack.c.bf16 %v5290_v3, %v5289_v63 }
0x12bc   : > { %5504 = vmatmul.mubr.bf16.vlgmr.msra.gmra.mrb[44].mxu1 %v5324_v4  ;;  %8308 = vmatmul.mubr.bf16.vlgmr.msra.gmra.mrb[24].mxu0 %v5324_v4 }
0x12bd   : > { %8315 = vmatprep.mubr.msk.bf16.mxu1 %vm9995_vm1, %v9994_v46  ;;  %8343 = vmatprep.mubr.msk.bf16.mxu0 %vm9995_vm1, %v9994_v46 }
0x138f   : > { %v5505_v22 = vpop.f32.mrb[44].mxu1  ;;  %v5548_v18 = vpop.f32.mrb[24].mxu0 }
0x1390   : > { %v5507_v11 = vpop.f32.mrb[45].mxu1  ;;  %v8309_v12 = vpop.f32.mrb[25].mxu0  ;;  %v5506_v5 = vadd.f32 %v5505_v22, %v5331_v36  ;;  %v5549_v15 = vadd.f32 %v5548_v18, %v5339_v8 }
0x1391   : > { %v5508_v13 = vadd.f32 %v5507_v11, %v5335_v7  ;;  %v5509_v14 = vpop.f32.mrb[46].mxu1  ;;  %v5551_v1 = vpop.f32.mrb[26].mxu0 }
0x1392   : > { %v5510_v16 = vadd.f32 %v5509_v14, %v5331_v36  ;;  %v5552_v17 = vadd.f32 %v5551_v1, %v5339_v8  ;;  %v5511_v19 = vpop.f32.mrb[47].mxu1  ;;  %v8310_v20 = vpop.f32.mrb[27].mxu0 }
0x1393   : > { %v5512_v21 = vadd.f32 %v5511_v19, %v5335_v7  ;;  %5555 = vxpose.xlu1.b32.start [1/2] (short) (narrow) %v5508_v13, 32 }
0x1394   : > { %v5587_v23 = vpack.c.bf16 %v5510_v16, %v5506_v5  ;;  %v10640_v24 = vpack.c.bf16 %v5552_v17, %v5549_v15 }
0x1395   : > { %v8712_v25 = vpack.i.bf16 %v5512_v21, %v5508_v13 }
0x1396   : > { %v5664_v31 = vand.u32 %v10640_v24, %v10483_v47 }
0x1397   : > { %5556 = vxpose.xlu1.b32.end [2/2] (short) (narrow) %v5512_v21, 32 }
0x1413   : > { %v5571_v48 = vpop.trf.xlu1 }
0x1417   : > { %v5572_v26 = vpop.trf.xlu1 }
0x1418   : > { %v5588_v27 = vpack.c.bf16 %v5572_v26, %v5571_v48 }
0x141a   : > { %8312 = vmatpush3.bf16.msra.mxu1 %v5588_v27 }
0x141b   : > { %v5573_v28 = vpop.trf.xlu1  ;;  %8313 = vmatprep.subr.bf16.mxu1 %v9994_v46 }
0x141f   : > { %v5574_v29 = vpop.trf.xlu1 }
0x1420   : > { %v5589_v30 = vpack.c.bf16 %v5574_v29, %v5573_v28 }
0x1422   : > { %8314 = vmatpush3.bf16.msra.mxu1 %v5589_v30 }
0x1423   : > { %8319 = vmatprep.subr.bf16.mxu1 %v9994_v46 }
0x1425   : > { %8316 = vmatmul.mubr.msk.bf16.vlgmr.msra.gmra.mrb[48].mxu1 %vm4069_vm4, %v5587_v23 }
0x1426   : > { %8320 = vmatpush3.bf16.msra.mxu1 %v5664_v31  ;;  %8321 = vmatprep.mubr.msk.bf16.mxu1 %vm9995_vm1, %v9994_v46 }
0x1427   : > { %8325 = vmatprep.subr.bf16.mxu1 %v9994_v46 }
0x14f8   : > { %v5627_v32 = vpop.f32.mrb[48].mxu1 }
0x14f9   : > { %v5634_v33 = vmul.f32 0.17677669, %v5627_v32  ;;  %v8317_v34 = vpop.f32.mrb[49].mxu1 }
0x14fa   : > { %v5630_v35 = vpop.f32.mrb[50].mxu1 }
0x14fb   : > { %v5635_v37 = vmul.f32 0.17677669, %v5630_v35  ;;  %v8318_v38 = vpop.f32.mrb[51].mxu1  ;;  %v5636_v39 = vsel %vm4116_vm5, %v5634_v33, -inf }
0x14fc   : > { %5637 = vmax.xlane.f32.xlu0 %v5636_v39 }
0x14fd   : > { %v5639_v40 = vsel %vm4120_vm6, %v5635_v37, -inf }
0x1500   : > { %5640 = vmax.xlane.f32.xlu0 %v5639_v40 }
0x1516   : > { %8713 = vrot.lane.b32.xlu0 %v8712_v25, %s10982_s7 }
0x151a   : > { %8718 = vrot.lane.b32.xlu0 %v8712_v25, %s9998_s2 }
0x151e   : > { %8723 = vrot.lane.b32.xlu0 %v8712_v25, %s10983_s28 }
0x1522   : > { %5752 = vrot.lane.b32.xlu0 %v5587_v23, %s10982_s7 }
0x1526   : > { %5923 = vrot.lane.b32.xlu0 %v5587_v23, %s9998_s2 }
0x1589   : > { %v5638_v41 = vpop.xlane.xlu0 %5637 }
0x158a   : > { %v5642_v42 = vsub.f32 %v5634_v33, %v5638_v41 }
0x158c   : > { %v5644_v43 = vmul.f32 1.442695, %v5642_v42 }
0x158d   : > { %v5641_v45 = vpop.xlane.xlu0 %5640 }
0x158e   : > { %9485 = vpow2.f32 %v5644_v43  ;;  %v5643_v49 = vsub.f32 %v5635_v37, %v5641_v45 }
0x1590   : > { %v5646_v50 = vmul.f32 1.442695, %v5643_v49 }
0x1591   : > { %v8714_v55 = vpop.permute.xlu0 %8713 }
0x1592   : > { %9487 = vpow2.f32 %v5646_v50  ;;  %v8715_v58 = vunpack.i.l.bf16 %v8714_v55  ;;  %v8716_v61 = vunpack.i.h.bf16 %v8714_v55 }
0x1595   : > { %v8719_v56 = vpop.permute.xlu0 %8718 }
0x1596   : > { %v8720_v57 = vunpack.i.l.bf16 %v8719_v56  ;;  %v8721_v59 = vunpack.i.h.bf16 %v8719_v56 }
0x1598   : > { %v9486_v51 = vpop.eup %9485  ;;  %v8727_v60 = vpack.i.bf16 %v8720_v57, %v8715_v58  ;;  %v8729_v62 = vpack.i.bf16 %v8721_v59, %v8716_v61 }
0x1599   : > { %v5648_v52 = vsel %vm4116_vm5, %v9486_v51, 0.0  ;;  %v8724_v63 = vpop.permute.xlu0 %8723 }
0x159a   : > { %5649 = vadd.xlane.f32.xlu0 %v5648_v52  ;;  %v8725_v3 = vunpack.i.l.bf16 %v8724_v63  ;;  %v8726_v4 = vunpack.i.h.bf16 %v8724_v63 }
0x159c   : > { %v9488_v53 = vpop.eup %9487 }
0x159d   : > { %v5651_v54 = vsel %vm4120_vm6, %v9488_v53, 0.0  ;;  %v5753_v6 = vpop.permute.xlu0 %5752 }
0x159e   : > { %5652 = vadd.xlane.f32.xlu1 %v5651_v54 }
0x15a1   : > { %v5924_v7 = vpop.permute.xlu0 %5923 }
0x15af   : > { %6093 = vrot.lane.b32.xlu1 %v5587_v23, %s10983_s28 }
0x15c7   : > { %8728 = vxpose.xlu0.b32.start [1/2] (short) (narrow) %v8727_v60, 32 }
0x15cb   : > { %8730 = vxpose.xlu0.b32.end [2/2] (short) (narrow) %v8729_v62, 32 }
0x15d8   : > { %6059 = vxpose.xlu1.b32.start [1/2] (short) (narrow) %v8725_v3, 32 }
0x15dc   : > { %6060 = vxpose.xlu1.b32.end [2/2] (short) (narrow) %v8726_v4, 32 }
0x15f4   : > { %8751 = vset.pattern.permute.xlu0 %v9993_v44 }
0x15fa   : > { %8752 = vset.pattern.permute.xlu1 %v9993_v44 }
0x1627   : > { %v5650_v36 = vpop.xlane.xlu0 %5649 }
0x1628   : > { %9489 = vrcp.f32 %v5650_v36 }
0x162b   : > { %v5653_v8 = vpop.xlane.xlu1 %5652 }
0x162c   : > { %9491 = vrcp.f32 %v5653_v8 }
0x162f   : > { %v6094_v26 = vpop.permute.xlu1 %6093 }
0x1632   : > { %v9490_v22 = vpop.eup %9489 }
0x1633   : > { %v5656_v11 = vmul.f32 %v9490_v22, %v9486_v51 }
0x1636   : > { %v9492_v18 = vpop.eup %9491 }
0x1637   : > { %v5657_v12 = vmul.f32 %v9492_v18, %v9488_v53 }
0x1639   : > { %v5658_v13 = vpack.c.bf16 %v5657_v12, %v5656_v11 }
0x163b   : > { %8322 = vmatmul.mubr.msk.bf16.vlgmr.msra.gmra.mrb[52].mxu1 %vm4116_vm5, %v5658_v13 }
0x163c   : > { %8329 = vmatprep.mubr.msk.bf16.mxu1 %vm9995_vm1, %v9994_v46 }
0x1647   : > { %v8731_v14 = vpop.trf.xlu0 }
0x1648   : > { %v8735_v1 = vunpack.i.h.bf16 %v8731_v14  ;;  %v8732_v5 = vunpack.i.l.bf16 %v8731_v14 }
0x164b   : > { %v8736_v15 = vpop.trf.xlu0 }
0x164c   : > { %v8740_v16 = vunpack.i.h.bf16 %v8736_v15  ;;  %v8737_v17 = vunpack.i.l.bf16 %v8736_v15 }
0x164e   : > { %v5749_v19 = vpack.c.bf16 %v8737_v17, %v8732_v5  ;;  %v5921_v20 = vpack.c.bf16 %v8740_v16, %v8735_v1 }
0x164f   : > { %v8741_v21 = vpop.trf.xlu0 }
0x1650   : > { %8326 = vmatpush3.bf16.msra.mxu1 %v5749_v19  ;;  %8340 = vmatpush3.bf16.msra.mxu0 %v5921_v20  ;;  %v8745_v23 = vunpack.i.h.bf16 %v8741_v21  ;;  %v8742_v25 = vunpack.i.l.bf16 %v8741_v21 }
0x1651   : > { %8327 = vmatprep.subr.bf16.mxu1 %v9994_v46  ;;  %8341 = vmatprep.subr.bf16.mxu0 %v9994_v46 }
0x1653   : > { %v8746_v48 = vpop.trf.xlu0 }
0x1654   : > { %v8750_v27 = vunpack.i.h.bf16 %v8746_v48  ;;  %v8747_v28 = vunpack.i.l.bf16 %v8746_v48 }
0x1656   : > { %v5750_v29 = vpack.c.bf16 %v8747_v28, %v8742_v25  ;;  %v5922_v30 = vpack.c.bf16 %v8750_v27, %v8745_v23 }
0x1658   : > { %v6075_v31 = vpop.trf.xlu1  ;;  %8328 = vmatpush3.bf16.msra.mxu1 %v5750_v29  ;;  %8342 = vmatpush3.bf16.msra.mxu0 %v5922_v30 }
0x1659   : > { %8353 = vmatprep.subr.bf16.mxu0 %v9994_v46  ;;  %8333 = vmatprep.subr.bf16.mxu1 %v9994_v46 }
0x165b   : > { %8330 = vmatmul.mubr.msk.bf16.vlgmr.msra.gmra.mrb[56].mxu1 %vm4069_vm4, %v5753_v6  ;;  %8344 = vmatmul.mubr.msk.bf16.vlgmr.msra.gmra.mrb[28].mxu0 %vm4069_vm4, %v5924_v7 }
0x165c   : > { %v6076_v32 = vpop.trf.xlu1  ;;  %8357 = vmatprep.mubr.msk.bf16.mxu0 %vm9995_vm1, %v9994_v46  ;;  %8335 = vmatprep.mubr.msk.bf16.mxu1 %vm9995_vm1, %v9994_v46 }
0x165d   : > { %v6091_v33 = vpack.c.bf16 %v6076_v32, %v6075_v31 }
0x165f   : > { %8354 = vmatpush3.bf16.msra.mxu0 %v6091_v33 }
0x1660   : > { %v6077_v34 = vpop.trf.xlu1  ;;  %8355 = vmatprep.subr.bf16.mxu0 %v9994_v46 }
0x1664   : > { %v6078_v35 = vpop.trf.xlu1 }
0x1665   : > { %v6092_v37 = vpack.c.bf16 %v6078_v35, %v6077_v34 }
0x1667   : > { %8356 = vmatpush3.bf16.msra.mxu0 %v6092_v37 }
0x1668   : > { %8367 = vmatprep.subr.bf16.mxu0 %v9994_v46 }
0x166a   : > { %8358 = vmatmul.mubr.msk.bf16.vlgmr.msra.gmra.mrb[32].mxu0 %vm4069_vm4, %v6094_v26 }
0x166b   : > { %8383 = vmatprep.mubr.msk.bf16.mxu0 %vm9995_vm1, %v9994_v46 }
0x170e   : > { %v5700_v38 = vpop.f32.mrb[52].mxu1 }
0x170f   : > { %5707 = vst.msk [vmem:[#allocation2] sm:$0xff] %vm4069_vm4, %v5700_v38  ;;  %v8323_v39 = vpop.f32.mrb[53].mxu1 }
0x1710   : > { %v5703_v40 = vpop.f32.mrb[54].mxu1 }
0x1711   : > { %5708 = vst.msk [vmem:[#allocation2 + $0x8] sm:$0x1] %vm4194_vm7, %v5703_v40  ;;  %v8324_v41 = vpop.f32.mrb[55].mxu1 }
0x172e   : > { %v5791_v42 = vpop.f32.mrb[56].mxu1  ;;  %v5962_v43 = vpop.f32.mrb[28].mxu0 }
0x172f   : > { %v5798_v45 = vmul.f32 0.17677669, %v5791_v42  ;;  %v8331_v49 = vpop.f32.mrb[57].mxu1  ;;  %v8345_v50 = vpop.f32.mrb[29].mxu0  ;;  %v5969_v56 = vmul.f32 0.17677669, %v5962_v43 }
0x1730   : > { %v5794_v51 = vpop.f32.mrb[58].mxu1  ;;  %v5965_v52 = vpop.f32.mrb[30].mxu0 }
0x1731   : > { %v5799_v53 = vmul.f32 0.17677669, %v5794_v51  ;;  %v8332_v54 = vpop.f32.mrb[59].mxu1  ;;  %v8346_v55 = vpop.f32.mrb[31].mxu0  ;;  %v5800_v57 = vsel %vm4116_vm5, %v5798_v45, -inf  ;;  %v5971_v60 = vsel %vm4116_vm5, %v5969_v56, -inf }
0x1732   : > { %5801 = vmax.xlane.f32.xlu0 %v5800_v57  ;;  %v5970_v59 = vmul.f32 0.17677669, %v5965_v52 }
0x1733   : > { %v5803_v58 = vsel %vm4120_vm6, %v5799_v53, -inf }
0x1734   : > { %5804 = vmax.xlane.f32.xlu1 %v5803_v58  ;;  %v5974_v61 = vsel %vm4120_vm6, %v5970_v59, -inf }
0x1736   : > { %5972 = vmax.xlane.f32.xlu0 %v5971_v60 }
0x173a   : > { %5975 = vmax.xlane.f32.xlu0 %v5974_v61 }
0x173d   : > { %v6132_v62 = vpop.f32.mrb[32].mxu0 }
0x173e   : > { %v6139_v63 = vmul.f32 0.17677669, %v6132_v62  ;;  %v8359_v3 = vpop.f32.mrb[33].mxu0 }
0x173f   : > { %v6135_v4 = vpop.f32.mrb[34].mxu0 }
0x1740   : > { %v6140_v6 = vmul.f32 0.17677669, %v6135_v4  ;;  %v8360_v7 = vpop.f32.mrb[35].mxu0  ;;  %v6141_v36 = vsel %vm4116_vm5, %v6139_v63, -inf }
0x1741   : > { %6142 = vmax.xlane.f32.xlu0 %v6141_v36 }
0x1742   : > { %v6144_v8 = vsel %vm4120_vm6, %v6140_v6, -inf }
0x1745   : > { %6145 = vmax.xlane.f32.xlu0 %v6144_v8 }
0x17bf   : > { %v5802_v22 = vpop.xlane.xlu0 %5801 }
0x17c0   : > { %v5806_v12 = vsub.f32 %v5798_v45, %v5802_v22  ;;  %v9361_v22 = vld [vmem:[#allocation11 + $0x40] sm:$0xff]  }
0x17c1   : > { %v5805_v13 = vpop.xlane.xlu1 %5804  ;;  %8368 = vmatpush3.bf16.msra.mxu0 %v9361_v22  ;;  %v9387_v22 = vld [vmem:[#allocation12 + $0xe0] ss:$8 sps:$4 sm:$0xff]  }
0x17c2   : > { %v5807_v15 = vsub.f32 %v5799_v53, %v5805_v13  ;;  %v5808_v16 = vmul.f32 1.442695, %v5806_v12  ;;  %8369 = vmatprep.subr.bf16.mxu0 %v9994_v46  ;;  %v9365_v12 = vld [vmem:[#allocation11 + $0x60] sm:$0xff]  }
0x17c3   : > { %v5973_v18 = vpop.xlane.xlu0 %5972 }
0x17c4   : > { %v5977_v11 = vsub.f32 %v5969_v56, %v5973_v18  ;;  %v5810_v19 = vmul.f32 1.442695, %v5807_v15  ;;  %v9362_v18 = vld [vmem:[#allocation11 + $0x48] sm:$0xff]   ;;  %v9367_v15 = vld [vmem:[#allocation11 + $0x70] sm:$0xff]  }
0x17c5   : > { %8370 = vmatpush3.bf16.msra.mxu0 %v9362_v18  ;;  %v9392_v18 = vld [vmem:[#allocation12 + $0xf4] ss:$8 sps:$4 sm:$0xff]  }
0x17c6   : > { %v5979_v14 = vmul.f32 1.442695, %v5977_v11  ;;  %8371 = vmatprep.subr.bf16.mxu0 %v9994_v46  ;;  %v9364_v11 = vld [vmem:[#allocation11 + $0x58] sm:$0xff]  }
0x17c7   : > { %v5976_v1 = vpop.xlane.xlu0 %5975 }
0x17c8   : > { %9493 = vpow2.f32 %v5979_v14  ;;  %v5978_v5 = vsub.f32 %v5970_v59, %v5976_v1 }
0x17ca   : > { %v5981_v17 = vmul.f32 1.442695, %v5978_v5  ;;  %v9366_v5 = vld [vmem:[#allocation11 + $0x68] sm:$0xff]  }
0x17cc   : > { %9495 = vpow2.f32 %v5981_v17 }
0x17cd   : > { %9497 = vpow2.f32 %v5808_v16 }
0x17ce   : > { %v6143_v20 = vpop.xlane.xlu0 %6142  ;;  %9499 = vpow2.f32 %v5810_v19 }
0x17cf   : > { %v6147_v21 = vsub.f32 %v6139_v63, %v6143_v20  ;;  %v9368_v20 = vld [vmem:[#allocation11 + $0x78] sm:$0xff]  }
0x17d1   : > { %v6149_v23 = vmul.f32 1.442695, %v6147_v21 }
0x17d2   : > { %v6146_v25 = vpop.xlane.xlu0 %6145  ;;  %v9494_v48 = vpop.eup %9493 }
0x17d3   : > { %9501 = vpow2.f32 %v6149_v23  ;;  %v6148_v26 = vsub.f32 %v6140_v6, %v6146_v25  ;;  %v5983_v27 = vsel %vm4116_vm5, %v9494_v48, 0.0 }
0x17d4   : > { %5984 = vadd.xlane.f32.xlu0 %v5983_v27 }
0x17d5   : > { %v6151_v28 = vmul.f32 1.442695, %v6148_v26 }
0x17d6   : > { %v9496_v29 = vpop.eup %9495 }
0x17d7   : > { %9503 = vpow2.f32 %v6151_v28  ;;  %v5986_v30 = vsel %vm4120_vm6, %v9496_v29, 0.0  ;;  %v9498_v31 = vpop.eup %9497 }
0x17d8   : > { %5987 = vadd.xlane.f32.xlu0 %v5986_v30  ;;  %v9500_v32 = vpop.eup %9499  ;;  %v5812_v33 = vsel %vm4116_vm5, %v9498_v31, 0.0 }
0x17d9   : > { %v5815_v37 = vsel %vm4120_vm6, %v9500_v32, 0.0 }
0x17dc   : > { %5813 = vadd.xlane.f32.xlu0 %v5812_v33 }
0x17dd   : > { %v9502_v34 = vpop.eup %9501 }
0x17de   : > { %v6153_v35 = vsel %vm4116_vm5, %v9502_v34, 0.0 }
0x17df   : > { %6154 = vadd.xlane.f32.xlu1 %v6153_v35 }
0x17e0   : > { %5816 = vadd.xlane.f32.xlu0 %v5815_v37 }
0x17e1   : > { %v9504_v38 = vpop.eup %9503 }
0x17e2   : > { %v6156_v39 = vsel %vm4120_vm6, %v9504_v38, 0.0 }
0x17e4   : > { %6157 = vadd.xlane.f32.xlu0 %v6156_v39 }
0x17f0   : > { %5824 = vrot.lane.b32.xlu1 %v10640_v24, %s10982_s7 }
0x17f4   : > { %6164 = vrot.lane.b32.xlu1 %v10640_v24, %s10983_s28 }
0x17fa   : > { %5994 = vrot.lane.b32.xlu0 %v10640_v24, %s9998_s2 }
0x1861   : > { %v5985_v40 = vpop.xlane.xlu0 %5984 }
0x1865   : > { %v5988_v41 = vpop.xlane.xlu0 %5987 }
0x1869   : > { %v5814_v42 = vpop.xlane.xlu0 %5813 }
0x186a   : > { %9505 = vrcp.f32 %v5814_v42 }
0x186c   : > { %v6155_v43 = vpop.xlane.xlu1 %6154 }
0x186d   : > { %v5817_v45 = vpop.xlane.xlu0 %5816 }
0x186e   : > { %9507 = vrcp.f32 %v5817_v45 }
0x186f   : > { %9509 = vrcp.f32 %v5988_v41 }
0x1870   : > { %v5825_v49 = vpop.permute.xlu1 %5824  ;;  %9511 = vrcp.f32 %v5985_v40 }
0x1871   : > { %v5830_v50 = vand.u32 %v5825_v49, %v10483_v47  ;;  %v6158_v51 = vpop.xlane.xlu0 %6157 }
0x1872   : > { %9513 = vrcp.f32 %v6158_v51  ;;  %v9369_v51 = vld [vmem:[#allocation12 + $0x80] ss:$8 sps:$4 sm:$0xff]  }
0x1873   : > { %8334 = vmatpush3.bf16.msra.mxu1 %v5830_v50  ;;  %9515 = vrcp.f32 %v6155_v43 }
0x1874   : > { %8347 = vmatprep.subr.bf16.mxu1 %v9994_v46  ;;  %v9506_v52 = vpop.eup %9505  ;;  %v6165_v62 = vpop.permute.xlu1 %6164 }
0x1875   : > { %v5820_v54 = vmul.f32 %v9506_v52, %v9498_v31  ;;  %v5995_v55 = vpop.permute.xlu0 %5994  ;;  %v6170_v4 = vand.u32 %v6165_v62, %v10483_v47  ;;  %v9371_v52 = vld [vmem:[#allocation12 + $0x84] ss:$8 sps:$4 sm:$0xff]   ;;  %v9375_v62 = vld [vmem:[#allocation12 + $0xa0] ss:$8 sps:$4 sm:$0xff]  }
0x1876   : > { %v6000_v58 = vand.u32 %v5995_v55, %v10483_v47  ;;  %v9363_v47 = vld [vmem:[#allocation11 + $0x50] sm:$0xff]  }
0x1877   : > { %8372 = vmatpush3.bf16.msra.mxu0 %v9363_v47  ;;  %v9390_v47 = vld [vmem:[#allocation12 + $0xf0] ss:$8 sps:$4 sm:$0xff]  }
0x1878   : > { %v9508_v53 = vpop.eup %9507  ;;  %8373 = vmatprep.subr.bf16.mxu0 %v9994_v46 }
0x1879   : > { %v5821_v24 = vmul.f32 %v9508_v53, %v9500_v32  ;;  %v9510_v57 = vpop.eup %9509  ;;  %v9374_v53 = vld [vmem:[#allocation12 + $0x94] ss:$8 sps:$4 sm:$0xff]  }
0x187a   : > { %v9512_v59 = vpop.eup %9511  ;;  %v5992_v60 = vmul.f32 %v9510_v57, %v9496_v29 }
0x187b   : > { %v5822_v56 = vpack.c.bf16 %v5821_v24, %v5820_v54  ;;  %v5991_v61 = vmul.f32 %v9512_v59, %v9494_v48  ;;  %8374 = vmatpush3.bf16.msra.mxu0 %v9364_v11 }
0x187c   : > { %v9514_v3 = vpop.eup %9513  ;;  %8375 = vmatprep.subr.bf16.mxu0 %v9994_v46 }
0x187d   : > { %8336 = vmatmul.mubr.msk.bf16.vlgmr.msra.gmra.mrb[60].mxu1 %vm4116_vm5, %v5822_v56  ;;  %v5993_v63 = vpack.c.bf16 %v5992_v60, %v5991_v61  ;;  %v9516_v6 = vpop.eup %9515  ;;  %v6162_v7 = vmul.f32 %v9514_v3, %v9504_v38  ;;  %v7954_v38 = vld [vmem:[%s10975_s26 + $0x1] ss:$0 sm:$0xff]  ;;  %v9377_v61 = vld [vmem:[#allocation12 + $0xa4] ss:$8 sps:$4 sm:$0xff]  }
0x187e   : > { %8348 = vmatpush3.bf16.msra.mxu1 %v6000_v58  ;;  %8349 = vmatprep.mubr.msk.bf16.mxu1 %vm9995_vm1, %v9994_v46  ;;  %v6161_v36 = vmul.f32 %v9516_v6, %v9502_v34  ;;  %v9378_v3 = vld [vmem:[#allocation12 + $0xb0] ss:$8 sps:$4 sm:$0xff]   ;;  %v9381_v6 = vld [vmem:[#allocation12 + $0xc0] ss:$8 sps:$4 sm:$0xff]  }
0x187f   : > { %8361 = vmatprep.subr.bf16.mxu1 %v9994_v46  ;;  %8376 = vmatpush3.bf16.msra.mxu0 %v9365_v12 }
0x1880   : > { %v6163_v8 = vpack.c.bf16 %v6162_v7, %v6161_v36  ;;  %8377 = vmatprep.subr.bf16.mxu0 %v9994_v46  ;;  %v9386_v7 = vld [vmem:[#allocation12 + $0xd4] ss:$8 sps:$4 sm:$0xff]   ;;  %v9384_v36 = vld [vmem:[#allocation12 + $0xd0] ss:$8 sps:$4 sm:$0xff]  }
0x1883   : > { %8378 = vmatpush3.bf16.msra.mxu0 %v9366_v5 }
0x1884   : > { %8379 = vmatprep.subr.bf16.mxu0 %v9994_v46 }
0x1885   : > { %8350 = vmatmul.mubr.msk.bf16.vlgmr.msra.gmra.mrb[64].mxu1 %vm4116_vm5, %v5993_v63  ;;  %v9380_v63 = vld [vmem:[#allocation12 + $0xb4] ss:$8 sps:$4 sm:$0xff]  }
0x1886   : > { %8362 = vmatpush3.bf16.msra.mxu1 %v6170_v4  ;;  %8363 = vmatprep.mubr.msk.bf16.mxu1 %vm9995_vm1, %v9994_v46  ;;  %v9383_v4 = vld [vmem:[#allocation12 + $0xc4] ss:$8 sps:$4 sm:$0xff]  }
0x1887   : > { %8380 = vmatpush3.bf16.msra.mxu0 %v9367_v15  ;;  %6499 = vmatprep.subr.bf16.mxu1 %v9371_v52 }
0x1888   : > { %8381 = vmatprep.subr.bf16.mxu0 %v9994_v46 }
0x188b   : > { %8382 = vmatpush3.bf16.msra.mxu0 %v9368_v20 }
0x188d   : > { %8364 = vmatmul.mubr.msk.bf16.vlgmr.msra.gmra.mrb[68].mxu1 %vm4116_vm5, %v6163_v8  ;;  %v9389_v8 = vld [vmem:[#allocation12 + $0xe4] ss:$8 sps:$4 sm:$0xff]  }
0x188e   : > { %6531 = vmatprep.mubr.bf16.mxu1 %v9993_v44  ;;  %6500 = vmatpush1.bf16.msra.mxu1 %v9369_v51 }
0x188f   : > { %6501 = vmatprep.subr.bf16.mxu1 %v9374_v53 }
0x1950   : > { %v5866_v13 = vpop.f32.mrb[60].mxu1 }
0x1951   : > { %5875 = vrot.lane.b32.xlu1 %v5866_v13, %s10983_s28  ;;  %v8337_v44 = vpop.f32.mrb[61].mxu1 }
0x1952   : > { %v5869_v14 = vpop.f32.mrb[62].mxu1 }
0x1953   : > { %v8338_v1 = vpop.f32.mrb[63].mxu1 }
0x1955   : > { %5877 = vrot.lane.b32.xlu1 %v5869_v14, %s10983_s28  ;;  %s10986_s28 = sld [smem:[#allocation49_spill]] }
0x1958   : > { %v6036_v16 = vpop.f32.mrb[64].mxu1 }
0x1959   : > { %6045 = vrot.lane.b32.xlu0 %v6036_v16, %s9998_s2  ;;  %v8351_v17 = vpop.f32.mrb[65].mxu1  ;;  %v7957_v16 = vld [vmem:[%s10976_s16 + $0x1] ss:$0 sm:$0xff] }
0x195a   : > { %v6039_v19 = vpop.f32.mrb[66].mxu1 }
0x195b   : > { %6047 = vrot.lane.b32.xlu1 %v6039_v19, %s9998_s2  ;;  %v8352_v21 = vpop.f32.mrb[67].mxu1  ;;  %s10984_s2 = sld [smem:[#allocation46_spill]] }
0x195c   : > { %v7958_v21 = vld [vmem:[%s10977_s30 + $0x1] ss:$0 sm:$0xff] }
0x1960   : > { %v6206_v23 = vpop.f32.mrb[68].mxu1 }
0x1961   : > { %6215 = vrot.lane.b32.xlu0 %v6206_v23, %s10982_s7  ;;  %v8365_v25 = vpop.f32.mrb[69].mxu1 }
0x1962   : > { %v6209_v48 = vpop.f32.mrb[70].mxu1 }
0x1963   : > { %6217 = vrot.lane.b32.xlu1 %v6209_v48, %s10982_s7  ;;  %v8366_v26 = vpop.f32.mrb[71].mxu1  ;;  %s10985_s7 = sld [smem:[#allocation47_spill]] }
0x19c3   : > { %v5876_v27 = vpop.permute.xlu1 %5875 }
0x19c4   : > { %5881 = vst.msk [vmem:[#allocation2] sm:$0xff] %vm4368_vm8, %v5876_v27  ;;  %v9393_v27 = vld [vmem:[#allocation14 + $0xc0] sm:$0xff]  }
0x19c5   : > { %8146 = vmatprep.subr.bf16.mxu0 %v9393_v27 }
0x19c7   : > { %v5878_v28 = vpop.permute.xlu1 %5877 }
0x19c8   : > { %5882 = vst.msk [vmem:[#allocation2 + $0x8] sm:$0x1] %vm4370_vm9, %v5878_v28  ;;  %v9394_v28 = vld [vmem:[#allocation14 + $0x80] sm:$0xff]  }
0x19cb   : > { %v6046_v29 = vpop.permute.xlu0 %6045 }
0x19cc   : > { %6051 = vst.msk [vmem:[#allocation2] sm:$0xff] %vm4540_vm10, %v6046_v29  ;;  %v9395_v29 = vld [vmem:[#allocation14 + $0xc8] sm:$0xff]  }
0x19cd   : > { %v6048_v30 = vpop.permute.xlu1 %6047 }
0x19ce   : > { %6052 = vst.msk [vmem:[#allocation2 + $0x8] sm:$0x1] %vm4542_vm11, %v6048_v30  ;;  %v9396_v30 = vld [vmem:[#allocation14 + $0x88] sm:$0xff]  }
0x19d3   : > { %v6216_v31 = vpop.permute.xlu0 %6215 }
0x19d4   : > { %6221 = vst.msk [vmem:[#allocation2] sm:$0xff] %vm4712_vm12, %v6216_v31  ;;  %v9397_v31 = vld [vmem:[#allocation14 + $0xd0] sm:$0xff]  }
0x19d5   : > { %v6218_v32 = vpop.permute.xlu1 %6217 }
0x19d6   : > { %6222 = vst.msk [vmem:[#allocation2 + $0x8] sm:$0x1] %vm4714_vm13, %v6218_v32  ;;  %v9398_v32 = vld [vmem:[#allocation14 + $0x90] sm:$0xff]  }
0x19db   : > { %v6223_v33 = vld [vmem:[#allocation2] sm:$0xff] }
0x19dd   : > { %v6224_v34 = vld [vmem:[#allocation2 + $0x8] sm:$0x1] }
0x19de   : > { %v6242_v35 = vpack.c.bf16 %v6224_v34, %v6223_v33  ;;  %v9399_v33 = vld [vmem:[#allocation14 + $0xd8] sm:$0xff]  }
0x19df   : > { %v9400_v34 = vld [vmem:[#allocation14 + $0x98] sm:$0xff]  }
0x19e0   : > { %8384 = vmatmul.mubr.bf16.vlgmr.msra.gmra.mrb[36].mxu0 %v6242_v35  ;;  %v9401_v35 = vld [vmem:[#allocation14 + $0xe0] sm:$0xff]  }
0x19e1   : > { %8147 = vmatpush3.bf16.msra.mxu0 %v9394_v28 }
0x19e2   : > { %8148 = vmatprep.subr.bf16.mxu0 %v9395_v29 }
0x19e5   : > { %8149 = vmatpush3.bf16.msra.mxu0 %v9396_v30 }
0x19e6   : > { %8150 = vmatprep.subr.bf16.mxu0 %v9397_v31 }
0x19e9   : > { %8151 = vmatpush3.bf16.msra.mxu0 %v9398_v32 }
0x19ea   : > { %8152 = vmatprep.subr.bf16.mxu0 %v9399_v33 }
0x19ed   : > { %8153 = vmatpush3.bf16.msra.mxu0 %v9400_v34 }
0x19ee   : > { %8154 = vmatprep.subr.bf16.mxu0 %v9401_v35 }
0x1ab3   : > { %v6325_v37 = vpop.f32.mrb[36].mxu0 }
0x1ab4   : > { %v6332_v39 = vadd.f32 %v6325_v37, %v10601_v9  ;;  %v8385_v40 = vpop.f32.mrb[37].mxu0  ;;  %v9372_v9 = vld [vmem:[#allocation12 + $0x90] ss:$8 sps:$4 sm:$0xff]   ;;  %v9402_v37 = vld [vmem:[#allocation14 + $0xa0] sm:$0xff]  }
0x1ab5   : > { %v6328_v41 = vpop.f32.mrb[38].mxu0  ;;  %6502 = vmatpush1.bf16.msra.mxu1 %v9372_v9  ;;  %8155 = vmatpush3.bf16.msra.mxu0 %v9402_v37  ;;  %v9405_v40 = vld [vmem:[#allocation14 + $0xf0] sm:$0xff]  }
0x1ab6   : > { %v10734_v42 = vadd.f32 %v7954_v38, %v6332_v39  ;;  %v6333_v43 = vadd.f32 %v6328_v41, %v10603_v10  ;;  %v8386_v45 = vpop.f32.mrb[39].mxu0  ;;  %6503 = vmatprep.subr.bf16.mxu1 %v9377_v61  ;;  %v9404_v39 = vld [vmem:[#allocation14 + $0xa8] sm:$0xff]   ;;  %v9406_v41 = vld [vmem:[#allocation14 + $0xb0] sm:$0xff]  }
0x1ab7   : > { %v9408_v45 = vld [vmem:[#allocation14 + $0xb8] sm:$0xff]   ;;  %v7993_v37 = vld [vmem:[%s10981_s18 + $0x1] ss:$0 sm:$0xff] }
0x1ab8   : > { %v10737_v49 = vadd.f32 %v7954_v38, %v6333_v43  ;;  %6348 = vadd.xlane.f32.xlu1 %v10734_v42  ;;  %v9403_v38 = vld [vmem:[#allocation14 + $0xe8] sm:$0xff]   ;;  %v9407_v43 = vld [vmem:[#allocation14 + $0xf8] sm:$0xff]  }
0x1ab9   : > { %6504 = vmatpush1.bf16.msra.mxu1 %v9375_v62  ;;  %8156 = vmatprep.subr.bf16.mxu0 %v9403_v38 }
0x1aba   : > { %v6350_v50 = vsel %vm3723_vm0, %v10737_v49, 0.0  ;;  %6505 = vmatprep.subr.bf16.mxu1 %v9380_v63  ;;  %8157 = vmatpush3.bf16.msra.mxu0 %v9404_v39 }
0x1abb   : > { %6351 = vadd.xlane.f32.xlu0 %v6350_v50  ;;  %8158 = vmatprep.subr.bf16.mxu0 %v9405_v40  ;;  %v7959_v50 = vld [vmem:[%s10979_s15 + $0x2] sm:$0x3] }
0x1abc   : > { %v6412_v51 = vrot.slane %v7959_v50, %v10415_v0  ;;  %v6416_v52 = vrot.slane %v7959_v50, %v10421_v2  ;;  %v9409_v50 = vld [vmem:[#allocation15] sm:$0xff]  }
0x1abd   : > { %6506 = vmatpush1.bf16.msra.mxu1 %v9378_v3 }
0x1abe   : > { %6507 = vmatprep.subr.bf16.mxu1 %v9383_v4  ;;  %8159 = vmatpush3.bf16.msra.mxu0 %v9406_v41 }
0x1abf   : > { %8160 = vmatprep.subr.bf16.mxu0 %v9407_v43 }
0x1ac1   : > { %6508 = vmatpush1.bf16.msra.mxu1 %v9381_v6 }
0x1ac2   : > { %6509 = vmatprep.subr.bf16.mxu1 %v9386_v7  ;;  %8161 = vmatpush3.bf16.msra.mxu0 %v9408_v45 }
0x1ac3   : > { %8407 = vmatprep.subr.bf16.mxu0 %v9994_v46 }
0x1ac5   : > { %6510 = vmatpush1.bf16.msra.mxu1 %v9384_v36 }
0x1ac6   : > { %6511 = vmatprep.subr.bf16.mxu1 %v9389_v8 }
0x1ac9   : > { %6512 = vmatpush1.bf16.msra.mxu1 %v9387_v22 }
0x1aca   : > { %6513 = vmatprep.subr.bf16.mxu1 %v9392_v18 }
0x1acd   : > { %6514 = vmatpush1.bf16.msra.mxu1 %v9390_v47 }
0x1ace   : > { %8387 = vmatprep.subr.bf16.mxu1 %v9994_v46 }
0x1b45   : > { %v6349_v54 = vpop.xlane.xlu1 %6348 }
0x1b46   : > { %v6353_v24 = vmul.f32 0.0078125, %v6349_v54 }
0x1b48   : > { %v6355_v10 = vsub.f32 %v10734_v42, %v6353_v24  ;;  %v6352_v55 = vpop.xlane.xlu0 %6351 }
0x1b49   : > { %v6354_v56 = vmul.f32 0.0078125, %v6352_v55 }
0x1b4a   : > { %v6357_v57 = vmul.f32 %v6355_v10, %v6355_v10 }
0x1b4b   : > { %v6356_v58 = vsub.f32 %v10737_v49, %v6354_v56 }
0x1b4c   : > { %6359 = vadd.xlane.f32.xlu0 %v6357_v57 }
0x1b4d   : > { %v6358_v59 = vmul.f32 %v6356_v58, %v6356_v58 }
0x1b4f   : > { %v6361_v60 = vsel %vm3723_vm0, %v6358_v59, 0.0 }
0x1b50   : > { %6362 = vadd.xlane.f32.xlu0 %v6361_v60 }
0x1bd9   : > { %v6360_v11 = vpop.xlane.xlu0 %6359 }
0x1bda   : > { %v6364_v12 = vmul.f32 0.0078125, %v6360_v11 }
0x1bdc   : > { %v6366_v13 = vadd.f32 1e-06, %v6364_v12 }
0x1bdd   : > { %v6363_v44 = vpop.xlane.xlu0 %6362 }
0x1bde   : > { %9517 = vrsqrt.f32 %v6366_v13  ;;  %v6365_v14 = vmul.f32 0.0078125, %v6363_v44 }
0x1be0   : > { %v6367_v1 = vadd.f32 1e-06, %v6365_v14 }
0x1be2   : > { %9519 = vrsqrt.f32 %v6367_v1 }
0x1be8   : > { %v9518_v5 = vpop.eup %9517 }
0x1be9   : > { %v6370_v15 = vmul.f32 %v9518_v5, %v6355_v10 }
0x1beb   : > { %v6378_v20 = vmul.f32 %v7957_v16, %v6370_v15 }
0x1bec   : > { %v9520_v17 = vpop.eup %9519 }
0x1bed   : > { %v6371_v19 = vmul.f32 %v9520_v17, %v6356_v58  ;;  %v6386_v25 = vadd.f32 %v7958_v21, %v6378_v20 }
0x1bef   : > { %v6379_v23 = vmul.f32 %v7957_v16, %v6371_v19 }
0x1bf1   : > { %v6387_v48 = vadd.f32 %v7958_v21, %v6379_v23 }
0x1bf3   : > { %v6405_v26 = vpack.c.bf16 %v6387_v48, %v6386_v25 }
0x1bf5   : > { %6532 = vmatmul.mubr.bf16.vlgmr.msra.gmra.mrb[72].mxu1 %v6405_v26 }
0x1bf6   : > { %8403 = vmatprep.mubr.msk.bf16.mxu1 %vm9995_vm1, %v9994_v46  ;;  %8388 = vmatpush3.bf16.msra.mxu1 %v9409_v50 }
0x1bf7   : > { %8389 = vmatprep.subr.bf16.mxu1 %v9994_v46 }
0x1cc8   : > { %v6533_v53 = vpop.f32.mrb[72].mxu1 }
0x1cc9   : > { %v6534_v9 = vadd.f32 %v6533_v53, %v6412_v51  ;;  %v6535_v54 = vpop.f32.mrb[73].mxu1 }
0x1cca   : > { %v6536_v24 = vadd.f32 %v6535_v54, %v6416_v52  ;;  %v6537_v10 = vpop.f32.mrb[74].mxu1 }
0x1ccb   : > { %v6542_v55 = vmul.f32 %v6534_v9, %v6534_v9  ;;  %v6538_v56 = vadd.f32 %v6537_v10, %v6412_v51  ;;  %v6539_v57 = vpop.f32.mrb[75].mxu1  ;;  %v9410_v51 = vld [vmem:[#allocation15 + $0x8] sm:$0xff]  }
0x1ccc   : > { %v6543_v58 = vmul.f32 %v6536_v24, %v6536_v24  ;;  %v6540_v59 = vadd.f32 %v6539_v57, %v6416_v52  ;;  %8390 = vmatpush3.bf16.msra.mxu1 %v9410_v51  ;;  %v9411_v52 = vld [vmem:[#allocation15 + $0x10] sm:$0xff]   ;;  %v9412_v57 = vld [vmem:[#allocation15 + $0x18] sm:$0xff]  }
0x1ccd   : > { %v6546_v60 = vmul.f32 %v6542_v55, %v6534_v9  ;;  %v6544_v61 = vmul.f32 %v6538_v56, %v6538_v56  ;;  %8391 = vmatprep.subr.bf16.mxu1 %v9994_v46 }
0x1cce   : > { %v6547_v62 = vmul.f32 %v6543_v58, %v6536_v24  ;;  %v6545_v63 = vmul.f32 %v6540_v59, %v6540_v59  ;;  %v9413_v58 = vld [vmem:[#allocation15 + $0x20] sm:$0xff]  }
0x1ccf   : > { %v6550_v3 = vmul.f32 0.044715, %v6546_v60  ;;  %v6548_v4 = vmul.f32 %v6544_v61, %v6538_v56  ;;  %v9415_v60 = vld [vmem:[#allocation15 + $0x30] sm:$0xff]   ;;  %v9416_v61 = vld [vmem:[#allocation15 + $0x38] sm:$0xff]  }
0x1cd0   : > { %v6551_v6 = vmul.f32 0.044715, %v6547_v62  ;;  %v6549_v0 = vmul.f32 %v6545_v63, %v6540_v59  ;;  %8392 = vmatpush3.bf16.msra.mxu1 %v9411_v52 }
0x1cd1   : > { %v6554_v7 = vadd.f32 %v6550_v3, %v6534_v9  ;;  %v6552_v2 = vmul.f32 0.044715, %v6548_v4  ;;  %8393 = vmatprep.subr.bf16.mxu1 %v9994_v46 }
0x1cd2   : > { %v6555_v36 = vadd.f32 %v6551_v6, %v6536_v24  ;;  %v6553_v8 = vmul.f32 0.044715, %v6549_v0 }
0x1cd3   : > { %v6558_v22 = vmul.f32 0.7978846, %v6554_v7  ;;  %v6556_v18 = vadd.f32 %v6552_v2, %v6538_v56  ;;  %v7994_v2 = vld [vmem:[%s10984_s2] ss:$0 sm:$0xff]  ;;  %s10987_s2 = sld [smem:[#allocation50_spill]] }
0x1cd4   : > { %v6559_v47 = vmul.f32 0.7978846, %v6555_v36  ;;  %v6557_v11 = vadd.f32 %v6553_v8, %v6540_v59  ;;  %8394 = vmatpush3.bf16.msra.mxu1 %v9412_v57  ;;  %v7995_v8 = vld [vmem:[%s10985_s7] ss:$0 sm:$0xff]  ;;  %s10988_s7 = sld [smem:[#allocation32_spill]] }
0x1cd5   : > { %9521 = vtanh.f32 %v6558_v22  ;;  %v6560_v12 = vmul.f32 0.7978846, %v6556_v18  ;;  %8395 = vmatprep.subr.bf16.mxu1 %v9994_v46 }
0x1cd6   : > { %9523 = vtanh.f32 %v6559_v47  ;;  %v6561_v13 = vmul.f32 0.7978846, %v6557_v11  ;;  %v8004_v47 = vld [vmem:[%s10986_s28] ss:$0 sm:$0xff]  ;;  %s7492_s28 = sshll.u32 %s10398_s23, 3  ;;  %s10989_s23 = sld [smem:[#allocation48_spill]] }
0x1cd7   : > { %9525 = vtanh.f32 %v6560_v12 }
0x1cd8   : > { %9527 = vtanh.f32 %v6561_v13  ;;  %8396 = vmatpush3.bf16.msra.mxu1 %v9413_v58  ;;  %v9417_v13 = vld [vmem:[#allocation17] sm:$0xff]  }
0x1cd9   : > { %8397 = vmatprep.subr.bf16.mxu1 %v9994_v46 }
0x1cda   : > { %s1156_s3 = scalar_lea.vmem %s10988_s7, %s7492_s28  ;;  %s8021_s7 = sshll.u32 %s10193_s0, 4 }
0x1cdb   : > { %s10818_s28 = scalar_lea.hbm %s10165_s20, %s8021_s7 }
0x1cdf   : > { %v9522_v44 = vpop.eup %9521 }
0x1ce0   : > { %v9524_v14 = vpop.eup %9523  ;;  %v6566_v1 = vadd.f32 1.0, %v9522_v44 }
0x1ce1   : > { %v9526_v5 = vpop.eup %9525  ;;  %v6567_v15 = vadd.f32 1.0, %v9524_v14 }
0x1ce2   : > { %v9528_v16 = vpop.eup %9527  ;;  %v6570_v17 = vmul.f32 0.5, %v6566_v1  ;;  %v6568_v19 = vadd.f32 1.0, %v9526_v5 }
0x1ce3   : > { %v6569_v20 = vadd.f32 1.0, %v9528_v16  ;;  %v6571_v21 = vmul.f32 0.5, %v6567_v15  ;;  %v9418_v16 = vld [vmem:[#allocation17 + $0x8] sm:$0xff]  }
0x1ce4   : > { %v6572_v23 = vmul.f32 0.5, %v6568_v19  ;;  %v6574_v48 = vmul.f32 %v6570_v17, %v6534_v9 }
0x1ce5   : > { %v6573_v25 = vmul.f32 0.5, %v6569_v20  ;;  %v6575_v27 = vmul.f32 %v6571_v21, %v6536_v24 }
0x1ce6   : > { %v6576_v26 = vmul.f32 %v6572_v23, %v6538_v56 }
0x1ce7   : > { %v6577_v28 = vmul.f32 %v6573_v25, %v6540_v59  ;;  %v9414_v59 = vld [vmem:[#allocation15 + $0x28] sm:$0xff]   ;;  %v9419_v25 = vld [vmem:[#allocation17 + $0x10] sm:$0xff]  }
0x1ce8   : > { %v6611_v29 = vpack.c.bf16 %v6576_v26, %v6574_v48  ;;  %8398 = vmatpush3.bf16.msra.mxu1 %v9414_v59  ;;  %v9420_v26 = vld [vmem:[#allocation17 + $0x18] sm:$0xff]  }
0x1ce9   : > { %v6612_v30 = vpack.c.bf16 %v6577_v28, %v6575_v27  ;;  %8399 = vmatprep.subr.bf16.mxu1 %v9994_v46  ;;  %v9421_v28 = vld [vmem:[#allocation17 + $0x20] sm:$0xff]  }
0x1ceb   : > { %6741 = vmatprep.mubr.bf16.mxu0 %v6612_v30  ;;  %v9422_v30 = vld [vmem:[#allocation17 + $0x28] sm:$0xff]  }
0x1cec   : > { %6742 = vmatmul.mubr.bf16.vlgmr.msra.gmra.mrb[40].mxu0 %v6611_v29  ;;  %8400 = vmatpush3.bf16.msra.mxu1 %v9415_v60 }
0x1ced   : > { %8423 = vmatprep.mubr.msk.bf16.mxu0 %vm9995_vm1, %v9994_v46  ;;  %8401 = vmatprep.subr.bf16.mxu1 %v9994_v46 }
0x1cf0   : > { %8402 = vmatpush3.bf16.msra.mxu1 %v9416_v61 }
0x1cf1   : > { %8427 = vmatprep.subr.bf16.mxu1 %v9994_v46 }
0x1dbf   : > { %v8162_v31 = vpop.f32.mrb[40].mxu0 }
0x1dc0   : > { %v8163_v32 = vpop.f32.mrb[41].mxu0 }
0x1dc1   : > { %v8164_v33 = vadd.f32 %v8163_v32, %v8162_v31  ;;  %v8165_v34 = vpop.f32.mrb[42].mxu0  ;;  %v9423_v32 = vld [vmem:[#allocation17 + $0x30] sm:$0xff]  }
0x1dc2   : > { %v8166_v35 = vpop.f32.mrb[43].mxu0 }
0x1dc3   : > { %v6750_v38 = vadd.f32 %v8164_v33, %v10734_v42  ;;  %v8167_v39 = vadd.f32 %v8166_v35, %v8165_v34  ;;  %v9424_v34 = vld [vmem:[#allocation17 + $0x38] sm:$0xff]  }
0x1dc5   : > { %v6751_v40 = vadd.f32 %v8167_v39, %v10737_v49  ;;  %v6760_v41 = vadd.f32 %v7993_v37, %v6750_v38  ;;  %v9425_v38 = vld [vmem:[#allocation18] sm:$0xff]   ;;  %v9426_v39 = vld [vmem:[#allocation18 + $0x8] sm:$0xff]  }
0x1dc6   : > { %8408 = vmatpush3.bf16.msra.mxu0 %v9425_v38 }
0x1dc7   : > { %6764 = vadd.xlane.f32.xlu1 %v6760_v41  ;;  %v6761_v43 = vadd.f32 %v7993_v37, %v6751_v40  ;;  %8409 = vmatprep.subr.bf16.mxu0 %v9994_v46  ;;  %v9427_v40 = vld [vmem:[#allocation18 + $0x10] sm:$0xff]  }
0x1dc9   : > { %v6766_v45 = vsel %vm3723_vm0, %v6761_v43, 0.0 }
0x1dca   : > { %6767 = vadd.xlane.f32.xlu0 %v6766_v45  ;;  %8410 = vmatpush3.bf16.msra.mxu0 %v9426_v39 }
0x1dcb   : > { %8411 = vmatprep.subr.bf16.mxu0 %v9994_v46 }
0x1dce   : > { %8412 = vmatpush3.bf16.msra.mxu0 %v9427_v40 }
0x1dcf   : > { %8413 = vmatprep.subr.bf16.mxu0 %v9994_v46 }
0x1e54   : > { %v6765_v42 = vpop.xlane.xlu1 %6764 }
0x1e55   : > { %v6769_v49 = vmul.f32 0.0078125, %v6765_v42 }
0x1e57   : > { %v6771_v53 = vsub.f32 %v6760_v41, %v6769_v49  ;;  %v6768_v9 = vpop.xlane.xlu0 %6767  ;;  %v6927_v41 = vld [vmem:[%s10987_s2] sm:$0xff] }
0x1e58   : > { %v6770_v54 = vmul.f32 0.0078125, %v6768_v9 }
0x1e59   : > { %v6773_v24 = vmul.f32 %v6771_v53, %v6771_v53 }
0x1e5a   : > { %v6772_v10 = vsub.f32 %v6761_v43, %v6770_v54  ;;  %v6929_v43 = vrot.slane %v6927_v41, 7  ;;  %v6939_v54 = vld [vmem:[%s1156_s3] sm:$0xff]  ;;  %s10801_s3 = sand.u32 1, %s9933_s1  }
0x1e5b   : > { %6775 = vadd.xlane.f32.xlu0 %v6773_v24  ;;  %v6941_v24 = vrot.slane %v6939_v54, 7  ;;  %s1141_s2 = scalar_lea.vmem [#allocation20], %s10801_s3  ;;  %s7212_s4 = scalar_lea.sflag [#allocation5], %s10801_s3 }
0x1e5c   : > { %v6774_v55 = vmul.f32 %v6772_v10, %v6772_v10 }
0x1e5e   : > { %v6777_v56 = vsel %vm3723_vm0, %v6774_v55, 0.0 }
0x1e5f   : > { %6778 = vadd.xlane.f32.xlu1 %v6777_v56 }
0x1ee8   : > { %v6776_v62 = vpop.xlane.xlu0 %6775 }
0x1ee9   : > { %v6780_v63 = vmul.f32 0.0078125, %v6776_v62 }
0x1eeb   : > { %v6782_v3 = vadd.f32 1e-06, %v6780_v63 }
0x1eec   : > { %v6779_v4 = vpop.xlane.xlu1 %6778 }
0x1eed   : > { %9529 = vrsqrt.f32 %v6782_v3  ;;  %v6781_v6 = vmul.f32 0.0078125, %v6779_v4 }
0x1eef   : > { %v6783_v0 = vadd.f32 1e-06, %v6781_v6 }
0x1ef1   : > { %9531 = vrsqrt.f32 %v6783_v0 }
0x1ef7   : > { %v9530_v7 = vpop.eup %9529 }
0x1ef8   : > { %v6786_v36 = vmul.f32 %v9530_v7, %v6771_v53 }
0x1efa   : > { %v6794_v22 = vmul.f32 %v7994_v2, %v6786_v36 }
0x1efb   : > { %v9532_v18 = vpop.eup %9531 }
0x1efc   : > { %v6787_v11 = vmul.f32 %v9532_v18, %v6772_v10  ;;  %v10772_v12 = vadd.f32 %v7995_v8, %v6794_v22  ;;  %v9428_v18 = vld [vmem:[#allocation18 + $0x18] sm:$0xff]  }
0x1efd   : > { %8414 = vmatpush3.bf16.msra.mxu0 %v9428_v18 }
0x1efe   : > { %v6820_v44 = vpack.c.bf16 %v10772_v12, %v10772_v12  ;;  %v6918_v14 = vmul.f32 %v8004_v47, %v10772_v12  ;;  %v6795_v1 = vmul.f32 %v7994_v2, %v6787_v11  ;;  %v6989_v17 = vsel %vm6920_vm14, %v10772_v12, -inf  ;;  %8415 = vmatprep.subr.bf16.mxu0 %v9994_v46  ;;  %v9429_v11 = vld [vmem:[#allocation18 + $0x20] sm:$0xff]  }
0x1f00   : > { %8404 = vmatmul.mubr.bf16.vlgmr.msra.gmra.mrb[76].mxu1 %v6820_v44  ;;  %v6921_v5 = vsel %vm6920_vm14, %v6918_v14, 0.0  ;;  %v10777_v15 = vadd.f32 %v7995_v8, %v6795_v1 }
0x1f01   : > { %8428 = vmatpush3.bf16.msra.mxu1 %v9417_v13  ;;  %6922 = vadd.xlane.f32.xlu0 %v6921_v5  ;;  %v9430_v5 = vld [vmem:[#allocation18 + $0x28] sm:$0xff]  }
0x1f02   : > { %v6990_v19 = vsel %vm3723_vm0, %v10777_v15, -inf  ;;  %8429 = vmatprep.subr.bf16.mxu1 %v9994_v46  ;;  %v6919_v20 = vmul.f32 %v8004_v47, %v10777_v15  ;;  %8443 = vmatprep.mubr.msk.bf16.mxu1 %vm9995_vm1, %v9994_v46  ;;  %v6821_v47 = vld [vmem:[%s10989_s23] sm:$0x1]  ;;  %s7228_s23 = sshll.u32 %s1141_s2, 4  ;;  %s7229_s23 = int_to_ptr.vmem [resolvable:$true] %s7228_s23 }
0x1f03   : > { %v6991_v21 = vmax.f32 %v6989_v17, %v6990_v19  ;;  %8416 = vmatpush3.bf16.msra.mxu0 %v9429_v11  ;;  %v9431_v17 = vld [vmem:[#allocation18 + $0x30] sm:$0xff]   ;;  %v9432_v19 = vld [vmem:[#allocation18 + $0x38] sm:$0xff]   ;;  %s9823_s5 = scalar_lea.vmem %s7229_s23, 16  ;;  %p9830_p5 = scmp.lt.s32.totalorder %s7229_s23, %s9828_s10 }
0x1f04   : > { %v6924_v23 = vsel %vm3723_vm0, %v6919_v20, 0.0  ;;  %vm6952_vm0 = vcmask 7168   ;;  %8417 = vmatprep.subr.bf16.mxu0 %v9994_v46  ;;  %p9824_p13 = scmp.ne.s32.totalorder %s7229_s23, %s9823_s5  ;;  %p9831_p9 = scmp.lt.s32.totalorder %s9829_s11, %s9823_s5 }
0x1f05   : > { %8430 = vmatpush3.bf16.msra.mxu1 %v9418_v16  ;;  %6925 = vadd.xlane.f32.xlu1 %v6924_v23  ;;  %v6992_v48 = vrot.slane %v6991_v21, 4 }
0x1f06   : > { %8431 = vmatprep.subr.bf16.mxu1 %v9994_v46  ;;  %p9825_p0 = pnand %p9824_p13, %p10990_p1  ;;  %p9832_p12 = por %p9831_p9, %p9830_p5 }
0x1f07   : > { %v6993_v27 = vmax.f32 %v6991_v21, %v6992_v48  ;;  %8418 = vmatpush3.bf16.msra.mxu0 %v9430_v5 }
0x1f08   : > { %8419 = vmatprep.subr.bf16.mxu0 %v9994_v46  ;;  %p9826_p6 = pneg %p9825_p0 }
0x1f09   : > { %8432 = vmatpush3.bf16.msra.mxu1 %v9419_v25  ;;  %v6994_v29 = vrot.slane %v6993_v27, 2 }
0x1f0a   : > { %8433 = vmatprep.subr.bf16.mxu1 %v9994_v46  ;;  %p9833_p10 = pnand %p9832_p12, %p9826_p6 }
0x1f0b   : > { %v6995_v31 = vmax.f32 %v6993_v27, %v6994_v29  ;;  %8420 = vmatpush3.bf16.msra.mxu0 %v9431_v17 }
0x1f0c   : > { %8421 = vmatprep.subr.bf16.mxu0 %v9994_v46 }
0x1f0d   : > { %8434 = vmatpush3.bf16.msra.mxu1 %v9420_v26  ;;  %v6996_v33 = vrot.slane %v6995_v31, 1 }
0x1f0e   : > { %8435 = vmatprep.subr.bf16.mxu1 %v9994_v46 }
0x1f0f   : > { %v6997_v35 = vmax.f32 %v6995_v31, %v6996_v33  ;;  %8422 = vmatpush3.bf16.msra.mxu0 %v9432_v19 }
0x1f11   : > { %8436 = vmatpush3.bf16.msra.mxu1 %v9421_v28  ;;  %v7014_v37 = vpack.c.bf16 %v6997_v35, %v6997_v35 }
0x1f12   : > { %8437 = vmatprep.subr.bf16.mxu1 %v9994_v46 }
0x1f15   : > { %8438 = vmatpush3.bf16.msra.mxu1 %v9422_v30 }
0x1f16   : > { %8439 = vmatprep.subr.bf16.mxu1 %v9994_v46 }
0x1f19   : > { %8440 = vmatpush3.bf16.msra.mxu1 %v9423_v32 }
0x1f1a   : > { %8441 = vmatprep.subr.bf16.mxu1 %v9994_v46 }
0x1f1d   : > { %8442 = vmatpush3.bf16.msra.mxu1 %v9424_v34 }
0x1f20   : > { %8444 = vmatmul.mubr.bf16.vlgmr.msra.gmra.mrb[80].mxu1 %v7014_v37 }
0x1f8e   : > { %v6923_v45 = vpop.xlane.xlu0 %6922 }
0x1f8f   : > { %v6931_v50 = vadd.f32 %v6929_v43, %v6923_v45 }
0x1f91   : > { %9533 = vtanh.f32 %v6931_v50 }
0x1f92   : > { %v6926_v51 = vpop.xlane.xlu1 %6925 }
0x1f93   : > { %v6932_v52 = vadd.f32 %v6929_v43, %v6926_v51 }
0x1f95   : > { %9535 = vtanh.f32 %v6932_v52 }
0x1f9b   : > { %v9534_v42 = vpop.eup %9533 }
0x1f9c   : > { %v6935_v49 = vmul.f32 1.442695, %v9534_v42 }
0x1f9e   : > { %9537 = vpow2.f32 %v6935_v49 }
0x1f9f   : > { %v9536_v53 = vpop.eup %9535 }
0x1fa0   : > { %v6937_v9 = vmul.f32 1.442695, %v9536_v53 }
0x1fa2   : > { %9539 = vpow2.f32 %v6937_v9 }
0x1fa8   : > { %v9538_v10 = vpop.eup %9537 }
0x1fa9   : > { %v6943_v55 = vmul.f32 %v9538_v10, %v6941_v24 }
0x1fab   : > { %v6948_v58 = vrot.slane %v6943_v55, 1 }
0x1fac   : > { %v9540_v56 = vpop.eup %9539 }
0x1fad   : > { %v6944_v57 = vmul.f32 %v9540_v56, %v6941_v24 }
0x1faf   : > { %v6949_v59 = vrot.slane %v6944_v57, 1 }
0x1fb1   : > { %v6950_v60 = vsel %vm6947_vm15, %v6948_v58, %v6949_v59 }
0x1fb2   : > { %v6953_v61 = vsel %vm6952_vm0, %v6950_v60, 0.0 }
0x1fb3   : > { %v6954_v62 = vrot.slane %v6953_v61, 4 }
0x1fb5   : > { %v6955_v63 = vadd.f32 %v6954_v62, %v6953_v61 }
0x1fb7   : > { %v6956_v3 = vrot.slane %v6955_v63, 2 }
0x1fb9   : > { %v6957_v4 = vadd.f32 %v6956_v3, %v6955_v63 }
0x1fbb   : > { %v6958_v6 = vrot.slane %v6957_v4, 1 }
0x1fbd   : > { %v6959_v0 = vadd.f32 %v6958_v6, %v6957_v4 }
0x1fbf   : > { %9541 = vrcp.f32 %v6959_v0 }
0x1fc9   : > { %v9542_v7 = vpop.eup %9541 }
0x1fca   : > { %v6962_v2 = vmul.f32 %v9542_v7, %v6944_v57  ;;  %v6961_v36 = vmul.f32 %v9542_v7, %v6943_v55 }
0x1fcc   : > { %v6964_v8 = vadd.f32 1e-10, %v6962_v2  ;;  %v6963_v22 = vadd.f32 1e-10, %v6961_v36 }
0x1fce   : > { %6972 = vperm.xlu1 %8752, %v6964_v8   ;;  %6967 = vperm.xlu0 %8751, %v6963_v22  }
0x1fd3   : > { %v6904_v13 = vpop.f32.mrb[76].mxu1 }
0x1fd4   : > { %v6905_v44 = vadd.f32 %v6904_v13, %v6821_v47  ;;  %v8405_v14 = vpop.f32.mrb[77].mxu1 }
0x1fd5   : > { %v6907_v1 = vpop.f32.mrb[78].mxu1 }
0x1fd6   : > { %6910 = vst [vmem:[%s1141_s2] sm:$0x1] %v6905_v44  ;;  %v8406_v16 = vpop.f32.mrb[79].mxu1 }
0x1ff3   : > { %v7202_v20 = vpop.f32.mrb[80].mxu1 }
0x1ff4   : > { %v8445_v21 = vpop.f32.mrb[81].mxu1 }
0x1ff5   : > { %v7205_v23 = vpop.f32.mrb[82].mxu1 }
0x1ff6   : > { %v8446_v25 = vpop.f32.mrb[83].mxu1 }
0x204d   : > { %v6973_v48 = vpop.permute.xlu1 %6972  ;;  %v6968_v26 = vpop.permute.xlu0 %6967 }
0x204e   : > { %v6976_v27 = vmul.f32 %v6973_v48, %v10777_v15  ;;  %v6975_v28 = vmul.f32 %v6968_v26, %v10772_v12 }
0x2050   : > { %v6980_v29 = vrot.slane %v6976_v27, 1  ;;  %v6979_v30 = vrot.slane %v6975_v28, 1 }
0x2052   : > { %v6981_v46 = vsel %vm6947_vm15, %v6979_v30, %v6980_v29 }
0x2053   : > { %v6983_v31 = vrot.slane %v6981_v46, 4 }
0x2055   : > { %v6984_v32 = vadd.f32 %v6983_v31, %v6981_v46 }
0x2057   : > { %v6985_v33 = vrot.slane %v6984_v32, 2 }
0x2059   : > { %v6986_v34 = vadd.f32 %v6985_v33, %v6984_v32 }
0x205b   : > { %v6987_v35 = vrot.slane %v6986_v34, 1 }
0x205d   : > { %v6988_v37 = vadd.f32 %v6987_v35, %v6986_v34 }
0x205f   : > { %v7031_v38 = vpack.c.bf16 %v6988_v37, %v6988_v37 }
0x2061   : > { %8424 = vmatmul.mubr.bf16.vlgmr.msra.gmra.mrb[44].mxu0 %v7031_v38 }
0x2062   : > { %9836 = shalt.err (!%p9833_p10)
}
0x2063   : > { %s9837_s2 = scalar_lea.hbm %s10818_s28, 16  ;;  %s9841_s9 = scalar_lea.hbm %s10165_s20, 32 }
0x2064   : > { %p9838_p2 = scmp.ne.s32.totalorder %s10818_s28, %s9837_s2  ;;  %p9842_p7 = scmp.lt.u32.totalorder %s10818_s28, %s10165_s20 }
0x2065   : > { %p9843_p8 = scmp.lt.u32.totalorder %s9841_s9, %s9837_s2  ;;  %p9845_p13 = scmp.lt.u32.totalorder %s9837_s2, %s10818_s28 }
0x2066   : > { %p9839_p3 = pnand %p9838_p2, %p10990_p1 }
0x2067   : > { %p9844_p11 = por %p9843_p8, %p9842_p7 }
0x2068   : > { %p9840_p4 = pneg %p9839_p3 }
0x2069   : > { %p9846_p0 = por %p9845_p13, %p9844_p11 }
0x206b   : > { %p9847_p6 = pnand %p9846_p0, %p9840_p4 }
0x206d   : > { %9850 = shalt.err (!%p9847_p6)
}
0x206e   : > { %8521 = dma.vmem_to_hbm [thread:$0]  (%p10990_p1), %s7229_s23, 16, %s10818_s28, %s7212_s4   ;;  %v7208_v15 = vld [vmem:[%s10160_s6] sm:$0x1] }
0x206f   : > { %s1147_s5 = scalar_lea.vmem [#allocation21], %s10801_s3  ;;  %s10841_s10 = scalar_lea.hbm %s10170_s8, %s8021_s7 }
0x2070   : > { %s7241_s11 = sshll.u32 %s1147_s5, 4  ;;  %s7216_s4 = scalar_lea.sflag [#allocation22], %s10801_s3  ;;  %s10843_s11 = int_to_ptr.vmem [resolvable:$true] %s7241_s11 }
0x2071   : > { %s9851_s28 = scalar_lea.vmem %s10843_s11, 16  ;;  %s10001_s23 = smov [#allocation21]  }
0x2072   : > { %p9852_p5 = scmp.ne.s32.totalorder %s10843_s11, %s9851_s28  ;;  %s9855_s2 = sshll.u32 %s10001_s23, 4  ;;  %s9856_s2 = int_to_ptr.vmem [resolvable:$false] %s9855_s2 }
0x2073   : > { %s9857_s9 = scalar_lea.vmem %s9856_s2, 32  ;;  %p9858_p10 = scmp.lt.s32.totalorder %s10843_s11, %s9856_s2 }
0x2074   : > { %p9853_p9 = pnand %p9852_p5, %p10990_p1  ;;  %p9859_p2 = scmp.lt.s32.totalorder %s9857_s9, %s9851_s28 }
0x2076   : > { %p9854_p12 = pneg %p9853_p9  ;;  %p9860_p3 = por %p9859_p2, %p9858_p10 }
0x2078   : > { %p9861_p4 = pnand %p9860_p3, %p9854_p12 }
0x2134   : > { %v7114_v12 = vpop.f32.mrb[44].mxu0 }
0x2135   : > { %v7203_v39 = vadd.f32 %v7202_v20, %v7114_v12  ;;  %v8425_v40 = vpop.f32.mrb[45].mxu0 }
0x2136   : > { %v7117_v41 = vpop.f32.mrb[46].mxu0 }
0x2137   : > { %v7209_v43 = vadd.f32 %v7208_v15, %v7203_v39  ;;  %v8426_v45 = vpop.f32.mrb[47].mxu0 }
0x2139   : > { %7210 = vst [vmem:[%s1147_s5] sm:$0x1] %v7209_v43 }
0x213a   : > { %9864 = shalt.err (!%p9861_p4)
}
0x213b   : > { %s9865_s0 = scalar_lea.hbm %s10841_s10, 16  ;;  %s9869_s3 = scalar_lea.hbm %s10170_s8, 32 }
0x213c   : > { %p9866_p7 = scmp.ne.s32.totalorder %s10841_s10, %s9865_s0  ;;  %p9870_p13 = scmp.lt.u32.totalorder %s10841_s10, %s10170_s8 }
0x213d   : > { %p9871_p0 = scmp.lt.u32.totalorder %s9869_s3, %s9865_s0  ;;  %p9873_p5 = scmp.lt.u32.totalorder %s9865_s0, %s10841_s10 }
0x213e   : > { %p9867_p8 = pnand %p9866_p7, %p10990_p1 }
0x213f   : > { %p9872_p6 = por %p9871_p0, %p9870_p13 }
0x2140   : > { %p9868_p11 = pneg %p9867_p8 }
0x2141   : > { %p9874_p9 = por %p9873_p5, %p9872_p6 }
0x2143   : > { %p9875_p12 = pnand %p9874_p9, %p9868_p11 }
0x2145   : > { %9878 = shalt.err (!%p9875_p12)
}
0x2146   : > { %8522 = dma.vmem_to_hbm [thread:$0]  (%p10990_p1), %s10843_s11, 16, %s10841_s10, %s7216_s4  }
0x2147 PF: > { %s10991_s7 = sld [smem:[#allocation54_spill]]  ;;  %s10992_s5 = sld [smem:[#allocation52_spill]] }
0x2148   : > { %s10993_s28 = sld [smem:[#allocation57_spill]] }
0x214d   : > { %p8583_p10 = scmp.ge.s32.totalorder %s10991_s7, 2  ;;  %s7253_s23 = sand.u32 1, %s10992_s5  }
0x214e   : > { %p10994_p2 = scmp.ne.s32.totalorder %s10993_s28, 0  ;;  %s7254_s2 = scalar_lea.sflag [#allocation5], %s7253_s23 }
0x2150   : > { %p8557_p3 = pnand %p8583_p10, %p10994_p2 }
0x2152   : > { %9920 = dma.done.wait (!%p8557_p3), %s7254_s2, 16  }
0x2153   : > { %9922 = vsyncadd (!%p8557_p3), %s7254_s2, 4294967280  ;;  %s7262_s9 = scalar_lea.sflag [#allocation22], %s7253_s23 }
0x2154   : > { %9924 = dma.done.wait (!%p8557_p3), %s7262_s9, 16  }
0x2155   : > { %9926 = vsyncadd (!%p8557_p3), %s7262_s9, 4294967280  ;;  %s10995_s7 = sld [smem:[#allocation55_spill]]  ;;  %s10996_s22 = sld [smem:[#allocation53_spill]] }
0x2156   : > { %s10997_s2 = sld [smem:[#allocation56_spill]]  ;;  %s10998_s28 = smov %s9933_s1 }
0x215b   : > { %p85_p1 = scmp.ge.s32.totalorder %s10995_s7, 4   ;;  %s10999_s1 = smov %s10996_s22 }
0x215d   :  { %87 = sbr.rel (!%p85_p1) target bundleno = 68 (0x44), region = 284 }
0x2164   :  { %7266 = vsyncpa [#allocation4], 1 }
0x2165   :  { %7268 = vsyncpa [#allocation4 + $0x1], 1 }
0x2166   :  { %7269 = vsyncpa [#allocation7], 1 }
0x2167   :  { %7270 = vsyncpa [#allocation10], 1 }
0x2168   :  { %7271 = vsyncpa [#allocation13], 1 }
0x2169   :  { %7272 = vsyncpa [#allocation16], 1 }
0x216a   :  { %7273 = vsyncpa [#allocation19], 1 }
0x216b   :  { %7274 = vsyncpa [#allocation5], 1 }
0x216c   :  { %7276 = vsyncpa [#allocation5 + $0x1], 1 }
0x216d   :  { %7277 = vsyncpa [#allocation22], 1 }
0x216e   :  { %7279 = vsyncpa [#allocation22 + $0x1], 1 }

</bundles_post_ra>
